<compile_context>
chip_gen: v7x
topology: tpu7x:2x2x1
jax: 0.10.0
libtpu: 0.0.40
codegen_flags: <defaults>
</compile_context>

<pallas_src>
import functools
import math

import jax
import jax.numpy as jnp
from jax.experimental import pallas as pl
from jax.experimental.pallas import tpu as pltpu

EMBED_DIM = 256
MLP_HIDDEN = 128
SKIP_LAM = 2.0
PRUNING_LOC = (3, 6, 9)
DEPTH = 10
LN_EPS = 1e-5
VMEM_LIMIT = 32 * 1024 * 1024     # scoped-VMEM safe on v5e/v6e/v7x
WDTYPE = jnp.bfloat16             # MXU weight streaming dtype (activations stay f32)


# ---------------------------------------------------------------------------
# Fully fused kernel: grid over layer depth; activation + policy resident in VMEM.
#   layer l (pruning): keep = gumbel-hard-keep(PredictorLG(x, pol)) * pol
#                      x = (x*keep) + Mlp(LN(x*keep)) / skip_lam ; pol = keep
#   layer l (other)  : x = x + Mlp(LN(x)) / skip_lam
# ---------------------------------------------------------------------------
def _selection_kernel(x_ref, gd_ref,
                      g_ref, be_ref, w1_ref, b1_ref, w2_ref, b2_ref,
                      w1c_ref, b1c_ref, wl_ref, bl_ref, wg_ref, bg_ref,
                      ow1a_ref, ow1b_ref, ob1_ref, ow2_ref, ob2_ref,
                      owd_ref, obd_ref,
                      keep_ref,
                      acc_ref, pol_ref, *, B, N):
    f32 = jnp.float32
    bf16 = jnp.bfloat16
    l = pl.program_id(0)

    @pl.when(l == 0)
    def _():
        acc_ref[...] = x_ref[...].astype(f32)
        pol_ref[...] = jnp.ones_like(pol_ref)

    is_prune = (l == PRUNING_LOC[0])
    for loc in PRUNING_LOC[1:]:
        is_prune = jnp.logical_or(is_prune, l == loc)

    @pl.when(is_prune)
    def _():
        xf = acc_ref[...]                    # (M, C) f32
        pol = pol_ref[...]                   # (M, 1) f32
        M, C = xf.shape

        # TODO(synk): reference PredictorLG has no `in_conv`; modeled as identity.
        # First fc1 of local & global chains fused into one (C, 2C) bf16 matmul.
        xb = xf.astype(bf16)
        h0 = jnp.maximum(
            jnp.dot(xb, w1c_ref[...], preferred_element_type=f32) + b1c_ref[...], 0.0)
        hl = h0[:, :C]
        hg = h0[:, C:]

        def chain_tail(hh, w_ref, b_ref):
            # remaining 5 matmuls of a 3-Mlp chain (fc2_1, fc1_2, fc2_2, fc1_3, fc2_3)
            y = jnp.dot(hh.astype(bf16), w_ref[0], preferred_element_type=f32) + b_ref[0]
            for i in (1, 3):
                hid = jnp.maximum(
                    jnp.dot(y.astype(bf16), w_ref[i],
                            preferred_element_type=f32) + b_ref[i], 0.0)
                y = jnp.dot(hid.astype(bf16), w_ref[i + 1],
                            preferred_element_type=f32) + b_ref[i + 1]
            return y

        lx = chain_tail(hl, wl_ref, bl_ref)          # (M, C)  local branch
        gx = chain_tail(hg, wg_ref, bg_ref)          # (M, C)  global branch

        # masked mean over tokens, per batch (clamp protects all-dropped case)
        gx3 = gx.reshape(B, N, C)
        p3 = pol.reshape(B, N, 1)
        num = jnp.sum(gx3 * p3, axis=1)                      # (B, C)
        den = jnp.maximum(jnp.sum(p3, axis=1), 1e-6)         # (B, 1)
        gmean = num / den                                    # (B, C)

        # out_conv first linear, W1 split into local/global halves; global half
        # computed once per batch and broadcast-added over tokens.
        Hh = ow1a_ref.shape[-1]
        h1l = jnp.dot(lx.astype(bf16), ow1a_ref[...], preferred_element_type=f32)
        h1g = jnp.dot(gmean.astype(bf16), ow1b_ref[...], preferred_element_type=f32)
        gadd = jnp.broadcast_to(h1g.reshape(B, 1, Hh), (B, N, Hh)).reshape(M, Hh)
        h1 = jnp.maximum(h1l + gadd + ob1_ref[...], 0.0)
        h2 = jnp.maximum(
            jnp.dot(h1.astype(bf16), ow2_ref[...],
                    preferred_element_type=f32) + ob2_ref[...], 0.0)

        # LogSoftmax over the 2 logits cancels inside the gumbel argmax:
        # keep <=> z0+g0 >= z1+g1 <=> h2@(w3[:,0]-w3[:,1]) + (b3_0-b3_1) + (g0-g1) >= 0
        d = jnp.sum(h2 * owd_ref[...], axis=-1, keepdims=True) + obd_ref[...] + gd_ref[...]
        keep = jnp.where(d >= 0.0, 1.0, 0.0) * pol           # (M, 1) f32
        keep_ref[...] = keep.astype(keep_ref.dtype)
        pol_ref[...] = keep
        acc_ref[...] = xf * keep                             # Block's policy multiply

    # Block: x = x + Mlp(LayerNorm(x)) / skip_lam   (dropout = identity, eval mode)
    xp = acc_ref[...]
    mu = jnp.mean(xp, axis=-1, keepdims=True)
    xc = xp - mu
    var = jnp.mean(xc * xc, axis=-1, keepdims=True)
    ln = xc * (g_ref[...] * jax.lax.rsqrt(var + LN_EPS)) + be_ref[...]
    h = jnp.maximum(
        jnp.dot(ln.astype(bf16), w1_ref[...], preferred_element_type=f32) + b1_ref[...], 0.0)
    y = jnp.dot(h.astype(bf16), w2_ref[...], preferred_element_type=f32) + b2_ref[...]
    acc_ref[...] = xp + y * (1.0 / SKIP_LAM)


def selection_call(x2d, gd_all, params, B, N):
    M, C = x2d.shape
    H = params['w1'].shape[-1]
    P = len(PRUNING_LOC)

    # Predictor block index = number of pruning locations already passed (clipped).
    # Monotone; changes immediately after each pruning layer so the next
    # predictor's weight DMA overlaps the intervening block-layer compute,
    # and each predictor's weights are fetched exactly once.
    def pidx(l):
        c = jnp.int32(0)
        for loc in PRUNING_LOC:
            c = c + (l > loc).astype(jnp.int32)
        return jnp.minimum(c, P - 1)

    def bmap(l):
        return (l, 0, 0)

    def pmap3(l):
        return (pidx(l), 0, 0)

    def pmap4(l):
        return (pidx(l), 0, 0, 0)

    operands = (x2d, gd_all,
                params['gamma'], params['beta'], params['w1'], params['b1'],
                params['w2'], params['b2'],
                params['w1cat'], params['b1cat'], params['wl'], params['bl'],
                params['wg'], params['bg'],
                params['ow1a'], params['ow1b'], params['ob1'],
                params['ow2'], params['ob2'], params['owd'], params['obd'])

    flops = int(DEPTH * 4 * M * C * H
                + P * (2 * M * C * (2 * C) + 2 * 10 * M * C * C
                       + 2 * M * C * (C // 2) + 2 * B * C * (C // 2)
                       + 2 * M * (C // 2) * (C // 4)))
    bytes_accessed = int(sum(a.size * a.dtype.itemsize for a in operands) + P * M * 4)

    in_specs = [
        pl.BlockSpec((M, C), lambda l: (0, 0)),                   # x (fetched once)
        pl.BlockSpec((None, M, 1), pmap3),                        # gumbel g0-g1
        pl.BlockSpec((None, 1, C), bmap),                         # LN gamma
        pl.BlockSpec((None, 1, C), bmap),                         # LN beta
        pl.BlockSpec((None, C, H), bmap),                         # block fc1 W (bf16)
        pl.BlockSpec((None, 1, H), bmap),                         # block fc1 b
        pl.BlockSpec((None, H, C), bmap),                         # block fc2 W (bf16)
        pl.BlockSpec((None, 1, C), bmap),                         # block fc2 b
        pl.BlockSpec((None, C, 2 * C), pmap3),                    # pred fc1 cat W (bf16)
        pl.BlockSpec((None, 1, 2 * C), pmap3),                    # pred fc1 cat b
        pl.BlockSpec((None, 5, C, C), pmap4),                     # pred local chain W (bf16)
        pl.BlockSpec((None, 5, 1, C), pmap4),                     # pred local chain b
        pl.BlockSpec((None, 5, C, C), pmap4),                     # pred global chain W (bf16)
        pl.BlockSpec((None, 5, 1, C), pmap4),                     # pred global chain b
        pl.BlockSpec((None, C, C // 2), pmap3),                   # out_conv W1 local (bf16)
        pl.BlockSpec((None, C, C // 2), pmap3),                   # out_conv W1 global (bf16)
        pl.BlockSpec((None, 1, C // 2), pmap3),                   # out_conv b1
        pl.BlockSpec((None, C // 2, C // 4), pmap3),              # out_conv W2 (bf16)
        pl.BlockSpec((None, 1, C // 4), pmap3),                   # out_conv b2
        pl.BlockSpec((None, 1, C // 4), pmap3),                   # out_conv W3 col-diff
        pl.BlockSpec((None, 1, 1), pmap3),                        # out_conv b3 diff
    ]

    return pl.pallas_call(
        functools.partial(_selection_kernel, B=B, N=N),
        out_shape=jax.ShapeDtypeStruct((P, M, 1), jnp.float32),
        grid=(DEPTH,),
        in_specs=in_specs,
        out_specs=pl.BlockSpec((None, M, 1), pmap3),
        scratch_shapes=[pltpu.VMEM((M, C), jnp.float32),   # activation
                        pltpu.VMEM((M, 1), jnp.float32)],  # policy / prev_decision
        compiler_params=pltpu.CompilerParams(
            dimension_semantics=("arbitrary",),
            vmem_limit_bytes=VMEM_LIMIT),
        cost_estimate=pl.CostEstimate(flops=flops, transcendentals=DEPTH * M,
                                      bytes_accessed=bytes_accessed),
    )(*operands)


# ---------------------------------------------------------------------------
# Parameter construction (mirrors the PyTorch __init__ shapes, restacked into
# the fused-kernel layout; MXU weights stored bf16, biases/LN stay f32).
# ---------------------------------------------------------------------------
def _xavier_uniform(key, fan_in, fan_out):
    bound = math.sqrt(6.0 / (fan_in + fan_out))
    return jax.random.uniform(key, (fan_in, fan_out), jnp.float32, -bound, bound)


def _make_mlp(key, in_f, hid_f):
    k1, k2, k3, k4 = jax.random.split(key, 4)
    w1 = _xavier_uniform(k1, in_f, hid_f)
    b1 = jax.random.normal(k2, (1, hid_f), jnp.float32) * 1e-6
    w2 = _xavier_uniform(k3, hid_f, in_f)
    b2 = jax.random.normal(k4, (1, in_f), jnp.float32) * 1e-6
    return (w1, b1, w2, b2)


def _make_linear(key, in_f, out_f):
    k1, k2 = jax.random.split(key)
    bound = 1.0 / math.sqrt(in_f)
    w = jax.random.uniform(k1, (in_f, out_f), jnp.float32, -bound, bound)
    b = jax.random.uniform(k2, (1, out_f), jnp.float32, -bound, bound)
    return (w, b)


def make_params(key, embed_dim=EMBED_DIM):
    kb, kp = jax.random.split(key)
    C = embed_dim

    g_l, be_l, w1_l, b1_l, w2_l, b2_l = [], [], [], [], [], []
    for k in jax.random.split(kb, DEPTH):
        km, _ = jax.random.split(k)
        w1, b1, w2, b2 = _make_mlp(km, C, MLP_HIDDEN)
        g_l.append(jnp.ones((1, C), jnp.float32))
        be_l.append(jnp.zeros((1, C), jnp.float32))
        w1_l.append(w1); b1_l.append(b1); w2_l.append(w2); b2_l.append(b2)

    w1cat_l, b1cat_l, wl_l, bl_l, wg_l, bg_l = [], [], [], [], [], []
    ow1a_l, ow1b_l, ob1_l, ow2_l, ob2_l, owd_l, obd_l = [], [], [], [], [], [], []
    for k in jax.random.split(kp, len(PRUNING_LOC)):
        kl, kg, ko = jax.random.split(k, 3)
        loc = [_make_mlp(kk, C, C) for kk in jax.random.split(kl, 3)]
        glb = [_make_mlp(kk, C, C) for kk in jax.random.split(kg, 3)]
        ko1, ko2, ko3 = jax.random.split(ko, 3)
        # TODO(synk): out_conv in_features widened from embed_dim to 2*embed_dim.
        oc1_w, oc1_b = _make_linear(ko1, 2 * C, C // 2)
        oc2_w, oc2_b = _make_linear(ko2, C // 2, C // 4)
        oc3_w, oc3_b = _make_linear(ko3, C // 4, 2)
        # first fc1 of local & global chains, concatenated along outputs
        w1cat_l.append(jnp.concatenate([loc[0][0], glb[0][0]], axis=1))
        b1cat_l.append(jnp.concatenate([loc[0][1], glb[0][1]], axis=1))
        # remaining 5 matmuls per chain: fc2_1, fc1_2, fc2_2, fc1_3, fc2_3
        wl_l.append(jnp.stack([loc[0][2], loc[1][0], loc[1][2], loc[2][0], loc[2][2]]))
        bl_l.append(jnp.stack([loc[0][3], loc[1][1], loc[1][3], loc[2][1], loc[2][3]]))
        wg_l.append(jnp.stack([glb[0][2], glb[1][0], glb[1][2], glb[2][0], glb[2][2]]))
        bg_l.append(jnp.stack([glb[0][3], glb[1][1], glb[1][3], glb[2][1], glb[2][3]]))
        # out_conv W1 split into local / global halves
        ow1a_l.append(oc1_w[:C, :]); ow1b_l.append(oc1_w[C:, :]); ob1_l.append(oc1_b)
        ow2_l.append(oc2_w); ob2_l.append(oc2_b)
        # only the (col0 - col1) difference of the last linear matters
        owd_l.append((oc3_w[:, 0] - oc3_w[:, 1]).reshape(1, C // 4))
        obd_l.append((oc3_b[:, 0] - oc3_b[:, 1]).reshape(1, 1))

    st = jnp.stack
    return dict(
        gamma=st(g_l), beta=st(be_l),
        w1=st(w1_l).astype(WDTYPE), b1=st(b1_l),
        w2=st(w2_l).astype(WDTYPE), b2=st(b2_l),
        w1cat=st(w1cat_l).astype(WDTYPE), b1cat=st(b1cat_l),
        wl=st(wl_l).astype(WDTYPE), bl=st(bl_l),
        wg=st(wg_l).astype(WDTYPE), bg=st(bg_l),
        ow1a=st(ow1a_l).astype(WDTYPE), ow1b=st(ow1b_l).astype(WDTYPE), ob1=st(ob1_l),
        ow2=st(ow2_l).astype(WDTYPE), ob2=st(ob2_l),
        owd=st(owd_l), obd=st(obd_l),
    )


# ---------------------------------------------------------------------------
# Forward pass: one fused pallas_call for the whole 10-layer / 3-predictor stack.
# ---------------------------------------------------------------------------
def selection_forward(x, params, key):
    b, c, h, w = x.shape
    C = h * w
    B, N = b, c
    M = B * N
    xf = x.reshape(M, C)

    # gumbel noise difference g0 - g1 per (predictor, token); stochastic op = glue
    gum = jax.random.gumbel(key, (len(PRUNING_LOC), M, 2), jnp.float32)
    gd_all = gum[..., 0:1] - gum[..., 1:2]                       # (P, M, 1)

    keep_all = selection_call(xf, gd_all, params, B, N)          # (P, M, 1)
    out_pred_prob = [keep_all[p].reshape(B, N) for p in range(len(PRUNING_LOC))]
    prev_decision = keep_all[-1].reshape(B, N, 1)[..., None]     # (B, N, 1, 1)
    return prev_decision, out_pred_prob


# ---------------------------------------------------------------------------
if __name__ == "__main__":
    key = jax.random.PRNGKey(0)
    k_param, k_data, k_gumbel = jax.random.split(key, 3)

    # x: (b, c, h, w) with h*w == embed_dim (256); tokens = c
    b, c, h, w = 2, 8, 16, 16
    x = jax.random.normal(k_data, (b, c, h, w), jnp.float32)

    params = make_params(k_param, embed_dim=h * w)

    fwd = jax.jit(lambda xx: selection_forward(xx, params, k_gumbel))
    prev_decision, out_pred_prob = fwd(x)

    jax.block_until_ready(prev_decision)
    for p in out_pred_prob:
        jax.block_until_ready(p)

    assert prev_decision.shape == (b, c, 1, 1)
    assert len(out_pred_prob) == len(PRUNING_LOC)
    assert all(p.shape == (b, c) for p in out_pred_prob)
    # hard keep decisions must be exactly 0/1
    for p in out_pred_prob:
        assert bool(jnp.all((p == 0.0) | (p == 1.0)))
    print("KERNEL_OK")
</pallas_src>

<mosaic_0001>
module attributes {stable_mosaic.version = 11 : i64} {
  func.func @_selection_kernel(%arg0: i32, %arg1: memref<16x256xf32, #tpu.memory_space<vmem>>, %arg2: memref<1x16x1xf32, #tpu.memory_space<vmem>>, %arg3: memref<1x1x256xf32, #tpu.memory_space<vmem>>, %arg4: memref<1x1x256xf32, #tpu.memory_space<vmem>>, %arg5: memref<1x256x128xbf16, #tpu.memory_space<vmem>>, %arg6: memref<1x1x128xf32, #tpu.memory_space<vmem>>, %arg7: memref<1x128x256xbf16, #tpu.memory_space<vmem>>, %arg8: memref<1x1x256xf32, #tpu.memory_space<vmem>>, %arg9: memref<1x256x512xbf16, #tpu.memory_space<vmem>>, %arg10: memref<1x1x512xf32, #tpu.memory_space<vmem>>, %arg11: memref<1x5x256x256xbf16, #tpu.memory_space<vmem>>, %arg12: memref<1x5x1x256xf32, #tpu.memory_space<vmem>>, %arg13: memref<1x5x256x256xbf16, #tpu.memory_space<vmem>>, %arg14: memref<1x5x1x256xf32, #tpu.memory_space<vmem>>, %arg15: memref<1x256x128xbf16, #tpu.memory_space<vmem>>, %arg16: memref<1x256x128xbf16, #tpu.memory_space<vmem>>, %arg17: memref<1x1x128xf32, #tpu.memory_space<vmem>>, %arg18: memref<1x128x64xbf16, #tpu.memory_space<vmem>>, %arg19: memref<1x1x64xf32, #tpu.memory_space<vmem>>, %arg20: memref<1x1x64xf32, #tpu.memory_space<vmem>>, %arg21: memref<1x1x1xf32, #tpu.memory_space<vmem>>, %arg22: memref<1x16x1xf32, #tpu.memory_space<vmem>>, %arg23: memref<16x256xf32, #tpu.memory_space<vmem>>, %arg24: memref<16x1xf32, #tpu.memory_space<vmem>>) attributes {dimension_semantics = [#tpu.dimension_semantics<arbitrary>], iteration_bounds = array<i64: 10>, scalar_prefetch = 0 : i64, scratch_operands = 2 : i64, tpu.core_type = #tpu.core_type<tc>, window_params = [{pipeline_mode = #tpu.pipeline_mode<synchronous>, transform_indices = @transform_0, window_bounds = array<i64: 16, 256>}, {transform_indices = @transform_1, window_bounds = array<i64: 1, 16, 1>}, {transform_indices = @transform_2, window_bounds = array<i64: 1, 1, 256>}, {transform_indices = @transform_3, window_bounds = array<i64: 1, 1, 256>}, {transform_indices = @transform_4, window_bounds = array<i64: 1, 256, 128>}, {transform_indices = @transform_5, window_bounds = array<i64: 1, 1, 128>}, {transform_indices = @transform_6, window_bounds = array<i64: 1, 128, 256>}, {transform_indices = @transform_7, window_bounds = array<i64: 1, 1, 256>}, {transform_indices = @transform_8, window_bounds = array<i64: 1, 256, 512>}, {transform_indices = @transform_9, window_bounds = array<i64: 1, 1, 512>}, {transform_indices = @transform_10, window_bounds = array<i64: 1, 5, 256, 256>}, {transform_indices = @transform_11, window_bounds = array<i64: 1, 5, 1, 256>}, {transform_indices = @transform_12, window_bounds = array<i64: 1, 5, 256, 256>}, {transform_indices = @transform_13, window_bounds = array<i64: 1, 5, 1, 256>}, {transform_indices = @transform_14, window_bounds = array<i64: 1, 256, 128>}, {transform_indices = @transform_15, window_bounds = array<i64: 1, 256, 128>}, {transform_indices = @transform_16, window_bounds = array<i64: 1, 1, 128>}, {transform_indices = @transform_17, window_bounds = array<i64: 1, 128, 64>}, {transform_indices = @transform_18, window_bounds = array<i64: 1, 1, 64>}, {transform_indices = @transform_19, window_bounds = array<i64: 1, 1, 64>}, {transform_indices = @transform_20, window_bounds = array<i64: 1, 1, 1>}, {transform_indices = @transform_21, window_bounds = array<i64: 1, 16, 1>}]} {
    %c0_i32 = arith.constant 0 : i32
    %0 = arith.cmpi eq, %arg0, %c0_i32 : i32
    %1 = arith.extui %0 : i1 to i32
    %c0_i32_0 = arith.constant 0 : i32
    %2 = arith.cmpi ne, %1, %c0_i32_0 : i32
    scf.if %2 {
      %c0_31 = arith.constant 0 : index
      %c0_32 = arith.constant 0 : index
      %57 = vector.load %arg1[%c0_31, %c0_32] : memref<16x256xf32, #tpu.memory_space<vmem>>, vector<16x256xf32>
      %c0_33 = arith.constant 0 : index
      %c0_34 = arith.constant 0 : index
      %58 = vector.load %arg23[%c0_33, %c0_34] : memref<16x256xf32, #tpu.memory_space<vmem>>, vector<16x256xf32>
      tpu.vector_store %arg23[%c0_33, %c0_34], %57 {strides = array<i32>} : memref<16x256xf32, #tpu.memory_space<vmem>>, vector<16x256xf32>,
      %cst_35 = arith.constant 1.000000e+00 : f32
      %59 = vector.broadcast %cst_35 : f32 to vector<16x1xf32>
      %c0_36 = arith.constant 0 : index
      %c0_37 = arith.constant 0 : index
      %60 = vector.load %arg24[%c0_36, %c0_37] : memref<16x1xf32, #tpu.memory_space<vmem>>, vector<16x1xf32>
      tpu.vector_store %arg24[%c0_36, %c0_37], %59 {strides = array<i32>} : memref<16x1xf32, #tpu.memory_space<vmem>>, vector<16x1xf32>,
    } else {
    }
    %c3_i32 = arith.constant 3 : i32
    %3 = arith.cmpi eq, %arg0, %c3_i32 : i32
    %c6_i32 = arith.constant 6 : i32
    %4 = arith.cmpi eq, %arg0, %c6_i32 : i32
    %5 = arith.ori %3, %4 : i1
    %c9_i32 = arith.constant 9 : i32
    %6 = arith.cmpi eq, %arg0, %c9_i32 : i32
    %7 = arith.ori %5, %6 : i1
    %8 = arith.extui %7 : i1 to i32
    %c0_i32_1 = arith.constant 0 : i32
    %9 = arith.cmpi ne, %8, %c0_i32_1 : i32
    scf.if %9 {
      %c0_31 = arith.constant 0 : index
      %c0_32 = arith.constant 0 : index
      %57 = vector.load %arg23[%c0_31, %c0_32] : memref<16x256xf32, #tpu.memory_space<vmem>>, vector<16x256xf32>
      %c0_33 = arith.constant 0 : index
      %c0_34 = arith.constant 0 : index
      %58 = vector.load %arg24[%c0_33, %c0_34] : memref<16x1xf32, #tpu.memory_space<vmem>>, vector<16x1xf32>
      %59 = arith.truncf %57 : vector<16x256xf32> to vector<16x256xbf16>
      %c0_35 = arith.constant 0 : index
      %c0_36 = arith.constant 0 : index
      %c0_37 = arith.constant 0 : index
      %60 = vector.load %arg9[%c0_35, %c0_36, %c0_37] : memref<1x256x512xbf16, #tpu.memory_space<vmem>>, vector<1x256x512xbf16>
      %61 = vector.shape_cast %60 : vector<1x256x512xbf16> to vector<256x512xbf16>
      %cst_38 = arith.constant dense<0.000000e+00> : vector<16x512xf32>
      %62 = tpu.matmul %59, %61, %cst_38 {dimension_numbers = #tpu.dot_dimension_numbers<[1], [0], [0], [1], [0, 0, 1, 1], [], []>} : vector<16x256xbf16>, vector<256x512xbf16>, vector<16x512xf32> -> vector<16x512xf32>
      %c0_39 = arith.constant 0 : index
      %c0_40 = arith.constant 0 : index
      %c0_41 = arith.constant 0 : index
      %63 = vector.load %arg10[%c0_39, %c0_40, %c0_41] : memref<1x1x512xf32, #tpu.memory_space<vmem>>, vector<1x1x512xf32>
      %64 = vector.shape_cast %63 : vector<1x1x512xf32> to vector<1x512xf32>
      %65 = vector.broadcast %64 : vector<1x512xf32> to vector<16x512xf32>
      %66 = arith.addf %62, %65 : vector<16x512xf32>
      %cst_42 = arith.constant 0.000000e+00 : f32
      %67 = vector.broadcast %cst_42 : f32 to vector<16x512xf32>
      %68 = arith.maximumf %66, %67 : vector<16x512xf32>
      %69 = vector.extract_strided_slice %68 {offsets = [0, 0], sizes = [16, 256], strides = [1, 1]} : vector<16x512xf32> to vector<16x256xf32>
      %70 = vector.extract_strided_slice %68 {offsets = [0, 256], sizes = [16, 256], strides = [1, 1]} : vector<16x512xf32> to vector<16x256xf32>
      %71 = arith.truncf %69 : vector<16x256xf32> to vector<16x256xbf16>
      %c0_43 = arith.constant 0 : index
      %c0_44 = arith.constant 0 : index
      %c0_45 = arith.constant 0 : index
      %c0_46 = arith.constant 0 : index
      %72 = vector.load %arg11[%c0_43, %c0_44, %c0_45, %c0_46] : memref<1x5x256x256xbf16, #tpu.memory_space<vmem>>, vector<1x1x256x256xbf16>
      %73 = vector.shape_cast %72 : vector<1x1x256x256xbf16> to vector<256x256xbf16>
      %cst_47 = arith.constant dense<0.000000e+00> : vector<16x256xf32>
      %74 = tpu.matmul %71, %73, %cst_47 {dimension_numbers = #tpu.dot_dimension_numbers<[1], [0], [0], [1], [0, 0, 1, 1], [], []>} : vector<16x256xbf16>, vector<256x256xbf16>, vector<16x256xf32> -> vector<16x256xf32>
      %c0_48 = arith.constant 0 : index
      %c0_49 = arith.constant 0 : index
      %c0_50 = arith.constant 0 : index
      %c0_51 = arith.constant 0 : index
      %75 = vector.load %arg12[%c0_48, %c0_49, %c0_50, %c0_51] : memref<1x5x1x256xf32, #tpu.memory_space<vmem>>, vector<1x1x1x256xf32>
      %76 = vector.shape_cast %75 : vector<1x1x1x256xf32> to vector<1x256xf32>
      %77 = vector.broadcast %76 : vector<1x256xf32> to vector<16x256xf32>
      %78 = arith.addf %74, %77 : vector<16x256xf32>
      %79 = arith.truncf %78 : vector<16x256xf32> to vector<16x256xbf16>
      %c0_52 = arith.constant 0 : index
      %c1 = arith.constant 1 : index
      %c0_53 = arith.constant 0 : index
      %c0_54 = arith.constant 0 : index
      %80 = vector.load %arg11[%c0_52, %c1, %c0_53, %c0_54] : memref<1x5x256x256xbf16, #tpu.memory_space<vmem>>, vector<1x1x256x256xbf16>
      %81 = vector.shape_cast %80 : vector<1x1x256x256xbf16> to vector<256x256xbf16>
      %cst_55 = arith.constant dense<0.000000e+00> : vector<16x256xf32>
      %82 = tpu.matmul %79, %81, %cst_55 {dimension_numbers = #tpu.dot_dimension_numbers<[1], [0], [0], [1], [0, 0, 1, 1], [], []>} : vector<16x256xbf16>, vector<256x256xbf16>, vector<16x256xf32> -> vector<16x256xf32>
      %c0_56 = arith.constant 0 : index
      %c1_57 = arith.constant 1 : index
      %c0_58 = arith.constant 0 : index
      %c0_59 = arith.constant 0 : index
      %83 = vector.load %arg12[%c0_56, %c1_57, %c0_58, %c0_59] : memref<1x5x1x256xf32, #tpu.memory_space<vmem>>, vector<1x1x1x256xf32>
      %84 = vector.shape_cast %83 : vector<1x1x1x256xf32> to vector<1x256xf32>
      %85 = vector.broadcast %84 : vector<1x256xf32> to vector<16x256xf32>
      %86 = arith.addf %82, %85 : vector<16x256xf32>
      %cst_60 = arith.constant 0.000000e+00 : f32
      %87 = vector.broadcast %cst_60 : f32 to vector<16x256xf32>
      %88 = arith.maximumf %86, %87 : vector<16x256xf32>
      %89 = arith.truncf %88 : vector<16x256xf32> to vector<16x256xbf16>
      %c0_61 = arith.constant 0 : index
      %c2 = arith.constant 2 : index
      %c0_62 = arith.constant 0 : index
      %c0_63 = arith.constant 0 : index
      %90 = vector.load %arg11[%c0_61, %c2, %c0_62, %c0_63] : memref<1x5x256x256xbf16, #tpu.memory_space<vmem>>, vector<1x1x256x256xbf16>
      %91 = vector.shape_cast %90 : vector<1x1x256x256xbf16> to vector<256x256xbf16>
      %cst_64 = arith.constant dense<0.000000e+00> : vector<16x256xf32>
      %92 = tpu.matmul %89, %91, %cst_64 {dimension_numbers = #tpu.dot_dimension_numbers<[1], [0], [0], [1], [0, 0, 1, 1], [], []>} : vector<16x256xbf16>, vector<256x256xbf16>, vector<16x256xf32> -> vector<16x256xf32>
      %c0_65 = arith.constant 0 : index
      %c2_66 = arith.constant 2 : index
      %c0_67 = arith.constant 0 : index
      %c0_68 = arith.constant 0 : index
      %93 = vector.load %arg12[%c0_65, %c2_66, %c0_67, %c0_68] : memref<1x5x1x256xf32, #tpu.memory_space<vmem>>, vector<1x1x1x256xf32>
      %94 = vector.shape_cast %93 : vector<1x1x1x256xf32> to vector<1x256xf32>
      %95 = vector.broadcast %94 : vector<1x256xf32> to vector<16x256xf32>
      %96 = arith.addf %92, %95 : vector<16x256xf32>
      %97 = arith.truncf %96 : vector<16x256xf32> to vector<16x256xbf16>
      %c0_69 = arith.constant 0 : index
      %c3 = arith.constant 3 : index
      %c0_70 = arith.constant 0 : index
      %c0_71 = arith.constant 0 : index
      %98 = vector.load %arg11[%c0_69, %c3, %c0_70, %c0_71] : memref<1x5x256x256xbf16, #tpu.memory_space<vmem>>, vector<1x1x256x256xbf16>
      %99 = vector.shape_cast %98 : vector<1x1x256x256xbf16> to vector<256x256xbf16>
      %cst_72 = arith.constant dense<0.000000e+00> : vector<16x256xf32>
      %100 = tpu.matmul %97, %99, %cst_72 {dimension_numbers = #tpu.dot_dimension_numbers<[1], [0], [0], [1], [0, 0, 1, 1], [], []>} : vector<16x256xbf16>, vector<256x256xbf16>, vector<16x256xf32> -> vector<16x256xf32>
      %c0_73 = arith.constant 0 : index
      %c3_74 = arith.constant 3 : index
      %c0_75 = arith.constant 0 : index
      %c0_76 = arith.constant 0 : index
      %101 = vector.load %arg12[%c0_73, %c3_74, %c0_75, %c0_76] : memref<1x5x1x256xf32, #tpu.memory_space<vmem>>, vector<1x1x1x256xf32>
      %102 = vector.shape_cast %101 : vector<1x1x1x256xf32> to vector<1x256xf32>
      %103 = vector.broadcast %102 : vector<1x256xf32> to vector<16x256xf32>
      %104 = arith.addf %100, %103 : vector<16x256xf32>
      %cst_77 = arith.constant 0.000000e+00 : f32
      %105 = vector.broadcast %cst_77 : f32 to vector<16x256xf32>
      %106 = arith.maximumf %104, %105 : vector<16x256xf32>
      %107 = arith.truncf %106 : vector<16x256xf32> to vector<16x256xbf16>
      %c0_78 = arith.constant 0 : index
      %c4 = arith.constant 4 : index
      %c0_79 = arith.constant 0 : index
      %c0_80 = arith.constant 0 : index
      %108 = vector.load %arg11[%c0_78, %c4, %c0_79, %c0_80] : memref<1x5x256x256xbf16, #tpu.memory_space<vmem>>, vector<1x1x256x256xbf16>
      %109 = vector.shape_cast %108 : vector<1x1x256x256xbf16> to vector<256x256xbf16>
      %cst_81 = arith.constant dense<0.000000e+00> : vector<16x256xf32>
      %110 = tpu.matmul %107, %109, %cst_81 {dimension_numbers = #tpu.dot_dimension_numbers<[1], [0], [0], [1], [0, 0, 1, 1], [], []>} : vector<16x256xbf16>, vector<256x256xbf16>, vector<16x256xf32> -> vector<16x256xf32>
      %c0_82 = arith.constant 0 : index
      %c4_83 = arith.constant 4 : index
      %c0_84 = arith.constant 0 : index
      %c0_85 = arith.constant 0 : index
      %111 = vector.load %arg12[%c0_82, %c4_83, %c0_84, %c0_85] : memref<1x5x1x256xf32, #tpu.memory_space<vmem>>, vector<1x1x1x256xf32>
      %112 = vector.shape_cast %111 : vector<1x1x1x256xf32> to vector<1x256xf32>
      %113 = vector.broadcast %112 : vector<1x256xf32> to vector<16x256xf32>
      %114 = arith.addf %110, %113 : vector<16x256xf32>
      %115 = arith.truncf %70 : vector<16x256xf32> to vector<16x256xbf16>
      %c0_86 = arith.constant 0 : index
      %c0_87 = arith.constant 0 : index
      %c0_88 = arith.constant 0 : index
      %c0_89 = arith.constant 0 : index
      %116 = vector.load %arg13[%c0_86, %c0_87, %c0_88, %c0_89] : memref<1x5x256x256xbf16, #tpu.memory_space<vmem>>, vector<1x1x256x256xbf16>
      %117 = vector.shape_cast %116 : vector<1x1x256x256xbf16> to vector<256x256xbf16>
      %cst_90 = arith.constant dense<0.000000e+00> : vector<16x256xf32>
      %118 = tpu.matmul %115, %117, %cst_90 {dimension_numbers = #tpu.dot_dimension_numbers<[1], [0], [0], [1], [0, 0, 1, 1], [], []>} : vector<16x256xbf16>, vector<256x256xbf16>, vector<16x256xf32> -> vector<16x256xf32>
      %c0_91 = arith.constant 0 : index
      %c0_92 = arith.constant 0 : index
      %c0_93 = arith.constant 0 : index
      %c0_94 = arith.constant 0 : index
      %119 = vector.load %arg14[%c0_91, %c0_92, %c0_93, %c0_94] : memref<1x5x1x256xf32, #tpu.memory_space<vmem>>, vector<1x1x1x256xf32>
      %120 = vector.shape_cast %119 : vector<1x1x1x256xf32> to vector<1x256xf32>
      %121 = vector.broadcast %120 : vector<1x256xf32> to vector<16x256xf32>
      %122 = arith.addf %118, %121 : vector<16x256xf32>
      %123 = arith.truncf %122 : vector<16x256xf32> to vector<16x256xbf16>
      %c0_95 = arith.constant 0 : index
      %c1_96 = arith.constant 1 : index
      %c0_97 = arith.constant 0 : index
      %c0_98 = arith.constant 0 : index
      %124 = vector.load %arg13[%c0_95, %c1_96, %c0_97, %c0_98] : memref<1x5x256x256xbf16, #tpu.memory_space<vmem>>, vector<1x1x256x256xbf16>
      %125 = vector.shape_cast %124 : vector<1x1x256x256xbf16> to vector<256x256xbf16>
      %cst_99 = arith.constant dense<0.000000e+00> : vector<16x256xf32>
      %126 = tpu.matmul %123, %125, %cst_99 {dimension_numbers = #tpu.dot_dimension_numbers<[1], [0], [0], [1], [0, 0, 1, 1], [], []>} : vector<16x256xbf16>, vector<256x256xbf16>, vector<16x256xf32> -> vector<16x256xf32>
      %c0_100 = arith.constant 0 : index
      %c1_101 = arith.constant 1 : index
      %c0_102 = arith.constant 0 : index
      %c0_103 = arith.constant 0 : index
      %127 = vector.load %arg14[%c0_100, %c1_101, %c0_102, %c0_103] : memref<1x5x1x256xf32, #tpu.memory_space<vmem>>, vector<1x1x1x256xf32>
      %128 = vector.shape_cast %127 : vector<1x1x1x256xf32> to vector<1x256xf32>
      %129 = vector.broadcast %128 : vector<1x256xf32> to vector<16x256xf32>
      %130 = arith.addf %126, %129 : vector<16x256xf32>
      %cst_104 = arith.constant 0.000000e+00 : f32
      %131 = vector.broadcast %cst_104 : f32 to vector<16x256xf32>
      %132 = arith.maximumf %130, %131 : vector<16x256xf32>
      %133 = arith.truncf %132 : vector<16x256xf32> to vector<16x256xbf16>
      %c0_105 = arith.constant 0 : index
      %c2_106 = arith.constant 2 : index
      %c0_107 = arith.constant 0 : index
      %c0_108 = arith.constant 0 : index
      %134 = vector.load %arg13[%c0_105, %c2_106, %c0_107, %c0_108] : memref<1x5x256x256xbf16, #tpu.memory_space<vmem>>, vector<1x1x256x256xbf16>
      %135 = vector.shape_cast %134 : vector<1x1x256x256xbf16> to vector<256x256xbf16>
      %cst_109 = arith.constant dense<0.000000e+00> : vector<16x256xf32>
      %136 = tpu.matmul %133, %135, %cst_109 {dimension_numbers = #tpu.dot_dimension_numbers<[1], [0], [0], [1], [0, 0, 1, 1], [], []>} : vector<16x256xbf16>, vector<256x256xbf16>, vector<16x256xf32> -> vector<16x256xf32>
      %c0_110 = arith.constant 0 : index
      %c2_111 = arith.constant 2 : index
      %c0_112 = arith.constant 0 : index
      %c0_113 = arith.constant 0 : index
      %137 = vector.load %arg14[%c0_110, %c2_111, %c0_112, %c0_113] : memref<1x5x1x256xf32, #tpu.memory_space<vmem>>, vector<1x1x1x256xf32>
      %138 = vector.shape_cast %137 : vector<1x1x1x256xf32> to vector<1x256xf32>
      %139 = vector.broadcast %138 : vector<1x256xf32> to vector<16x256xf32>
      %140 = arith.addf %136, %139 : vector<16x256xf32>
      %141 = arith.truncf %140 : vector<16x256xf32> to vector<16x256xbf16>
      %c0_114 = arith.constant 0 : index
      %c3_115 = arith.constant 3 : index
      %c0_116 = arith.constant 0 : index
      %c0_117 = arith.constant 0 : index
      %142 = vector.load %arg13[%c0_114, %c3_115, %c0_116, %c0_117] : memref<1x5x256x256xbf16, #tpu.memory_space<vmem>>, vector<1x1x256x256xbf16>
      %143 = vector.shape_cast %142 : vector<1x1x256x256xbf16> to vector<256x256xbf16>
      %cst_118 = arith.constant dense<0.000000e+00> : vector<16x256xf32>
      %144 = tpu.matmul %141, %143, %cst_118 {dimension_numbers = #tpu.dot_dimension_numbers<[1], [0], [0], [1], [0, 0, 1, 1], [], []>} : vector<16x256xbf16>, vector<256x256xbf16>, vector<16x256xf32> -> vector<16x256xf32>
      %c0_119 = arith.constant 0 : index
      %c3_120 = arith.constant 3 : index
      %c0_121 = arith.constant 0 : index
      %c0_122 = arith.constant 0 : index
      %145 = vector.load %arg14[%c0_119, %c3_120, %c0_121, %c0_122] : memref<1x5x1x256xf32, #tpu.memory_space<vmem>>, vector<1x1x1x256xf32>
      %146 = vector.shape_cast %145 : vector<1x1x1x256xf32> to vector<1x256xf32>
      %147 = vector.broadcast %146 : vector<1x256xf32> to vector<16x256xf32>
      %148 = arith.addf %144, %147 : vector<16x256xf32>
      %cst_123 = arith.constant 0.000000e+00 : f32
      %149 = vector.broadcast %cst_123 : f32 to vector<16x256xf32>
      %150 = arith.maximumf %148, %149 : vector<16x256xf32>
      %151 = arith.truncf %150 : vector<16x256xf32> to vector<16x256xbf16>
      %c0_124 = arith.constant 0 : index
      %c4_125 = arith.constant 4 : index
      %c0_126 = arith.constant 0 : index
      %c0_127 = arith.constant 0 : index
      %152 = vector.load %arg13[%c0_124, %c4_125, %c0_126, %c0_127] : memref<1x5x256x256xbf16, #tpu.memory_space<vmem>>, vector<1x1x256x256xbf16>
      %153 = vector.shape_cast %152 : vector<1x1x256x256xbf16> to vector<256x256xbf16>
      %cst_128 = arith.constant dense<0.000000e+00> : vector<16x256xf32>
      %154 = tpu.matmul %151, %153, %cst_128 {dimension_numbers = #tpu.dot_dimension_numbers<[1], [0], [0], [1], [0, 0, 1, 1], [], []>} : vector<16x256xbf16>, vector<256x256xbf16>, vector<16x256xf32> -> vector<16x256xf32>
      %c0_129 = arith.constant 0 : index
      %c4_130 = arith.constant 4 : index
      %c0_131 = arith.constant 0 : index
      %c0_132 = arith.constant 0 : index
      %155 = vector.load %arg14[%c0_129, %c4_130, %c0_131, %c0_132] : memref<1x5x1x256xf32, #tpu.memory_space<vmem>>, vector<1x1x1x256xf32>
      %156 = vector.shape_cast %155 : vector<1x1x1x256xf32> to vector<1x256xf32>
      %157 = vector.broadcast %156 : vector<1x256xf32> to vector<16x256xf32>
      %158 = arith.addf %154, %157 : vector<16x256xf32>
      %159 = vector.shape_cast %158 : vector<16x256xf32> to vector<2x8x256xf32>
      %160 = vector.shape_cast %58 : vector<16x1xf32> to vector<2x8x1xf32>
      %161 = vector.broadcast %160 : vector<2x8x1xf32> to vector<2x8x256xf32>
      %162 = arith.mulf %159, %161 : vector<2x8x256xf32>
      %cst_133 = arith.constant dense<0.000000e+00> : vector<2x256xf32>
      %163 = vector.multi_reduction <add>, %162, %cst_133 [1] : vector<2x8x256xf32> to vector<2x256xf32>
      %cst_134 = arith.constant dense<0.000000e+00> : vector<2x1xf32>
      %164 = vector.multi_reduction <add>, %160, %cst_134 [1] : vector<2x8x1xf32> to vector<2x1xf32>
      %cst_135 = arith.constant 9.99999997E-7 : f32
      %165 = vector.broadcast %cst_135 : f32 to vector<2x1xf32>
      %166 = arith.maximumf %164, %165 : vector<2x1xf32>
      %167 = vector.broadcast %166 : vector<2x1xf32> to vector<2x256xf32>
      %168 = arith.divf %163, %167 : vector<2x256xf32>
      %169 = arith.truncf %114 : vector<16x256xf32> to vector<16x256xbf16>
      %c0_136 = arith.constant 0 : index
      %c0_137 = arith.constant 0 : index
      %c0_138 = arith.constant 0 : index
      %170 = vector.load %arg15[%c0_136, %c0_137, %c0_138] : memref<1x256x128xbf16, #tpu.memory_space<vmem>>, vector<1x256x128xbf16>
      %171 = vector.shape_cast %170 : vector<1x256x128xbf16> to vector<256x128xbf16>
      %cst_139 = arith.constant dense<0.000000e+00> : vector<16x128xf32>
      %172 = tpu.matmul %169, %171, %cst_139 {dimension_numbers = #tpu.dot_dimension_numbers<[1], [0], [0], [1], [0, 0, 1, 1], [], []>} : vector<16x256xbf16>, vector<256x128xbf16>, vector<16x128xf32> -> vector<16x128xf32>
      %173 = arith.truncf %168 : vector<2x256xf32> to vector<2x256xbf16>
      %c0_140 = arith.constant 0 : index
      %c0_141 = arith.constant 0 : index
      %c0_142 = arith.constant 0 : index
      %174 = vector.load %arg16[%c0_140, %c0_141, %c0_142] : memref<1x256x128xbf16, #tpu.memory_space<vmem>>, vector<1x256x128xbf16>
      %175 = vector.shape_cast %174 : vector<1x256x128xbf16> to vector<256x128xbf16>
      %cst_143 = arith.constant dense<0.000000e+00> : vector<2x128xf32>
      %176 = tpu.matmul %173, %175, %cst_143 {dimension_numbers = #tpu.dot_dimension_numbers<[1], [0], [0], [1], [0, 0, 1, 1], [], []>} : vector<2x256xbf16>, vector<256x128xbf16>, vector<2x128xf32> -> vector<2x128xf32>
      %177 = vector.shape_cast %176 : vector<2x128xf32> to vector<2x1x128xf32>
      %178 = vector.shape_cast %177 : vector<2x1x128xf32> to vector<2x1x128xf32>
      %179 = vector.broadcast %178 : vector<2x1x128xf32> to vector<2x8x128xf32>
      %180 = vector.shape_cast %179 : vector<2x8x128xf32> to vector<16x128xf32>
      %181 = arith.addf %172, %180 : vector<16x128xf32>
      %c0_144 = arith.constant 0 : index
      %c0_145 = arith.constant 0 : index
      %c0_146 = arith.constant 0 : index
      %182 = vector.load %arg17[%c0_144, %c0_145, %c0_146] : memref<1x1x128xf32, #tpu.memory_space<vmem>>, vector<1x1x128xf32>
      %183 = vector.shape_cast %182 : vector<1x1x128xf32> to vector<1x128xf32>
      %184 = vector.broadcast %183 : vector<1x128xf32> to vector<16x128xf32>
      %185 = arith.addf %181, %184 : vector<16x128xf32>
      %cst_147 = arith.constant 0.000000e+00 : f32
      %186 = vector.broadcast %cst_147 : f32 to vector<16x128xf32>
      %187 = arith.maximumf %185, %186 : vector<16x128xf32>
      %188 = arith.truncf %187 : vector<16x128xf32> to vector<16x128xbf16>
      %c0_148 = arith.constant 0 : index
      %c0_149 = arith.constant 0 : index
      %c0_150 = arith.constant 0 : index
      %189 = vector.load %arg18[%c0_148, %c0_149, %c0_150] : memref<1x128x64xbf16, #tpu.memory_space<vmem>>, vector<1x128x64xbf16>
      %190 = vector.shape_cast %189 : vector<1x128x64xbf16> to vector<128x64xbf16>
      %cst_151 = arith.constant dense<0.000000e+00> : vector<16x64xf32>
      %191 = tpu.matmul %188, %190, %cst_151 {dimension_numbers = #tpu.dot_dimension_numbers<[1], [0], [0], [1], [0, 0, 1, 1], [], []>} : vector<16x128xbf16>, vector<128x64xbf16>, vector<16x64xf32> -> vector<16x64xf32>
      %c0_152 = arith.constant 0 : index
      %c0_153 = arith.constant 0 : index
      %c0_154 = arith.constant 0 : index
      %192 = vector.load %arg19[%c0_152, %c0_153, %c0_154] : memref<1x1x64xf32, #tpu.memory_space<vmem>>, vector<1x1x64xf32>
      %193 = vector.shape_cast %192 : vector<1x1x64xf32> to vector<1x64xf32>
      %194 = vector.broadcast %193 : vector<1x64xf32> to vector<16x64xf32>
      %195 = arith.addf %191, %194 : vector<16x64xf32>
      %cst_155 = arith.constant 0.000000e+00 : f32
      %196 = vector.broadcast %cst_155 : f32 to vector<16x64xf32>
      %197 = arith.maximumf %195, %196 : vector<16x64xf32>
      %c0_156 = arith.constant 0 : index
      %c0_157 = arith.constant 0 : index
      %c0_158 = arith.constant 0 : index
      %198 = vector.load %arg20[%c0_156, %c0_157, %c0_158] : memref<1x1x64xf32, #tpu.memory_space<vmem>>, vector<1x1x64xf32>
      %199 = vector.shape_cast %198 : vector<1x1x64xf32> to vector<1x64xf32>
      %200 = vector.broadcast %199 : vector<1x64xf32> to vector<16x64xf32>
      %201 = arith.mulf %197, %200 : vector<16x64xf32>
      %cst_159 = arith.constant dense<0.000000e+00> : vector<16xf32>
      %202 = vector.multi_reduction <add>, %201, %cst_159 [1] : vector<16x64xf32> to vector<16xf32>
      %203 = vector.shape_cast %202 : vector<16xf32> to vector<16x1xf32>
      %c0_160 = arith.constant 0 : index
      %c0_161 = arith.constant 0 : index
      %c0_162 = arith.constant 0 : index
      %204 = vector.load %arg21[%c0_160, %c0_161, %c0_162] : memref<1x1x1xf32, #tpu.memory_space<vmem>>, vector<1x1x1xf32>
      %205 = vector.shape_cast %204 : vector<1x1x1xf32> to vector<1x1xf32>
      %206 = vector.broadcast %205 : vector<1x1xf32> to vector<16x1xf32>
      %207 = arith.addf %203, %206 : vector<16x1xf32>
      %c0_163 = arith.constant 0 : index
      %c0_164 = arith.constant 0 : index
      %c0_165 = arith.constant 0 : index
      %208 = vector.load %arg2[%c0_163, %c0_164, %c0_165] : memref<1x16x1xf32, #tpu.memory_space<vmem>>, vector<1x16x1xf32>
      %209 = vector.shape_cast %208 : vector<1x16x1xf32> to vector<16x1xf32>
      %210 = arith.addf %207, %209 : vector<16x1xf32>
      %cst_166 = arith.constant 0.000000e+00 : f32
      %211 = vector.broadcast %cst_166 : f32 to vector<16x1xf32>
      %212 = arith.cmpf oge, %210, %211 : vector<16x1xf32>
      %cst_167 = arith.constant 1.000000e+00 : f32
      %cst_168 = arith.constant 0.000000e+00 : f32
      %213 = vector.broadcast %cst_167 : f32 to vector<16x1xf32>
      %214 = vector.broadcast %cst_168 : f32 to vector<16x1xf32>
      %215 = arith.select %212, %213, %214 : vector<16x1xi1>, vector<16x1xf32>
      %216 = arith.mulf %215, %58 : vector<16x1xf32>
      %c0_169 = arith.constant 0 : index
      %c0_170 = arith.constant 0 : index
      %c0_171 = arith.constant 0 : index
      %217 = vector.load %arg22[%c0_169, %c0_170, %c0_171] : memref<1x16x1xf32, #tpu.memory_space<vmem>>, vector<1x16x1xf32>
      %218 = vector.shape_cast %217 : vector<1x16x1xf32> to vector<16x1xf32>
      %219 = vector.shape_cast %216 : vector<16x1xf32> to vector<1x16x1xf32>
      tpu.vector_store %arg22[%c0_169, %c0_170, %c0_171], %219 {strides = array<i32>} : memref<1x16x1xf32, #tpu.memory_space<vmem>>, vector<1x16x1xf32>,
      %c0_172 = arith.constant 0 : index
      %c0_173 = arith.constant 0 : index
      %220 = vector.load %arg24[%c0_172, %c0_173] : memref<16x1xf32, #tpu.memory_space<vmem>>, vector<16x1xf32>
      tpu.vector_store %arg24[%c0_172, %c0_173], %216 {strides = array<i32>} : memref<16x1xf32, #tpu.memory_space<vmem>>, vector<16x1xf32>,
      %221 = vector.broadcast %216 : vector<16x1xf32> to vector<16x256xf32>
      %222 = arith.mulf %57, %221 : vector<16x256xf32>
      %c0_174 = arith.constant 0 : index
      %c0_175 = arith.constant 0 : index
      %223 = vector.load %arg23[%c0_174, %c0_175] : memref<16x256xf32, #tpu.memory_space<vmem>>, vector<16x256xf32>
      tpu.vector_store %arg23[%c0_174, %c0_175], %222 {strides = array<i32>} : memref<16x256xf32, #tpu.memory_space<vmem>>, vector<16x256xf32>,
    } else {
    }
    %c0 = arith.constant 0 : index
    %c0_2 = arith.constant 0 : index
    %10 = vector.load %arg23[%c0, %c0_2] : memref<16x256xf32, #tpu.memory_space<vmem>>, vector<16x256xf32>
    %cst = arith.constant dense<0.000000e+00> : vector<16xf32>
    %11 = vector.multi_reduction <add>, %10, %cst [1] : vector<16x256xf32> to vector<16xf32>
    %12 = vector.shape_cast %11 : vector<16xf32> to vector<16x1xf32>
    %cst_3 = arith.constant 2.560000e+02 : f32
    %13 = vector.broadcast %cst_3 : f32 to vector<16x1xf32>
    %14 = arith.divf %12, %13 : vector<16x1xf32>
    %15 = vector.broadcast %14 : vector<16x1xf32> to vector<16x256xf32>
    %16 = arith.subf %10, %15 : vector<16x256xf32>
    %17 = arith.mulf %16, %16 : vector<16x256xf32>
    %cst_4 = arith.constant dense<0.000000e+00> : vector<16xf32>
    %18 = vector.multi_reduction <add>, %17, %cst_4 [1] : vector<16x256xf32> to vector<16xf32>
    %19 = vector.shape_cast %18 : vector<16xf32> to vector<16x1xf32>
    %cst_5 = arith.constant 2.560000e+02 : f32
    %20 = vector.broadcast %cst_5 : f32 to vector<16x1xf32>
    %21 = arith.divf %19, %20 : vector<16x1xf32>
    %c0_6 = arith.constant 0 : index
    %c0_7 = arith.constant 0 : index
    %c0_8 = arith.constant 0 : index
    %22 = vector.load %arg3[%c0_6, %c0_7, %c0_8] : memref<1x1x256xf32, #tpu.memory_space<vmem>>, vector<1x1x256xf32>
    %23 = vector.shape_cast %22 : vector<1x1x256xf32> to vector<1x256xf32>
    %cst_9 = arith.constant 9.99999974E-6 : f32
    %24 = vector.broadcast %cst_9 : f32 to vector<16x1xf32>
    %25 = arith.addf %21, %24 : vector<16x1xf32>
    %26 = math.rsqrt %25 : vector<16x1xf32>
    %27 = vector.broadcast %23 : vector<1x256xf32> to vector<16x256xf32>
    %28 = vector.broadcast %26 : vector<16x1xf32> to vector<16x256xf32>
    %29 = arith.mulf %27, %28 : vector<16x256xf32>
    %30 = arith.mulf %16, %29 : vector<16x256xf32>
    %c0_10 = arith.constant 0 : index
    %c0_11 = arith.constant 0 : index
    %c0_12 = arith.constant 0 : index
    %31 = vector.load %arg4[%c0_10, %c0_11, %c0_12] : memref<1x1x256xf32, #tpu.memory_space<vmem>>, vector<1x1x256xf32>
    %32 = vector.shape_cast %31 : vector<1x1x256xf32> to vector<1x256xf32>
    %33 = vector.broadcast %32 : vector<1x256xf32> to vector<16x256xf32>
    %34 = arith.addf %30, %33 : vector<16x256xf32>
    %35 = arith.truncf %34 : vector<16x256xf32> to vector<16x256xbf16>
    %c0_13 = arith.constant 0 : index
    %c0_14 = arith.constant 0 : index
    %c0_15 = arith.constant 0 : index
    %36 = vector.load %arg5[%c0_13, %c0_14, %c0_15] : memref<1x256x128xbf16, #tpu.memory_space<vmem>>, vector<1x256x128xbf16>
    %37 = vector.shape_cast %36 : vector<1x256x128xbf16> to vector<256x128xbf16>
    %cst_16 = arith.constant dense<0.000000e+00> : vector<16x128xf32>
    %38 = tpu.matmul %35, %37, %cst_16 {dimension_numbers = #tpu.dot_dimension_numbers<[1], [0], [0], [1], [0, 0, 1, 1], [], []>} : vector<16x256xbf16>, vector<256x128xbf16>, vector<16x128xf32> -> vector<16x128xf32>
    %c0_17 = arith.constant 0 : index
    %c0_18 = arith.constant 0 : index
    %c0_19 = arith.constant 0 : index
    %39 = vector.load %arg6[%c0_17, %c0_18, %c0_19] : memref<1x1x128xf32, #tpu.memory_space<vmem>>, vector<1x1x128xf32>
    %40 = vector.shape_cast %39 : vector<1x1x128xf32> to vector<1x128xf32>
    %41 = vector.broadcast %40 : vector<1x128xf32> to vector<16x128xf32>
    %42 = arith.addf %38, %41 : vector<16x128xf32>
    %cst_20 = arith.constant 0.000000e+00 : f32
    %43 = vector.broadcast %cst_20 : f32 to vector<16x128xf32>
    %44 = arith.maximumf %42, %43 : vector<16x128xf32>
    %45 = arith.truncf %44 : vector<16x128xf32> to vector<16x128xbf16>
    %c0_21 = arith.constant 0 : index
    %c0_22 = arith.constant 0 : index
    %c0_23 = arith.constant 0 : index
    %46 = vector.load %arg7[%c0_21, %c0_22, %c0_23] : memref<1x128x256xbf16, #tpu.memory_space<vmem>>, vector<1x128x256xbf16>
    %47 = vector.shape_cast %46 : vector<1x128x256xbf16> to vector<128x256xbf16>
    %cst_24 = arith.constant dense<0.000000e+00> : vector<16x256xf32>
    %48 = tpu.matmul %45, %47, %cst_24 {dimension_numbers = #tpu.dot_dimension_numbers<[1], [0], [0], [1], [0, 0, 1, 1], [], []>} : vector<16x128xbf16>, vector<128x256xbf16>, vector<16x256xf32> -> vector<16x256xf32>
    %c0_25 = arith.constant 0 : index
    %c0_26 = arith.constant 0 : index
    %c0_27 = arith.constant 0 : index
    %49 = vector.load %arg8[%c0_25, %c0_26, %c0_27] : memref<1x1x256xf32, #tpu.memory_space<vmem>>, vector<1x1x256xf32>
    %50 = vector.shape_cast %49 : vector<1x1x256xf32> to vector<1x256xf32>
    %51 = vector.broadcast %50 : vector<1x256xf32> to vector<16x256xf32>
    %52 = arith.addf %48, %51 : vector<16x256xf32>
    %cst_28 = arith.constant 5.000000e-01 : f32
    %53 = vector.broadcast %cst_28 : f32 to vector<16x256xf32>
    %54 = arith.mulf %52, %53 : vector<16x256xf32>
    %55 = arith.addf %10, %54 : vector<16x256xf32>
    %c0_29 = arith.constant 0 : index
    %c0_30 = arith.constant 0 : index
    %56 = vector.load %arg23[%c0_29, %c0_30] : memref<16x256xf32, #tpu.memory_space<vmem>>, vector<16x256xf32>
    tpu.vector_store %arg23[%c0_29, %c0_30], %55 {strides = array<i32>} : memref<16x256xf32, #tpu.memory_space<vmem>>, vector<16x256xf32>,
    return
  }
  func.func @transform_0(%arg0: i32) -> (i32, i32) {
    %c0_i32 = arith.constant 0 : i32
    %c0_i32_0 = arith.constant 0 : i32
    %c0_i32_1 = arith.constant 0 : i32
    return %c0_i32, %c0_i32_0 : i32, i32
  }
  func.func @transform_1(%arg0: i32) -> (i32, i32, i32) {
    %c3_i32 = arith.constant 3 : i32
    %0 = arith.cmpi sgt, %arg0, %c3_i32 : i32
    %1 = arith.extui %0 : i1 to i32
    %c0_i32 = arith.constant 0 : i32
    %2 = arith.addi %c0_i32, %1 : i32
    %c6_i32 = arith.constant 6 : i32
    %3 = arith.cmpi sgt, %arg0, %c6_i32 : i32
    %4 = arith.extui %3 : i1 to i32
    %5 = arith.addi %2, %4 : i32
    %c9_i32 = arith.constant 9 : i32
    %6 = arith.cmpi sgt, %arg0, %c9_i32 : i32
    %7 = arith.extui %6 : i1 to i32
    %8 = arith.addi %5, %7 : i32
    %c2_i32 = arith.constant 2 : i32
    %9 = arith.minsi %8, %c2_i32 : i32
    %c0_i32_0 = arith.constant 0 : i32
    %c0_i32_1 = arith.constant 0 : i32
    %c0_i32_2 = arith.constant 0 : i32
    return %9, %c0_i32_0, %c0_i32_1 : i32, i32, i32
  }
  func.func @transform_2(%arg0: i32) -> (i32, i32, i32) {
    %c0_i32 = arith.constant 0 : i32
    %c0_i32_0 = arith.constant 0 : i32
    %c0_i32_1 = arith.constant 0 : i32
    return %arg0, %c0_i32, %c0_i32_0 : i32, i32, i32
  }
  func.func @transform_3(%arg0: i32) -> (i32, i32, i32) {
    %c0_i32 = arith.constant 0 : i32
    %c0_i32_0 = arith.constant 0 : i32
    %c0_i32_1 = arith.constant 0 : i32
    return %arg0, %c0_i32, %c0_i32_0 : i32, i32, i32
  }
  func.func @transform_4(%arg0: i32) -> (i32, i32, i32) {
    %c0_i32 = arith.constant 0 : i32
    %c0_i32_0 = arith.constant 0 : i32
    %c0_i32_1 = arith.constant 0 : i32
    return %arg0, %c0_i32, %c0_i32_0 : i32, i32, i32
  }
  func.func @transform_5(%arg0: i32) -> (i32, i32, i32) {
    %c0_i32 = arith.constant 0 : i32
    %c0_i32_0 = arith.constant 0 : i32
    %c0_i32_1 = arith.constant 0 : i32
    return %arg0, %c0_i32, %c0_i32_0 : i32, i32, i32
  }
  func.func @transform_6(%arg0: i32) -> (i32, i32, i32) {
    %c0_i32 = arith.constant 0 : i32
    %c0_i32_0 = arith.constant 0 : i32
    %c0_i32_1 = arith.constant 0 : i32
    return %arg0, %c0_i32, %c0_i32_0 : i32, i32, i32
  }
  func.func @transform_7(%arg0: i32) -> (i32, i32, i32) {
    %c0_i32 = arith.constant 0 : i32
    %c0_i32_0 = arith.constant 0 : i32
    %c0_i32_1 = arith.constant 0 : i32
    return %arg0, %c0_i32, %c0_i32_0 : i32, i32, i32
  }
  func.func @transform_8(%arg0: i32) -> (i32, i32, i32) {
    %c3_i32 = arith.constant 3 : i32
    %0 = arith.cmpi sgt, %arg0, %c3_i32 : i32
    %1 = arith.extui %0 : i1 to i32
    %c0_i32 = arith.constant 0 : i32
    %2 = arith.addi %c0_i32, %1 : i32
    %c6_i32 = arith.constant 6 : i32
    %3 = arith.cmpi sgt, %arg0, %c6_i32 : i32
    %4 = arith.extui %3 : i1 to i32
    %5 = arith.addi %2, %4 : i32
    %c9_i32 = arith.constant 9 : i32
    %6 = arith.cmpi sgt, %arg0, %c9_i32 : i32
    %7 = arith.extui %6 : i1 to i32
    %8 = arith.addi %5, %7 : i32
    %c2_i32 = arith.constant 2 : i32
    %9 = arith.minsi %8, %c2_i32 : i32
    %c0_i32_0 = arith.constant 0 : i32
    %c0_i32_1 = arith.constant 0 : i32
    %c0_i32_2 = arith.constant 0 : i32
    return %9, %c0_i32_0, %c0_i32_1 : i32, i32, i32
  }
  func.func @transform_9(%arg0: i32) -> (i32, i32, i32) {
    %c3_i32 = arith.constant 3 : i32
    %0 = arith.cmpi sgt, %arg0, %c3_i32 : i32
    %1 = arith.extui %0 : i1 to i32
    %c0_i32 = arith.constant 0 : i32
    %2 = arith.addi %c0_i32, %1 : i32
    %c6_i32 = arith.constant 6 : i32
    %3 = arith.cmpi sgt, %arg0, %c6_i32 : i32
    %4 = arith.extui %3 : i1 to i32
    %5 = arith.addi %2, %4 : i32
    %c9_i32 = arith.constant 9 : i32
    %6 = arith.cmpi sgt, %arg0, %c9_i32 : i32
    %7 = arith.extui %6 : i1 to i32
    %8 = arith.addi %5, %7 : i32
    %c2_i32 = arith.constant 2 : i32
    %9 = arith.minsi %8, %c2_i32 : i32
    %c0_i32_0 = arith.constant 0 : i32
    %c0_i32_1 = arith.constant 0 : i32
    %c0_i32_2 = arith.constant 0 : i32
    return %9, %c0_i32_0, %c0_i32_1 : i32, i32, i32
  }
  func.func @transform_10(%arg0: i32) -> (i32, i32, i32, i32) {
    %c3_i32 = arith.constant 3 : i32
    %0 = arith.cmpi sgt, %arg0, %c3_i32 : i32
    %1 = arith.extui %0 : i1 to i32
    %c0_i32 = arith.constant 0 : i32
    %2 = arith.addi %c0_i32, %1 : i32
    %c6_i32 = arith.constant 6 : i32
    %3 = arith.cmpi sgt, %arg0, %c6_i32 : i32
    %4 = arith.extui %3 : i1 to i32
    %5 = arith.addi %2, %4 : i32
    %c9_i32 = arith.constant 9 : i32
    %6 = arith.cmpi sgt, %arg0, %c9_i32 : i32
    %7 = arith.extui %6 : i1 to i32
    %8 = arith.addi %5, %7 : i32
    %c2_i32 = arith.constant 2 : i32
    %9 = arith.minsi %8, %c2_i32 : i32
    %c0_i32_0 = arith.constant 0 : i32
    %c0_i32_1 = arith.constant 0 : i32
    %c0_i32_2 = arith.constant 0 : i32
    %c0_i32_3 = arith.constant 0 : i32
    return %9, %c0_i32_0, %c0_i32_1, %c0_i32_2 : i32, i32, i32, i32
  }
  func.func @transform_11(%arg0: i32) -> (i32, i32, i32, i32) {
    %c3_i32 = arith.constant 3 : i32
    %0 = arith.cmpi sgt, %arg0, %c3_i32 : i32
    %1 = arith.extui %0 : i1 to i32
    %c0_i32 = arith.constant 0 : i32
    %2 = arith.addi %c0_i32, %1 : i32
    %c6_i32 = arith.constant 6 : i32
    %3 = arith.cmpi sgt, %arg0, %c6_i32 : i32
    %4 = arith.extui %3 : i1 to i32
    %5 = arith.addi %2, %4 : i32
    %c9_i32 = arith.constant 9 : i32
    %6 = arith.cmpi sgt, %arg0, %c9_i32 : i32
    %7 = arith.extui %6 : i1 to i32
    %8 = arith.addi %5, %7 : i32
    %c2_i32 = arith.constant 2 : i32
    %9 = arith.minsi %8, %c2_i32 : i32
    %c0_i32_0 = arith.constant 0 : i32
    %c0_i32_1 = arith.constant 0 : i32
    %c0_i32_2 = arith.constant 0 : i32
    %c0_i32_3 = arith.constant 0 : i32
    return %9, %c0_i32_0, %c0_i32_1, %c0_i32_2 : i32, i32, i32, i32
  }
  func.func @transform_12(%arg0: i32) -> (i32, i32, i32, i32) {
    %c3_i32 = arith.constant 3 : i32
    %0 = arith.cmpi sgt, %arg0, %c3_i32 : i32
    %1 = arith.extui %0 : i1 to i32
    %c0_i32 = arith.constant 0 : i32
    %2 = arith.addi %c0_i32, %1 : i32
    %c6_i32 = arith.constant 6 : i32
    %3 = arith.cmpi sgt, %arg0, %c6_i32 : i32
    %4 = arith.extui %3 : i1 to i32
    %5 = arith.addi %2, %4 : i32
    %c9_i32 = arith.constant 9 : i32
    %6 = arith.cmpi sgt, %arg0, %c9_i32 : i32
    %7 = arith.extui %6 : i1 to i32
    %8 = arith.addi %5, %7 : i32
    %c2_i32 = arith.constant 2 : i32
    %9 = arith.minsi %8, %c2_i32 : i32
    %c0_i32_0 = arith.constant 0 : i32
    %c0_i32_1 = arith.constant 0 : i32
    %c0_i32_2 = arith.constant 0 : i32
    %c0_i32_3 = arith.constant 0 : i32
    return %9, %c0_i32_0, %c0_i32_1, %c0_i32_2 : i32, i32, i32, i32
  }
  func.func @transform_13(%arg0: i32) -> (i32, i32, i32, i32) {
    %c3_i32 = arith.constant 3 : i32
    %0 = arith.cmpi sgt, %arg0, %c3_i32 : i32
    %1 = arith.extui %0 : i1 to i32
    %c0_i32 = arith.constant 0 : i32
    %2 = arith.addi %c0_i32, %1 : i32
    %c6_i32 = arith.constant 6 : i32
    %3 = arith.cmpi sgt, %arg0, %c6_i32 : i32
    %4 = arith.extui %3 : i1 to i32
    %5 = arith.addi %2, %4 : i32
    %c9_i32 = arith.constant 9 : i32
    %6 = arith.cmpi sgt, %arg0, %c9_i32 : i32
    %7 = arith.extui %6 : i1 to i32
    %8 = arith.addi %5, %7 : i32
    %c2_i32 = arith.constant 2 : i32
    %9 = arith.minsi %8, %c2_i32 : i32
    %c0_i32_0 = arith.constant 0 : i32
    %c0_i32_1 = arith.constant 0 : i32
    %c0_i32_2 = arith.constant 0 : i32
    %c0_i32_3 = arith.constant 0 : i32
    return %9, %c0_i32_0, %c0_i32_1, %c0_i32_2 : i32, i32, i32, i32
  }
  func.func @transform_14(%arg0: i32) -> (i32, i32, i32) {
    %c3_i32 = arith.constant 3 : i32
    %0 = arith.cmpi sgt, %arg0, %c3_i32 : i32
    %1 = arith.extui %0 : i1 to i32
    %c0_i32 = arith.constant 0 : i32
    %2 = arith.addi %c0_i32, %1 : i32
    %c6_i32 = arith.constant 6 : i32
    %3 = arith.cmpi sgt, %arg0, %c6_i32 : i32
    %4 = arith.extui %3 : i1 to i32
    %5 = arith.addi %2, %4 : i32
    %c9_i32 = arith.constant 9 : i32
    %6 = arith.cmpi sgt, %arg0, %c9_i32 : i32
    %7 = arith.extui %6 : i1 to i32
    %8 = arith.addi %5, %7 : i32
    %c2_i32 = arith.constant 2 : i32
    %9 = arith.minsi %8, %c2_i32 : i32
    %c0_i32_0 = arith.constant 0 : i32
    %c0_i32_1 = arith.constant 0 : i32
    %c0_i32_2 = arith.constant 0 : i32
    return %9, %c0_i32_0, %c0_i32_1 : i32, i32, i32
  }
  func.func @transform_15(%arg0: i32) -> (i32, i32, i32) {
    %c3_i32 = arith.constant 3 : i32
    %0 = arith.cmpi sgt, %arg0, %c3_i32 : i32
    %1 = arith.extui %0 : i1 to i32
    %c0_i32 = arith.constant 0 : i32
    %2 = arith.addi %c0_i32, %1 : i32
    %c6_i32 = arith.constant 6 : i32
    %3 = arith.cmpi sgt, %arg0, %c6_i32 : i32
    %4 = arith.extui %3 : i1 to i32
    %5 = arith.addi %2, %4 : i32
    %c9_i32 = arith.constant 9 : i32
    %6 = arith.cmpi sgt, %arg0, %c9_i32 : i32
    %7 = arith.extui %6 : i1 to i32
    %8 = arith.addi %5, %7 : i32
    %c2_i32 = arith.constant 2 : i32
    %9 = arith.minsi %8, %c2_i32 : i32
    %c0_i32_0 = arith.constant 0 : i32
    %c0_i32_1 = arith.constant 0 : i32
    %c0_i32_2 = arith.constant 0 : i32
    return %9, %c0_i32_0, %c0_i32_1 : i32, i32, i32
  }
  func.func @transform_16(%arg0: i32) -> (i32, i32, i32) {
    %c3_i32 = arith.constant 3 : i32
    %0 = arith.cmpi sgt, %arg0, %c3_i32 : i32
    %1 = arith.extui %0 : i1 to i32
    %c0_i32 = arith.constant 0 : i32
    %2 = arith.addi %c0_i32, %1 : i32
    %c6_i32 = arith.constant 6 : i32
    %3 = arith.cmpi sgt, %arg0, %c6_i32 : i32
    %4 = arith.extui %3 : i1 to i32
    %5 = arith.addi %2, %4 : i32
    %c9_i32 = arith.constant 9 : i32
    %6 = arith.cmpi sgt, %arg0, %c9_i32 : i32
    %7 = arith.extui %6 : i1 to i32
    %8 = arith.addi %5, %7 : i32
    %c2_i32 = arith.constant 2 : i32
    %9 = arith.minsi %8, %c2_i32 : i32
    %c0_i32_0 = arith.constant 0 : i32
    %c0_i32_1 = arith.constant 0 : i32
    %c0_i32_2 = arith.constant 0 : i32
    return %9, %c0_i32_0, %c0_i32_1 : i32, i32, i32
  }
  func.func @transform_17(%arg0: i32) -> (i32, i32, i32) {
    %c3_i32 = arith.constant 3 : i32
    %0 = arith.cmpi sgt, %arg0, %c3_i32 : i32
    %1 = arith.extui %0 : i1 to i32
    %c0_i32 = arith.constant 0 : i32
    %2 = arith.addi %c0_i32, %1 : i32
    %c6_i32 = arith.constant 6 : i32
    %3 = arith.cmpi sgt, %arg0, %c6_i32 : i32
    %4 = arith.extui %3 : i1 to i32
    %5 = arith.addi %2, %4 : i32
    %c9_i32 = arith.constant 9 : i32
    %6 = arith.cmpi sgt, %arg0, %c9_i32 : i32
    %7 = arith.extui %6 : i1 to i32
    %8 = arith.addi %5, %7 : i32
    %c2_i32 = arith.constant 2 : i32
    %9 = arith.minsi %8, %c2_i32 : i32
    %c0_i32_0 = arith.constant 0 : i32
    %c0_i32_1 = arith.constant 0 : i32
    %c0_i32_2 = arith.constant 0 : i32
    return %9, %c0_i32_0, %c0_i32_1 : i32, i32, i32
  }
  func.func @transform_18(%arg0: i32) -> (i32, i32, i32) {
    %c3_i32 = arith.constant 3 : i32
    %0 = arith.cmpi sgt, %arg0, %c3_i32 : i32
    %1 = arith.extui %0 : i1 to i32
    %c0_i32 = arith.constant 0 : i32
    %2 = arith.addi %c0_i32, %1 : i32
    %c6_i32 = arith.constant 6 : i32
    %3 = arith.cmpi sgt, %arg0, %c6_i32 : i32
    %4 = arith.extui %3 : i1 to i32
    %5 = arith.addi %2, %4 : i32
    %c9_i32 = arith.constant 9 : i32
    %6 = arith.cmpi sgt, %arg0, %c9_i32 : i32
    %7 = arith.extui %6 : i1 to i32
    %8 = arith.addi %5, %7 : i32
    %c2_i32 = arith.constant 2 : i32
    %9 = arith.minsi %8, %c2_i32 : i32
    %c0_i32_0 = arith.constant 0 : i32
    %c0_i32_1 = arith.constant 0 : i32
    %c0_i32_2 = arith.constant 0 : i32
    return %9, %c0_i32_0, %c0_i32_1 : i32, i32, i32
  }
  func.func @transform_19(%arg0: i32) -> (i32, i32, i32) {
    %c3_i32 = arith.constant 3 : i32
    %0 = arith.cmpi sgt, %arg0, %c3_i32 : i32
    %1 = arith.extui %0 : i1 to i32
    %c0_i32 = arith.constant 0 : i32
    %2 = arith.addi %c0_i32, %1 : i32
    %c6_i32 = arith.constant 6 : i32
    %3 = arith.cmpi sgt, %arg0, %c6_i32 : i32
    %4 = arith.extui %3 : i1 to i32
    %5 = arith.addi %2, %4 : i32
    %c9_i32 = arith.constant 9 : i32
    %6 = arith.cmpi sgt, %arg0, %c9_i32 : i32
    %7 = arith.extui %6 : i1 to i32
    %8 = arith.addi %5, %7 : i32
    %c2_i32 = arith.constant 2 : i32
    %9 = arith.minsi %8, %c2_i32 : i32
    %c0_i32_0 = arith.constant 0 : i32
    %c0_i32_1 = arith.constant 0 : i32
    %c0_i32_2 = arith.constant 0 : i32
    return %9, %c0_i32_0, %c0_i32_1 : i32, i32, i32
  }
  func.func @transform_20(%arg0: i32) -> (i32, i32, i32) {
    %c3_i32 = arith.constant 3 : i32
    %0 = arith.cmpi sgt, %arg0, %c3_i32 : i32
    %1 = arith.extui %0 : i1 to i32
    %c0_i32 = arith.constant 0 : i32
    %2 = arith.addi %c0_i32, %1 : i32
    %c6_i32 = arith.constant 6 : i32
    %3 = arith.cmpi sgt, %arg0, %c6_i32 : i32
    %4 = arith.extui %3 : i1 to i32
    %5 = arith.addi %2, %4 : i32
    %c9_i32 = arith.constant 9 : i32
    %6 = arith.cmpi sgt, %arg0, %c9_i32 : i32
    %7 = arith.extui %6 : i1 to i32
    %8 = arith.addi %5, %7 : i32
    %c2_i32 = arith.constant 2 : i32
    %9 = arith.minsi %8, %c2_i32 : i32
    %c0_i32_0 = arith.constant 0 : i32
    %c0_i32_1 = arith.constant 0 : i32
    %c0_i32_2 = arith.constant 0 : i32
    return %9, %c0_i32_0, %c0_i32_1 : i32, i32, i32
  }
  func.func @transform_21(%arg0: i32) -> (i32, i32, i32) {
    %c3_i32 = arith.constant 3 : i32
    %0 = arith.cmpi sgt, %arg0, %c3_i32 : i32
    %1 = arith.extui %0 : i1 to i32
    %c0_i32 = arith.constant 0 : i32
    %2 = arith.addi %c0_i32, %1 : i32
    %c6_i32 = arith.constant 6 : i32
    %3 = arith.cmpi sgt, %arg0, %c6_i32 : i32
    %4 = arith.extui %3 : i1 to i32
    %5 = arith.addi %2, %4 : i32
    %c9_i32 = arith.constant 9 : i32
    %6 = arith.cmpi sgt, %arg0, %c9_i32 : i32
    %7 = arith.extui %6 : i1 to i32
    %8 = arith.addi %5, %7 : i32
    %c2_i32 = arith.constant 2 : i32
    %9 = arith.minsi %8, %c2_i32 : i32
    %c0_i32_0 = arith.constant 0 : i32
    %c0_i32_1 = arith.constant 0 : i32
    %c0_i32_2 = arith.constant 0 : i32
    return %9, %c0_i32_0, %c0_i32_1 : i32, i32, i32
  }
}

</mosaic_0001>

<bundles_post_ra>
// kernel: squeeze.9
= control target key start
LH: loop header
LB: loop body
LE: loop exit
PB: predicated region body
PF: predicated region fallthrough
CT: control target
= control target key end

     0   :  { %s85_s0 = inlined_call_operand.vmem [shape: f32[16], index: 0, kind: input, shape index: {}]   ;;  %s86_s1 = inlined_call_operand.hbm [shape: f32[2,8], index: 1, kind: output, shape index: {}]  }
   0x1   :  { %v5_v0 = vld [vmem:[%s85_s0] sm:$0x1] }
   0x2   :  { %2 = vsyncpa [#allocation1], 0  ;;  %6 = vst [vmem:[#allocation3] sm:$0x1] %v5_v0  ;;  %vm8_vm0 = vcmask 64512   ;;  %s58_s0 = smov 120  }
   0x3   :  { %s59_s8 = smov [#allocation0]  }
   0x4   :  { %s26_s9 = sshll.u32 %s59_s8, 4  ;;  %s27_s9 = int_to_ptr.vmem [resolvable:$true] %s26_s9 }
   0x5   :  { %s34_s10 = scalar_lea.vmem %s27_s9, 32  ;;  %p39_p1 = scmp.lt.s32.totalorder %s27_s9, %s27_s9 }
   0x6   :  { %p35_p0 = scmp.ne.s32.totalorder %s27_s9, %s34_s10  ;;  %p40_p2 = scmp.lt.s32.totalorder %s34_s10, %s34_s10 }
   0x8   :  { %p41_p3 = por %p40_p2, %p39_p1 }
   0x9   :  { %v10_v1 = vld [vmem:[#allocation3] sm:$0x1]  }
   0xa   :  { %v7_v2 = vld [vmem:[#allocation3] sm:$0x1]   ;;  %11 = vrot.lane.b32.xlu0 %v10_v1, %s58_s0  ;;  %p42_p4 = pnand %p41_p3, %p35_p0 }
   0xb   :  { %9 = vst.msk [vmem:[#allocation2] sm:$0x1] %vm8_vm0, %v7_v2  }
  0x7c   :  { %v12_v3 = vpop.permute.xlu0 %11  }
  0x7d   :  { %15 = vst.msk [vmem:[#allocation2 + $0x1] sm:$0x1] %vm8_vm0, %v12_v3  }
  0x84   :  { %v19_v4 = vld [vmem:[#allocation2] sm:$0x3] }
  0x85   :  { %21 = vst [vmem:[#allocation0] sm:$0x3] %v19_v4 }
  0x86   :  { %45 = shalt.err (!%p42_p4)
}
  0x87   :  { %s46_s13 = scalar_lea.hbm %s86_s1, 32 }
  0x88   :  { %p47_p5 = scmp.ne.s32.totalorder %s86_s1, %s46_s13  ;;  %p50_p6 = scmp.lt.u32.totalorder %s46_s13, %s86_s1 }
  0x8a   :  { %p52_p7 = pnand %p50_p6, %p47_p5 }
  0x8c   :  { %55 = shalt.err (!%p52_p7)
}
  0x8d   :  { %29 = dma.vmem_to_hbm [thread:$0]  %s27_s9, 32, %s86_s1, [#allocation1]  }
  0x8e   :  { %56 = dma.done.wait [#allocation1], 32  }
  0x8f   :  { %57 = vsyncadd [#allocation1], 4294967264 }
  0x90   :  { %31 = vsyncpa [#allocation1], 1 }

// kernel: squeeze.11
= control target key start
LH: loop header
LB: loop body
LE: loop exit
PB: predicated region body
PF: predicated region fallthrough
CT: control target
= control target key end

     0   :  { %s85_s0 = inlined_call_operand.vmem [shape: f32[16], index: 0, kind: input, shape index: {}]   ;;  %s86_s1 = inlined_call_operand.hbm [shape: f32[2,8,1,1], index: 1, kind: output, shape index: {}]  }
   0x1   :  { %v5_v0 = vld [vmem:[%s85_s0] sm:$0x1] }
   0x2   :  { %2 = vsyncpa [#allocation1], 0  ;;  %6 = vst [vmem:[#allocation3] sm:$0x1] %v5_v0  ;;  %vm8_vm0 = vcmask 64512   ;;  %s58_s0 = smov 120  }
   0x3   :  { %s59_s8 = smov [#allocation0]  }
   0x4   :  { %s26_s9 = sshll.u32 %s59_s8, 4  ;;  %s27_s9 = int_to_ptr.vmem [resolvable:$true] %s26_s9 }
   0x5   :  { %s34_s10 = scalar_lea.vmem %s27_s9, 32  ;;  %p39_p1 = scmp.lt.s32.totalorder %s27_s9, %s27_s9 }
   0x6   :  { %p35_p0 = scmp.ne.s32.totalorder %s27_s9, %s34_s10  ;;  %p40_p2 = scmp.lt.s32.totalorder %s34_s10, %s34_s10 }
   0x8   :  { %p41_p3 = por %p40_p2, %p39_p1 }
   0x9   :  { %v10_v1 = vld [vmem:[#allocation3] sm:$0x1]  }
   0xa   :  { %v7_v2 = vld [vmem:[#allocation3] sm:$0x1]   ;;  %11 = vrot.lane.b32.xlu0 %v10_v1, %s58_s0  ;;  %p42_p4 = pnand %p41_p3, %p35_p0 }
   0xb   :  { %9 = vst.msk [vmem:[#allocation2] sm:$0x1] %vm8_vm0, %v7_v2  }
  0x7c   :  { %v12_v3 = vpop.permute.xlu0 %11  }
  0x7d   :  { %15 = vst.msk [vmem:[#allocation2 + $0x1] sm:$0x1] %vm8_vm0, %v12_v3  }
  0x84   :  { %v19_v4 = vld [vmem:[#allocation2] sm:$0x3] }
  0x85   :  { %21 = vst [vmem:[#allocation0] sm:$0x3] %v19_v4 }
  0x86   :  { %45 = shalt.err (!%p42_p4)
}
  0x87   :  { %s46_s13 = scalar_lea.hbm %s86_s1, 32 }
  0x88   :  { %p47_p5 = scmp.ne.s32.totalorder %s86_s1, %s46_s13  ;;  %p50_p6 = scmp.lt.u32.totalorder %s46_s13, %s86_s1 }
  0x8a   :  { %p52_p7 = pnand %p50_p6, %p47_p5 }
  0x8c   :  { %55 = shalt.err (!%p52_p7)
}
  0x8d   :  { %29 = dma.vmem_to_hbm [thread:$0]  %s27_s9, 32, %s86_s1, [#allocation1]  }
  0x8e   :  { %56 = dma.done.wait [#allocation1], 32  }
  0x8f   :  { %57 = vsyncadd [#allocation1], 4294967264 }
  0x90   :  { %31 = vsyncpa [#allocation1], 1 }

// kernel: _lambda_.1
= control target key start
LH: loop header
LB: loop body
LE: loop exit
PB: predicated region body
PF: predicated region fallthrough
CT: control target
= control target key end

     0   :  { %s8935_s0 = inlined_call_operand.vmem [shape: f32[16,256], index: 0, kind: input, shape index: {}]   ;;  %s8936_s1 = inlined_call_operand.vmem [shape: f32[3,16,1], index: 1, kind: input, shape index: {}]   ;;  %s8937_s2 = inlined_call_operand.vmem [shape: f32[10,1,256], index: 2, kind: input, shape index: {}]   ;;  %s8938_s3 = inlined_call_operand.vmem [shape: f32[10,1,256], index: 3, kind: input, shape index: {}]   ;;  %s8939_s4 = inlined_call_operand.vmem [shape: bf16[10,256,128], index: 4, kind: input, shape index: {}]   ;;  %s8940_s5 = inlined_call_operand.vmem [shape: f32[10,1,128], index: 5, kind: input, shape index: {}]   ;;  %s8941_s6 = inlined_call_operand.vmem [shape: bf16[10,128,256], index: 6, kind: input, shape index: {}]   ;;  %s8942_s7 = inlined_call_operand.vmem [shape: f32[10,1,256], index: 7, kind: input, shape index: {}]   ;;  %s8943_s8 = inlined_call_operand.vmem [shape: bf16[3,256,512], index: 8, kind: input, shape index: {}]   ;;  %s8944_s9 = inlined_call_operand.vmem [shape: f32[3,1,512], index: 9, kind: input, shape index: {}]   ;;  %s8945_s10 = inlined_call_operand.vmem [shape: bf16[3,5,256,256], index: 10, kind: input, shape index: {}]   ;;  %s8946_s11 = inlined_call_operand.vmem [shape: f32[3,5,1,256], index: 11, kind: input, shape index: {}]   ;;  %s8947_s12 = inlined_call_operand.vmem [shape: bf16[3,5,256,256], index: 12, kind: input, shape index: {}]   ;;  %s8948_s13 = inlined_call_operand.vmem [shape: f32[3,5,1,256], index: 13, kind: input, shape index: {}]   ;;  %s8949_s14 = inlined_call_operand.vmem [shape: bf16[3,256,128], index: 14, kind: input, shape index: {}]   ;;  %s8950_s15 = inlined_call_operand.vmem [shape: bf16[3,256,128], index: 15, kind: input, shape index: {}]   ;;  %s8951_s16 = inlined_call_operand.vmem [shape: f32[3,1,128], index: 16, kind: input, shape index: {}]   ;;  %s8952_s17 = inlined_call_operand.vmem [shape: bf16[3,128,64], index: 17, kind: input, shape index: {}]   ;;  %s8953_s18 = inlined_call_operand.vmem [shape: f32[3,1,64], index: 18, kind: input, shape index: {}]   ;;  %s8954_s19 = inlined_call_operand.vmem [shape: f32[3,1,64], index: 19, kind: input, shape index: {}]   ;;  %s8955_s20 = inlined_call_operand.vmem [shape: f32[3,1,1], index: 20, kind: input, shape index: {}]   ;;  %s8956_s21 = inlined_call_operand.vmem [shape: f32[3,16,1], index: 21, kind: output, shape index: {}]  }
   0x1   :  { %8967 = sst [smem:[#allocation11_spill]] %s8935_s0 }
   0x2   :  { %8968 = sst [smem:[#allocation12_spill]] %s8936_s1 }
   0x3   :  { %8969 = sst [smem:[#allocation13_spill]] %s8937_s2  ;;  %s8142_s2 = smov 0  }
   0x4   :  { %8970 = sst [smem:[#allocation14_spill]] %s8938_s3 }
   0x5   :  { %8971 = sst [smem:[#allocation15_spill]] %s8939_s4 }
   0x6   :  { %8972 = sst [smem:[#allocation16_spill]] %s8940_s5 }
   0x7   :  { %8973 = sst [smem:[#allocation17_spill]] %s8941_s6 }
   0x8   :  { %8974 = sst [smem:[#allocation18_spill]] %s8942_s7 }
   0x9   :  { %8975 = sst [smem:[#allocation19_spill]] %s8943_s8 }
   0xa   :  { %8976 = sst [smem:[#allocation20_spill]] %s8944_s9 }
   0xb   :  { %8977 = sst [smem:[#allocation21_spill]] %s8945_s10 }
   0xc   :  { %8978 = sst [smem:[#allocation22_spill]] %s8946_s11 }
   0xd   :  { %8979 = sst [smem:[#allocation23_spill]] %s8947_s12 }
   0xe   :  { %8980 = sst [smem:[#allocation24_spill]] %s8948_s13 }
   0xf   :  { %8981 = sst [smem:[#allocation25_spill]] %s8949_s14 }
  0x10   :  { %8982 = sst [smem:[#allocation26_spill]] %s8950_s15 }
  0x11   :  { %8983 = sst [smem:[#allocation27_spill]] %s8951_s16 }
  0x12   :  { %8984 = sst [smem:[#allocation28_spill]] %s8952_s17 }
  0x13   :  { %8985 = sst [smem:[#allocation29_spill]] %s8953_s18 }
  0x14   :  { %8986 = sst [smem:[#allocation30_spill]] %s8954_s19 }
  0x15   :  { %8987 = sst [smem:[#allocation31_spill]] %s8955_s20 }
  0x16   :  { %8988 = sst [smem:[#allocation32_spill]] %s8956_s21 }
  0x17 LB: > { %8989 = sst [smem:[#allocation4_spill]] %s8024_s2  ;;  %s8148_s25 = sadd.s32 4294967295, %s8024_s2   ;;  %s8024_s2 = sphi %s8142_s2, %s31_s2  }
  0x18   : > { %8990 = sst [smem:[#allocation5_spill]] %s8148_s25  ;;  %p6433_p0 = scmp.ge.s32.totalorder %s8024_s2, 1 }
  0x19   : > { %p1341_p1 = scmp.lt.s32.totalorder %s8024_s2, 11 }
  0x1b   : > { %p1342_p2 = pnand %p6433_p0, %p1341_p1 }
  0x1d   : > { %1345 = sbr.rel (%p1342_p2) target bundleno = 3739 (0xe9b), region = 104 }
  0x24   : > { %p1630_p3 = scmp.gt.s32.totalorder %s8148_s25, 3  ;;  %p1632_p4 = scmp.gt.s32.totalorder %s8148_s25, 6 }
  0x25   : > { %p1635_p5 = scmp.gt.s32.totalorder %s8148_s25, 9  ;;  %p1655_p6 = scmp.lt.s32.totalorder %s8148_s25, 9 }
  0x26   : > { %s1631_s26 = scalar_select %p1630_p3, 1, 0 }
  0x27   : > { %s1633_s27 = scalar_select %p1632_p4, 1, 0 }
  0x28   : > { %s1636_s3 = scalar_select %p1635_p5, 1, 0 }
  0x29   : > { %s1634_s28 = sadd.s32 %s1633_s27, %s1631_s26  ;;  %s8995_s21 = sld [smem:[#allocation15_spill]] }
  0x2a   : > { %s1637_s29 = sadd.s32 %s1636_s3, %s1634_s28  ;;  %s8997_s5 = sld [smem:[#allocation12_spill]] }
  0x2b   : > { %p1638_p7 = scmp.lt.s32.totalorder %s1637_s29, 2  ;;  %s9000_s6 = sld [smem:[#allocation17_spill]] }
  0x2c   : > { %s8157_s0 = scalar_select %p1655_p6, %s8148_s25, 9 }
  0x2d   : > { %s9040_s29 = smov (!%p1638_p7, %s1637_s29), 2  ;;  %s9003_s8 = sld [smem:[#allocation19_spill]] }
  0x2e   : > { %8991 = sst [smem:[#allocation6_spill]] %s8157_s0  ;;  %s8160_s4 = sshll.u32 %s8157_s0, 1 }
  0x2f   : > { %8992 = sst [smem:[#allocation7_spill]] %s8160_s4  ;;  %s7230_s30 = sshll.u32 %s8157_s0, 7 }
  0x30   : > { %s9042_s29 = smov (!%p1638_p7, %s9040_s29), 2  ;;  %s8177_s20 = scalar_lea.vmem %s8995_s21, %s7230_s30 }
  0x31   : > { %s7229_s28 = sshll.u32 %s9042_s29, 4  ;;  %8996 = sst [smem:[#allocation8_spill]] %s8177_s20 }
  0x32   : > { %s8182_s22 = scalar_lea.vmem %s8997_s5, %s7229_s28  ;;  %s8191_s24 = scalar_lea.vmem %s9000_s6, %s7230_s30 }
  0x33   : > { %8998 = sst [smem:[#allocation9_spill]] %s8182_s22  ;;  %s7232_s2 = sshll.u32 %s9042_s29, 9 }
  0x34   : > { %9001 = sst [smem:[#allocation10_spill]] %s8191_s24  ;;  %s6454_s17 = sshll.u32 %s9042_s29, 2 }
  0x35   : > { %s8202_s16 = scalar_lea.vmem %s9003_s8, %s7232_s2  ;;  %s9004_s9 = sld [smem:[#allocation20_spill]] }
  0x36   : > { %s7332_s1 = smul.u32 1280, %s9042_s29  ;;  %s7233_s5 = sshll.u32 %s9042_s29, 7 }
  0x37   : > { %s7333_s23 = smul.u32 10, %s9042_s29  ;;  %s9005_s14 = sld [smem:[#allocation25_spill]] }
  0x38   : > { %s9006_s10 = sld [smem:[#allocation21_spill]]  ;;  %s9007_s12 = sld [smem:[#allocation23_spill]] }
  0x39   : > { %s9008_s11 = sld [smem:[#allocation22_spill]]  ;;  %s9009_s26 = sld [smem:[#allocation24_spill]] }
  0x3a   : > { %s9010_s13 = sld [smem:[#allocation26_spill]]  ;;  %s7235_s25 = sshll.u32 %s9042_s29, 6 }
  0x3b   : > { %s8207_s30 = scalar_lea.vmem %s9004_s9, %s6454_s17  ;;  %s9012_s17 = sld [smem:[#allocation29_spill]] }
  0x3c   : > { %s9013_s20 = sld [smem:[#allocation28_spill]]  ;;  %s9016_s2 = sld [smem:[#allocation32_spill]] }
  0x3d   : > { %s8215_s21 = scalar_lea.vmem %s9005_s14, %s7233_s5 }
  0x3e   : > { %s8220_s19 = scalar_lea.vmem %s9006_s10, %s7332_s1  ;;  %s8225_s15 = scalar_lea.vmem %s9007_s12, %s7332_s1 }
  0x3f   : > { %s8230_s6 = scalar_lea.vmem %s9008_s11, %s7333_s23  ;;  %s8235_s27 = scalar_lea.vmem %s9009_s26, %s7333_s23 }
  0x40   : > { %s8240_s3 = scalar_lea.vmem %s9010_s13, %s7233_s5  ;;  %s9014_s26 = sld [smem:[#allocation30_spill]] }
  0x41   : > { %s1937_s18 = scalar_lea.vmem %s9012_s17, %s9042_s29  ;;  %s9015_s13 = sld [smem:[#allocation31_spill]] }
  0x42   : > { %s8254_s8 = scalar_lea.vmem %s9013_s20, %s7235_s25  ;;  %s8267_s1 = scalar_lea.vmem %s9016_s2, %s7229_s28 }
  0x43   : > { %s9017_s12 = sld [smem:[#allocation5_spill]] }
  0x46   : > { %s1960_s7 = scalar_lea.vmem %s9014_s26, %s9042_s29 }
  0x47   : > { %s1983_s22 = scalar_lea.vmem %s9015_s13, %s9042_s29 }
  0x49   : > { %p6501_p8 = scmp.ne.s32.totalorder %s9017_s12, 0 }
  0x4a   : > { %s9018_s20 = sld [smem:[#allocation11_spill]] (!%p6501_p8)  ;;  %vm2032_vm0 = vcmask (!%p6501_p8), 7168   ;;  %v8026_v4 = vmov (!%p6501_p8), 1.0  }
  0x4b   : > { %2023 = sbr.rel (%p6501_p8) target bundleno = 83 (0x53), region = 108  ;;  %2033 = vst.msk [vmem:[#allocation3] sm:$0xff] (!%p6501_p8), %vm2032_vm0, %v8026_v4  ;;  %2034 = vst.msk [vmem:[#allocation3 + $0x8] sm:$0xff] (!%p6501_p8), %vm2032_vm0, %v8026_v4 }
  0x50   : > { %v2024_v0 = vld [vmem:[%s9018_s20] sm:$0xff] (!%p6501_p8)  ;;  %v2025_v1 = vld [vmem:[%s9018_s20 + $0x8] sm:$0xff] (!%p6501_p8)  ;;  %v2026_v2 = vld [vmem:[%s9018_s20 + $0x10] sm:$0xff] (!%p6501_p8) }
  0x51   : > { %2028 = vst [vmem:[#allocation2] sm:$0xff] (!%p6501_p8), %v2024_v0  ;;  %2029 = vst [vmem:[#allocation2 + $0x8] sm:$0xff] (!%p6501_p8), %v2025_v1  ;;  %v2027_v3 = vld [vmem:[%s9018_s20 + $0x18] sm:$0xff] (!%p6501_p8) }
  0x52   : > { %2030 = vst [vmem:[#allocation2 + $0x10] sm:$0xff] %v2026_v2  ;;  %2031 = vst [vmem:[#allocation2 + $0x18] sm:$0xff] %v2027_v3 }
  0x53 PF: > { %s9019_s26 = sld [smem:[#allocation5_spill]] }
  0x59   : > { %p2035_p9 = scmp.eq.s32.totalorder %s9019_s26, 3  ;;  %p2036_p10 = scmp.eq.s32.totalorder %s9019_s26, 6 }
  0x5a   : > { %p2038_p11 = scmp.eq.s32.totalorder %s9019_s26, 9 }
  0x5b   : > { %p2037_p12 = por %p2036_p10, %p2035_p9 }
  0x5d   : > { %p2039_p13 = por %p2038_p11, %p2037_p12 }
  0x5e   : > { %v7350_v5 = vld [vmem:[%s8202_s16 + $0x4] ss:$16 sps:$4 sm:$0xff] (%p2039_p13)   ;;  %v7352_v6 = vld [vmem:[%s8202_s16] ss:$16 sps:$4 sm:$0xff] (%p2039_p13)   ;;  %v2044_v18 = vld [vmem:[#allocation2 + $0x8] sm:$0xff] (%p2039_p13)  ;;  %vm5111_vm1 = vcmask (%p2039_p13), 7168  }
  0x5f   : > { %2042 = sbr.rel (!%p2039_p13) target bundleno = 2967 (0xb97), region = 112  ;;  %2457 = vmatprep.subr.bf16.mxu0 (%p2039_p13), %v7350_v5  ;;  %v7353_v7 = vld [vmem:[%s8202_s16 + $0x24] ss:$16 sps:$4 sm:$0xff] (%p2039_p13)   ;;  %v7355_v8 = vld [vmem:[%s8202_s16 + $0x20] ss:$16 sps:$4 sm:$0xff] (%p2039_p13)   ;;  %v2046_v19 = vld [vmem:[#allocation2 + $0x18] sm:$0xff] (%p2039_p13) }
  0x60   : > { %2458 = vmatpush1.bf16.msra.mxu0 (%p2039_p13), %v7352_v6  ;;  %v7356_v9 = vld [vmem:[%s8202_s16 + $0x44] ss:$16 sps:$4 sm:$0xff] (%p2039_p13)   ;;  %v7358_v10 = vld [vmem:[%s8202_s16 + $0x40] ss:$16 sps:$4 sm:$0xff] (%p2039_p13)   ;;  %v2050_v20 = vpack.c.bf16 (%p2039_p13), %v2046_v19, %v2044_v18  ;;  %v7457_v18 = vld [vmem:[%s8202_s16 + $0x68] ss:$16 sps:$4 sm:$0xff] (%p2039_p13)  }
  0x61   : > { %2459 = vmatprep.subr.bf16.mxu0 (%p2039_p13), %v7353_v7  ;;  %v7359_v11 = vld [vmem:[%s8202_s16 + $0x64] ss:$16 sps:$4 sm:$0xff] (%p2039_p13)   ;;  %v7361_v12 = vld [vmem:[%s8202_s16 + $0x60] ss:$16 sps:$4 sm:$0xff] (%p2039_p13)   ;;  %v7458_v19 = vld [vmem:[%s8202_s16 + $0x8c] ss:$16 sps:$4 sm:$0xff] (%p2039_p13)  }
  0x62   : > { %v7362_v13 = vld [vmem:[%s8202_s16 + $0x84] ss:$16 sps:$4 sm:$0xff] (%p2039_p13)   ;;  %v7364_v14 = vld [vmem:[%s8202_s16 + $0x80] ss:$16 sps:$4 sm:$0xff] (%p2039_p13)   ;;  %2489 = vmatprep.mubr.bf16.mxu0 (%p2039_p13), %v2050_v20  ;;  %2532 = vmatprep.mubr.bf16.mxu1 (%p2039_p13), %v2050_v20  ;;  %v7460_v20 = vld [vmem:[%s8202_s16 + $0x88] ss:$16 sps:$4 sm:$0xff] (%p2039_p13)  }
  0x63   : > { %v7365_v15 = vld [vmem:[%s8202_s16 + $0xa4] ss:$16 sps:$4 sm:$0xff] (%p2039_p13)   ;;  %v7367_v16 = vld [vmem:[%s8202_s16 + $0xa0] ss:$16 sps:$4 sm:$0xff] (%p2039_p13)   ;;  %vm5222_vm2 = vcmask (%p2039_p13), 1041409   ;;  %vm8029_vm3 = vmmov (%p2039_p13), 0  }
  0x64   : > { %2460 = vmatpush1.bf16.msra.mxu0 (%p2039_p13), %v7355_v8  ;;  %v7368_v17 = vld [vmem:[%s8202_s16 + $0xc4] ss:$16 sps:$4 sm:$0xff] (%p2039_p13)   ;;  %v7370_v21 = vld [vmem:[%s8202_s16 + $0xc0] ss:$16 sps:$4 sm:$0xff] (%p2039_p13)   ;;  %vm5670_vm4 = vcmask (%p2039_p13), 523264  }
  0x65   : > { %2461 = vmatprep.subr.bf16.mxu0 (%p2039_p13), %v7356_v9  ;;  %v7371_v22 = vld [vmem:[%s8202_s16 + $0xe4] ss:$16 sps:$4 sm:$0xff] (%p2039_p13)   ;;  %v7373_v23 = vld [vmem:[%s8202_s16 + $0xe0] ss:$16 sps:$4 sm:$0xff] (%p2039_p13)  }
  0x66   : > { %v7374_v24 = vld [vmem:[%s8202_s16 + $0x104] ss:$16 sps:$4 sm:$0xff]   ;;  %v7376_v25 = vld [vmem:[%s8202_s16 + $0x100] ss:$16 sps:$4 sm:$0xff]  }
  0x67   : > { %v7377_v26 = vld [vmem:[%s8202_s16 + $0x124] ss:$16 sps:$4 sm:$0xff]   ;;  %v7379_v27 = vld [vmem:[%s8202_s16 + $0x120] ss:$16 sps:$4 sm:$0xff]  }
  0x68   : > { %2462 = vmatpush1.bf16.msra.mxu0 %v7358_v10  ;;  %v7380_v28 = vld [vmem:[%s8202_s16 + $0x144] ss:$16 sps:$4 sm:$0xff]   ;;  %v7382_v29 = vld [vmem:[%s8202_s16 + $0x140] ss:$16 sps:$4 sm:$0xff]  }
  0x69   : > { %2463 = vmatprep.subr.bf16.mxu0 %v7359_v11  ;;  %v7383_v30 = vld [vmem:[%s8202_s16 + $0x164] ss:$16 sps:$4 sm:$0xff]   ;;  %v7385_v31 = vld [vmem:[%s8202_s16 + $0x160] ss:$16 sps:$4 sm:$0xff]   ;;  %v7446_v11 = vld [vmem:[%s8202_s16 + $0xc] ss:$16 sps:$4 sm:$0xff]  }
  0x6a   : > { %v7386_v32 = vld [vmem:[%s8202_s16 + $0x184] ss:$16 sps:$4 sm:$0xff]   ;;  %v7388_v33 = vld [vmem:[%s8202_s16 + $0x180] ss:$16 sps:$4 sm:$0xff]   ;;  %2500 = vmatprep.subr.bf16.mxu1 %v7446_v11 }
  0x6b   : > { %v7389_v34 = vld [vmem:[%s8202_s16 + $0x1a4] ss:$16 sps:$4 sm:$0xff]   ;;  %v7391_v35 = vld [vmem:[%s8202_s16 + $0x1a0] ss:$16 sps:$4 sm:$0xff]  }
  0x6c   : > { %2464 = vmatpush1.bf16.msra.mxu0 %v7361_v12  ;;  %v7392_v36 = vld [vmem:[%s8202_s16 + $0x1c4] ss:$16 sps:$4 sm:$0xff]   ;;  %v7394_v37 = vld [vmem:[%s8202_s16 + $0x1c0] ss:$16 sps:$4 sm:$0xff]   ;;  %v7448_v12 = vld [vmem:[%s8202_s16 + $0x8] ss:$16 sps:$4 sm:$0xff]  }
  0x6d   : > { %2465 = vmatprep.subr.bf16.mxu0 %v7362_v13  ;;  %v7395_v38 = vld [vmem:[%s8202_s16 + $0x1e4] ss:$16 sps:$4 sm:$0xff]   ;;  %v7397_v39 = vld [vmem:[%s8202_s16 + $0x1e0] ss:$16 sps:$4 sm:$0xff]   ;;  %v7449_v13 = vld [vmem:[%s8202_s16 + $0x2c] ss:$16 sps:$4 sm:$0xff]   ;;  %2501 = vmatpush1.bf16.msra.mxu1 %v7448_v12 }
  0x6e   : > { %v2043_v40 = vld [vmem:[#allocation2] sm:$0xff]  ;;  %v2045_v41 = vld [vmem:[#allocation2 + $0x10] sm:$0xff]  ;;  %2502 = vmatprep.subr.bf16.mxu1 %v7449_v13 }
  0x6f   : > { %v7400_v42 = vld [vmem:[%s8220_s19 + $0x4] ss:$8 sps:$4 sm:$0xff]   ;;  %v7398_v43 = vld [vmem:[%s8220_s19] ss:$8 sps:$4 sm:$0xff]   ;;  %v8319_v44 = vpack.c.bf16 %v2045_v41, %v2043_v40  ;;  %v7403_v45 = vld [vmem:[%s8220_s19 + $0x14] ss:$8 sps:$4 sm:$0xff]  }
  0x70   : > { %2466 = vmatpush1.bf16.msra.mxu0 %v7364_v14  ;;  %v7401_v46 = vld [vmem:[%s8220_s19 + $0x10] ss:$8 sps:$4 sm:$0xff]   ;;  %v7406_v47 = vld [vmem:[%s8220_s19 + $0x24] ss:$8 sps:$4 sm:$0xff]   ;;  %v7404_v48 = vld [vmem:[%s8220_s19 + $0x20] ss:$8 sps:$4 sm:$0xff]  }
  0x71   : > { %2467 = vmatprep.subr.bf16.mxu0 %v7365_v15  ;;  %v7409_v49 = vld [vmem:[%s8220_s19 + $0x34] ss:$8 sps:$4 sm:$0xff]   ;;  %v7407_v50 = vld [vmem:[%s8220_s19 + $0x30] ss:$8 sps:$4 sm:$0xff]   ;;  %v7412_v51 = vld [vmem:[%s8220_s19 + $0x44] ss:$8 sps:$4 sm:$0xff]  }
  0x72   : > { %v7410_v52 = vld [vmem:[%s8220_s19 + $0x40] ss:$8 sps:$4 sm:$0xff]   ;;  %v7415_v53 = vld [vmem:[%s8220_s19 + $0x54] ss:$8 sps:$4 sm:$0xff]   ;;  %v7413_v54 = vld [vmem:[%s8220_s19 + $0x50] ss:$8 sps:$4 sm:$0xff]  }
  0x73   : > { %v7418_v55 = vld [vmem:[%s8220_s19 + $0x64] ss:$8 sps:$4 sm:$0xff]   ;;  %v7416_v56 = vld [vmem:[%s8220_s19 + $0x60] ss:$8 sps:$4 sm:$0xff]   ;;  %v7421_v57 = vld [vmem:[%s8220_s19 + $0x74] ss:$8 sps:$4 sm:$0xff]  }
  0x74   : > { %2468 = vmatpush1.bf16.msra.mxu0 %v7367_v16  ;;  %v7419_v58 = vld [vmem:[%s8220_s19 + $0x70] ss:$8 sps:$4 sm:$0xff]   ;;  %v7424_v59 = vld [vmem:[%s8220_s19 + $0x84] ss:$8 sps:$4 sm:$0xff]   ;;  %v7422_v60 = vld [vmem:[%s8220_s19 + $0x80] ss:$8 sps:$4 sm:$0xff]  }
  0x75   : > { %2469 = vmatprep.subr.bf16.mxu0 %v7368_v17  ;;  %v7427_v61 = vld [vmem:[%s8220_s19 + $0x94] ss:$8 sps:$4 sm:$0xff]   ;;  %v7425_v62 = vld [vmem:[%s8220_s19 + $0x90] ss:$8 sps:$4 sm:$0xff]   ;;  %v7430_v63 = vld [vmem:[%s8220_s19 + $0xa4] ss:$8 sps:$4 sm:$0xff]  }
  0x76   : > { %v7428_v0 = vld [vmem:[%s8220_s19 + $0xa0] ss:$8 sps:$4 sm:$0xff]   ;;  %v7433_v1 = vld [vmem:[%s8220_s19 + $0xb4] ss:$8 sps:$4 sm:$0xff]   ;;  %v7431_v2 = vld [vmem:[%s8220_s19 + $0xb0] ss:$8 sps:$4 sm:$0xff]  }
  0x77   : > { %v7436_v3 = vld [vmem:[%s8220_s19 + $0xc4] ss:$8 sps:$4 sm:$0xff]   ;;  %v7434_v4 = vld [vmem:[%s8220_s19 + $0xc0] ss:$8 sps:$4 sm:$0xff]   ;;  %v7439_v5 = vld [vmem:[%s8220_s19 + $0xd4] ss:$8 sps:$4 sm:$0xff]  }
  0x78   : > { %2470 = vmatpush1.bf16.msra.mxu0 %v7370_v21  ;;  %v7437_v6 = vld [vmem:[%s8220_s19 + $0xd0] ss:$8 sps:$4 sm:$0xff]   ;;  %v7442_v7 = vld [vmem:[%s8220_s19 + $0xe4] ss:$8 sps:$4 sm:$0xff]   ;;  %v7440_v8 = vld [vmem:[%s8220_s19 + $0xe0] ss:$8 sps:$4 sm:$0xff]  }
  0x79   : > { %2471 = vmatprep.subr.bf16.mxu0 %v7371_v22  ;;  %v7445_v9 = vld [vmem:[%s8220_s19 + $0xf4] ss:$8 sps:$4 sm:$0xff]   ;;  %v7443_v10 = vld [vmem:[%s8220_s19 + $0xf0] ss:$8 sps:$4 sm:$0xff]  }
  0x7a   : > { %v7451_v14 = vld [vmem:[%s8202_s16 + $0x28] ss:$16 sps:$4 sm:$0xff]   ;;  %v7452_v15 = vld [vmem:[%s8202_s16 + $0x4c] ss:$16 sps:$4 sm:$0xff]  }
  0x7b   : > { %2503 = vmatpush1.bf16.msra.mxu1 %v7451_v14  ;;  %v7454_v16 = vld [vmem:[%s8202_s16 + $0x48] ss:$16 sps:$4 sm:$0xff]   ;;  %v7455_v17 = vld [vmem:[%s8202_s16 + $0x6c] ss:$16 sps:$4 sm:$0xff]  }
  0x7c   : > { %2472 = vmatpush1.bf16.msra.mxu0 %v7373_v23  ;;  %2504 = vmatprep.subr.bf16.mxu1 %v7452_v15  ;;  %v7461_v21 = vld [vmem:[%s8202_s16 + $0xac] ss:$16 sps:$4 sm:$0xff]   ;;  %v7463_v22 = vld [vmem:[%s8202_s16 + $0xa8] ss:$16 sps:$4 sm:$0xff]  }
  0x7d   : > { %2473 = vmatprep.subr.bf16.mxu0 %v7374_v24  ;;  %v7464_v23 = vld [vmem:[%s8202_s16 + $0xcc] ss:$16 sps:$4 sm:$0xff]   ;;  %v7466_v24 = vld [vmem:[%s8202_s16 + $0xc8] ss:$16 sps:$4 sm:$0xff]  }
  0x7e   : > { %v7490_v40 = vld [vmem:[%s8202_s16 + $0x1c8] ss:$16 sps:$4 sm:$0xff]   ;;  %v7491_v41 = vld [vmem:[%s8202_s16 + $0x1ec] ss:$16 sps:$4 sm:$0xff]  }
  0x7f   : > { %2505 = vmatpush1.bf16.msra.mxu1 %v7454_v16  ;;  %v7533_v13 = vld [vmem:[%s8220_s19 + $0x1d0] ss:$8 sps:$4 sm:$0xff]  }
  0x80   : > { %2474 = vmatpush1.bf16.msra.mxu0 %v7376_v25  ;;  %2506 = vmatprep.subr.bf16.mxu1 %v7455_v17  ;;  %v7467_v25 = vld [vmem:[%s8202_s16 + $0xec] ss:$16 sps:$4 sm:$0xff]  }
  0x81   : > { %2475 = vmatprep.subr.bf16.mxu0 %v7377_v26  ;;  %v7469_v26 = vld [vmem:[%s8202_s16 + $0xe8] ss:$16 sps:$4 sm:$0xff]  }
  0x83   : > { %2507 = vmatpush1.bf16.msra.mxu1 %v7457_v18 }
  0x84   : > { %2476 = vmatpush1.bf16.msra.mxu0 %v7379_v27  ;;  %2508 = vmatprep.subr.bf16.mxu1 %v7458_v19  ;;  %v7470_v27 = vld [vmem:[%s8202_s16 + $0x10c] ss:$16 sps:$4 sm:$0xff]  }
  0x85   : > { %2477 = vmatprep.subr.bf16.mxu0 %v7380_v28  ;;  %v7472_v28 = vld [vmem:[%s8202_s16 + $0x108] ss:$16 sps:$4 sm:$0xff]  }
  0x87   : > { %2509 = vmatpush1.bf16.msra.mxu1 %v7460_v20 }
  0x88   : > { %2478 = vmatpush1.bf16.msra.mxu0 %v7382_v29  ;;  %2510 = vmatprep.subr.bf16.mxu1 %v7461_v21  ;;  %v7473_v29 = vld [vmem:[%s8202_s16 + $0x12c] ss:$16 sps:$4 sm:$0xff]  }
  0x89   : > { %2479 = vmatprep.subr.bf16.mxu0 %v7383_v30  ;;  %v7475_v30 = vld [vmem:[%s8202_s16 + $0x128] ss:$16 sps:$4 sm:$0xff]  }
  0x8b   : > { %2511 = vmatpush1.bf16.msra.mxu1 %v7463_v22 }
  0x8c   : > { %2480 = vmatpush1.bf16.msra.mxu0 %v7385_v31  ;;  %2512 = vmatprep.subr.bf16.mxu1 %v7464_v23  ;;  %v7476_v31 = vld [vmem:[%s8202_s16 + $0x14c] ss:$16 sps:$4 sm:$0xff]  }
  0x8d   : > { %2481 = vmatprep.subr.bf16.mxu0 %v7386_v32  ;;  %v7478_v32 = vld [vmem:[%s8202_s16 + $0x148] ss:$16 sps:$4 sm:$0xff]  }
  0x8f   : > { %2513 = vmatpush1.bf16.msra.mxu1 %v7466_v24 }
  0x90   : > { %2482 = vmatpush1.bf16.msra.mxu0 %v7388_v33  ;;  %2514 = vmatprep.subr.bf16.mxu1 %v7467_v25  ;;  %v7479_v33 = vld [vmem:[%s8202_s16 + $0x16c] ss:$16 sps:$4 sm:$0xff]  }
  0x91   : > { %2483 = vmatprep.subr.bf16.mxu0 %v7389_v34  ;;  %v7481_v34 = vld [vmem:[%s8202_s16 + $0x168] ss:$16 sps:$4 sm:$0xff]  }
  0x93   : > { %2515 = vmatpush1.bf16.msra.mxu1 %v7469_v26 }
  0x94   : > { %2484 = vmatpush1.bf16.msra.mxu0 %v7391_v35  ;;  %2516 = vmatprep.subr.bf16.mxu1 %v7470_v27  ;;  %v7482_v35 = vld [vmem:[%s8202_s16 + $0x18c] ss:$16 sps:$4 sm:$0xff]  }
  0x95   : > { %2485 = vmatprep.subr.bf16.mxu0 %v7392_v36  ;;  %v7484_v36 = vld [vmem:[%s8202_s16 + $0x188] ss:$16 sps:$4 sm:$0xff]  }
  0x97   : > { %2517 = vmatpush1.bf16.msra.mxu1 %v7472_v28  ;;  %v7538_v28 = vld [vmem:[%s8220_s19 + $0x1e4] ss:$8 sps:$4 sm:$0xff]  }
  0x98   : > { %2486 = vmatpush1.bf16.msra.mxu0 %v7394_v37  ;;  %2518 = vmatprep.subr.bf16.mxu1 %v7473_v29  ;;  %v7485_v37 = vld [vmem:[%s8202_s16 + $0x1ac] ss:$16 sps:$4 sm:$0xff]   ;;  %v7536_v29 = vld [vmem:[%s8220_s19 + $0x1e0] ss:$8 sps:$4 sm:$0xff]  }
  0x99   : > { %2487 = vmatprep.subr.bf16.mxu0 %v7395_v38  ;;  %v7487_v38 = vld [vmem:[%s8202_s16 + $0x1a8] ss:$16 sps:$4 sm:$0xff]  }
  0x9b   : > { %2519 = vmatpush1.bf16.msra.mxu1 %v7475_v30  ;;  %v7541_v30 = vld [vmem:[%s8220_s19 + $0x1f4] ss:$8 sps:$4 sm:$0xff]  }
  0x9c   : > { %2488 = vmatpush1.bf16.msra.mxu0 %v7397_v39  ;;  %2520 = vmatprep.subr.bf16.mxu1 %v7476_v31  ;;  %v7488_v39 = vld [vmem:[%s8202_s16 + $0x1cc] ss:$16 sps:$4 sm:$0xff]   ;;  %v7539_v31 = vld [vmem:[%s8220_s19 + $0x1f0] ss:$8 sps:$4 sm:$0xff]  }
  0x9d   : > { %2757 = vmatprep.subr.bf16.mxu0 %v7400_v42  ;;  %v7493_v42 = vld [vmem:[%s8202_s16 + $0x1e8] ss:$16 sps:$4 sm:$0xff]   ;;  %s9020_s16 = sld [smem:[#allocation27_spill]] }
  0x9f   : > { %2490 = vmatmul.mubr.bf16.vlgmr.msra.gmra.mrb[0].mxu0 %v8319_v44  ;;  %2521 = vmatpush1.bf16.msra.mxu1 %v7478_v32  ;;  %v7542_v32 = vld [vmem:[%s8220_s19 + $0x200] ss:$8 sps:$4 sm:$0xff]  }
  0xa0   : > { %2758 = vmatpush1.bf16.msra.mxu0 %v7398_v43  ;;  %2522 = vmatprep.subr.bf16.mxu1 %v7479_v33  ;;  %v7496_v43 = vld [vmem:[%s8220_s19 + $0x104] ss:$8 sps:$4 sm:$0xff]  }
  0xa1   : > { %2759 = vmatprep.subr.bf16.mxu0 %v7403_v45  ;;  %v7494_v45 = vld [vmem:[%s8220_s19 + $0x100] ss:$8 sps:$4 sm:$0xff]   ;;  %v7544_v33 = vld [vmem:[%s8220_s19 + $0x204] ss:$8 sps:$4 sm:$0xff]  }
  0xa3   : > { %2523 = vmatpush1.bf16.msra.mxu1 %v7481_v34  ;;  %v7547_v34 = vld [vmem:[%s8220_s19 + $0x214] ss:$8 sps:$4 sm:$0xff]  }
  0xa4   : > { %2760 = vmatpush1.bf16.msra.mxu0 %v7401_v46  ;;  %2524 = vmatprep.subr.bf16.mxu1 %v7482_v35  ;;  %v7499_v46 = vld [vmem:[%s8220_s19 + $0x114] ss:$8 sps:$4 sm:$0xff]   ;;  %v7545_v35 = vld [vmem:[%s8220_s19 + $0x210] ss:$8 sps:$4 sm:$0xff]  }
  0xa5   : > { %2761 = vmatprep.subr.bf16.mxu0 %v7406_v47  ;;  %v7497_v47 = vld [vmem:[%s8220_s19 + $0x110] ss:$8 sps:$4 sm:$0xff]  }
  0xa7   : > { %2525 = vmatpush1.bf16.msra.mxu1 %v7484_v36  ;;  %v7550_v36 = vld [vmem:[%s8220_s19 + $0x224] ss:$8 sps:$4 sm:$0xff]  }
  0xa8   : > { %2762 = vmatpush1.bf16.msra.mxu0 %v7404_v48  ;;  %2526 = vmatprep.subr.bf16.mxu1 %v7485_v37  ;;  %v7502_v48 = vld [vmem:[%s8220_s19 + $0x124] ss:$8 sps:$4 sm:$0xff]   ;;  %v7548_v37 = vld [vmem:[%s8220_s19 + $0x220] ss:$8 sps:$4 sm:$0xff]  }
  0xa9   : > { %2763 = vmatprep.subr.bf16.mxu0 %v7409_v49  ;;  %v7500_v49 = vld [vmem:[%s8220_s19 + $0x120] ss:$8 sps:$4 sm:$0xff]  }
  0xab   : > { %2527 = vmatpush1.bf16.msra.mxu1 %v7487_v38  ;;  %v7553_v38 = vld [vmem:[%s8220_s19 + $0x234] ss:$8 sps:$4 sm:$0xff]  }
  0xac   : > { %2764 = vmatpush1.bf16.msra.mxu0 %v7407_v50  ;;  %2528 = vmatprep.subr.bf16.mxu1 %v7488_v39  ;;  %v7505_v50 = vld [vmem:[%s8220_s19 + $0x134] ss:$8 sps:$4 sm:$0xff]   ;;  %v7551_v39 = vld [vmem:[%s8220_s19 + $0x230] ss:$8 sps:$4 sm:$0xff]  }
  0xad   : > { %2765 = vmatprep.subr.bf16.mxu0 %v7412_v51  ;;  %v7503_v51 = vld [vmem:[%s8220_s19 + $0x130] ss:$8 sps:$4 sm:$0xff]  }
  0xaf   : > { %2529 = vmatpush1.bf16.msra.mxu1 %v7490_v40  ;;  %v7556_v40 = vld [vmem:[%s8220_s19 + $0x244] ss:$8 sps:$4 sm:$0xff]  }
  0xb0   : > { %2766 = vmatpush1.bf16.msra.mxu0 %v7410_v52  ;;  %2530 = vmatprep.subr.bf16.mxu1 %v7491_v41  ;;  %v7508_v52 = vld [vmem:[%s8220_s19 + $0x144] ss:$8 sps:$4 sm:$0xff]   ;;  %v7554_v41 = vld [vmem:[%s8220_s19 + $0x240] ss:$8 sps:$4 sm:$0xff]  }
  0xb1   : > { %2767 = vmatprep.subr.bf16.mxu0 %v7415_v53  ;;  %v7511_v53 = vld [vmem:[%s8220_s19 + $0x154] ss:$8 sps:$4 sm:$0xff]  }
  0xb3   : > { %2531 = vmatpush1.bf16.msra.mxu1 %v7493_v42  ;;  %v7559_v42 = vld [vmem:[%s8220_s19 + $0x254] ss:$8 sps:$4 sm:$0xff]  }
  0xb4   : > { %2768 = vmatpush1.bf16.msra.mxu0 %v7413_v54  ;;  %3008 = vmatprep.subr.bf16.mxu1 %v7496_v43  ;;  %v7509_v54 = vld [vmem:[%s8220_s19 + $0x150] ss:$8 sps:$4 sm:$0xff]  }
  0xb5   : > { %2769 = vmatprep.subr.bf16.mxu0 %v7418_v55  ;;  %v7514_v55 = vld [vmem:[%s8220_s19 + $0x164] ss:$8 sps:$4 sm:$0xff]   ;;  %v7557_v43 = vld [vmem:[%s8220_s19 + $0x250] ss:$8 sps:$4 sm:$0xff]  }
  0xb6   : > { %2533 = vmatmul.mubr.bf16.vlgmr.msra.gmra.mrb[0].mxu1 %v8319_v44  ;;  %v7506_v44 = vld [vmem:[%s8220_s19 + $0x140] ss:$8 sps:$4 sm:$0xff]  }
  0xb7   : > { %3009 = vmatpush1.bf16.msra.mxu1 %v7494_v45  ;;  %v7562_v45 = vld [vmem:[%s8220_s19 + $0x264] ss:$8 sps:$4 sm:$0xff]  }
  0xb8   : > { %2770 = vmatpush1.bf16.msra.mxu0 %v7416_v56  ;;  %3010 = vmatprep.subr.bf16.mxu1 %v7499_v46  ;;  %v7512_v56 = vld [vmem:[%s8220_s19 + $0x160] ss:$8 sps:$4 sm:$0xff]  }
  0xb9   : > { %2771 = vmatprep.subr.bf16.mxu0 %v7421_v57  ;;  %v7517_v57 = vld [vmem:[%s8220_s19 + $0x174] ss:$8 sps:$4 sm:$0xff]   ;;  %v7560_v46 = vld [vmem:[%s8220_s19 + $0x260] ss:$8 sps:$4 sm:$0xff]  }
  0xbb   : > { %3011 = vmatpush1.bf16.msra.mxu1 %v7497_v47  ;;  %v7565_v47 = vld [vmem:[%s8220_s19 + $0x274] ss:$8 sps:$4 sm:$0xff]  }
  0xbc   : > { %2772 = vmatpush1.bf16.msra.mxu0 %v7419_v58  ;;  %3012 = vmatprep.subr.bf16.mxu1 %v7502_v48  ;;  %v7515_v58 = vld [vmem:[%s8220_s19 + $0x170] ss:$8 sps:$4 sm:$0xff]  }
  0xbd   : > { %2773 = vmatprep.subr.bf16.mxu0 %v7424_v59  ;;  %v7520_v59 = vld [vmem:[%s8220_s19 + $0x184] ss:$8 sps:$4 sm:$0xff]   ;;  %v7563_v48 = vld [vmem:[%s8220_s19 + $0x270] ss:$8 sps:$4 sm:$0xff]  }
  0xbf   : > { %3013 = vmatpush1.bf16.msra.mxu1 %v7500_v49  ;;  %v7568_v49 = vld [vmem:[%s8220_s19 + $0x284] ss:$8 sps:$4 sm:$0xff]  }
  0xc0   : > { %2774 = vmatpush1.bf16.msra.mxu0 %v7422_v60  ;;  %3014 = vmatprep.subr.bf16.mxu1 %v7505_v50  ;;  %v7518_v60 = vld [vmem:[%s8220_s19 + $0x180] ss:$8 sps:$4 sm:$0xff]  }
  0xc1   : > { %2775 = vmatprep.subr.bf16.mxu0 %v7427_v61  ;;  %v7523_v61 = vld [vmem:[%s8220_s19 + $0x194] ss:$8 sps:$4 sm:$0xff]   ;;  %v7566_v50 = vld [vmem:[%s8220_s19 + $0x280] ss:$8 sps:$4 sm:$0xff]  }
  0xc3   : > { %3015 = vmatpush1.bf16.msra.mxu1 %v7503_v51  ;;  %v7571_v51 = vld [vmem:[%s8220_s19 + $0x294] ss:$8 sps:$4 sm:$0xff]  }
  0xc4   : > { %2776 = vmatpush1.bf16.msra.mxu0 %v7425_v62  ;;  %3016 = vmatprep.subr.bf16.mxu1 %v7508_v52  ;;  %v7521_v62 = vld [vmem:[%s8220_s19 + $0x190] ss:$8 sps:$4 sm:$0xff]  }
  0xc5   : > { %2777 = vmatprep.subr.bf16.mxu0 %v7430_v63  ;;  %v7526_v63 = vld [vmem:[%s8220_s19 + $0x1a4] ss:$8 sps:$4 sm:$0xff]   ;;  %v7569_v52 = vld [vmem:[%s8220_s19 + $0x290] ss:$8 sps:$4 sm:$0xff]  }
  0xc7   : > { %3017 = vmatpush1.bf16.msra.mxu1 %v7506_v44  ;;  %v7574_v44 = vld [vmem:[%s8220_s19 + $0x2a4] ss:$8 sps:$4 sm:$0xff]  }
  0xc8   : > { %2778 = vmatpush1.bf16.msra.mxu0 %v7428_v0  ;;  %3018 = vmatprep.subr.bf16.mxu1 %v7511_v53  ;;  %v2117_v0 = vlaneseq  ;;  %v7572_v53 = vld [vmem:[%s8220_s19 + $0x2a0] ss:$8 sps:$4 sm:$0xff]  }
  0xc9   : > { %2779 = vmatprep.subr.bf16.mxu0 %v7433_v1  ;;  %v7524_v1 = vld [vmem:[%s8220_s19 + $0x1a0] ss:$8 sps:$4 sm:$0xff]  }
  0xcb   : > { %3019 = vmatpush1.bf16.msra.mxu1 %v7509_v54  ;;  %v7577_v54 = vld [vmem:[%s8220_s19 + $0x2b4] ss:$8 sps:$4 sm:$0xff]  }
  0xcc   : > { %2780 = vmatpush1.bf16.msra.mxu0 %v7431_v2  ;;  %3020 = vmatprep.subr.bf16.mxu1 %v7514_v55  ;;  %v7529_v2 = vld [vmem:[%s8220_s19 + $0x1b4] ss:$8 sps:$4 sm:$0xff]   ;;  %v7575_v55 = vld [vmem:[%s8220_s19 + $0x2b0] ss:$8 sps:$4 sm:$0xff]  }
  0xcd   : > { %2781 = vmatprep.subr.bf16.mxu0 %v7436_v3  ;;  %v8408_v3 = vshrl.u32 %v2117_v0, 7 }
  0xcf   : > { %3021 = vmatpush1.bf16.msra.mxu1 %v7512_v56  ;;  %v7580_v56 = vld [vmem:[%s8220_s19 + $0x2c4] ss:$8 sps:$4 sm:$0xff]  }
  0xd0   : > { %2782 = vmatpush1.bf16.msra.mxu0 %v7434_v4  ;;  %3022 = vmatprep.subr.bf16.mxu1 %v7517_v57  ;;  %v7527_v4 = vld [vmem:[%s8220_s19 + $0x1b0] ss:$8 sps:$4 sm:$0xff]   ;;  %v7578_v57 = vld [vmem:[%s8220_s19 + $0x2c0] ss:$8 sps:$4 sm:$0xff]  }
  0xd1   : > { %2783 = vmatprep.subr.bf16.mxu0 %v7439_v5  ;;  %v7532_v5 = vld [vmem:[%s8220_s19 + $0x1c4] ss:$8 sps:$4 sm:$0xff]  }
  0xd3   : > { %3023 = vmatpush1.bf16.msra.mxu1 %v7515_v58  ;;  %v7583_v58 = vld [vmem:[%s8220_s19 + $0x2d4] ss:$8 sps:$4 sm:$0xff]  }
  0xd4   : > { %2784 = vmatpush1.bf16.msra.mxu0 %v7437_v6  ;;  %3024 = vmatprep.subr.bf16.mxu1 %v7520_v59  ;;  %v8413_v6 = vsub.s32 0, %v8408_v3  ;;  %v2127_v59 = vsub.s32 2, %v8408_v3 }
  0xd5   : > { %2785 = vmatprep.subr.bf16.mxu0 %v7442_v7  ;;  %v8416_v7 = vld [vmem:[%s8207_s30] sm:$0xf]  ;;  %s9021_s30 = scalar_lea.vmem %s9020_s16, %s9042_s29 }
  0xd6   : > { %v2120_v11 = vrot.slane %v8416_v7, %v8413_v6 }
  0xd7   : > { %3025 = vmatpush1.bf16.msra.mxu1 %v7518_v60  ;;  %v2131_v60 = vsub.s32 3, %v8408_v3 }
  0xd8   : > { %2786 = vmatpush1.bf16.msra.mxu0 %v7440_v8  ;;  %3026 = vmatprep.subr.bf16.mxu1 %v7523_v61  ;;  %v8419_v8 = vsub.s32 1, %v8408_v3  ;;  %v7581_v61 = vld [vmem:[%s8220_s19 + $0x2d0] ss:$8 sps:$4 sm:$0xff]  }
  0xd9   : > { %2787 = vmatprep.subr.bf16.mxu0 %v7445_v9  ;;  %v7530_v9 = vld [vmem:[%s8220_s19 + $0x1c0] ss:$8 sps:$4 sm:$0xff]  }
  0xda   : > { %v2124_v12 = vrot.slane %v8416_v7, %v8419_v8 }
  0xdb   : > { %3027 = vmatpush1.bf16.msra.mxu1 %v7521_v62  ;;  %v2128_v62 = vrot.slane %v8416_v7, %v2127_v59  ;;  %v7626_v59 = vld [vmem:[%s8220_s19 + $0x3c0] ss:$8 sps:$4 sm:$0xff]  }
  0xdc   : > { %2788 = vmatpush1.bf16.msra.mxu0 %v7443_v10  ;;  %3028 = vmatprep.subr.bf16.mxu1 %v7526_v63  ;;  %v7535_v10 = vld [vmem:[%s8220_s19 + $0x1d4] ss:$8 sps:$4 sm:$0xff]   ;;  %v2132_v63 = vrot.slane %v8416_v7, %v2131_v60  ;;  %v2585_v7 = vld [vmem:[%s8230_s6] sm:$0x3] }
  0xdd   : > { %3263 = vmatprep.subr.bf16.mxu0 %v7544_v33  ;;  %v7587_v33 = vld [vmem:[%s8220_s19 + $0x2f0] ss:$8 sps:$4 sm:$0xff]   ;;  %v7631_v60 = vld [vmem:[%s8220_s19 + $0x3d4] ss:$8 sps:$4 sm:$0xff]  }
  0xdf   : > { %3029 = vmatpush1.bf16.msra.mxu1 %v7524_v1 }
  0xe0   : > { %3030 = vmatprep.subr.bf16.mxu1 %v7529_v2 }
  0xe3   : > { %3031 = vmatpush1.bf16.msra.mxu1 %v7527_v4 }
  0xe4   : > { %3032 = vmatprep.subr.bf16.mxu1 %v7532_v5 }
  0xe7   : > { %3033 = vmatpush1.bf16.msra.mxu1 %v7530_v9 }
  0xe8   : > { %3034 = vmatprep.subr.bf16.mxu1 %v7535_v10 }
  0xeb   : > { %3035 = vmatpush1.bf16.msra.mxu1 %v7533_v13 }
  0xec   : > { %3036 = vmatprep.subr.bf16.mxu1 %v7538_v28 }
  0xef   : > { %3037 = vmatpush1.bf16.msra.mxu1 %v7536_v29 }
  0xf0   : > { %3038 = vmatprep.subr.bf16.mxu1 %v7541_v30  ;;  %v7586_v30 = vld [vmem:[%s8220_s19 + $0x2e4] ss:$8 sps:$4 sm:$0xff]  }
  0xf3   : > { %3039 = vmatpush1.bf16.msra.mxu1 %v7539_v31  ;;  %v7584_v31 = vld [vmem:[%s8220_s19 + $0x2e0] ss:$8 sps:$4 sm:$0xff]  }
 0x172   : > { %v2491_v14 = vpop.f32.mrb[0].mxu0 }
 0x173   : > { %v2492_v15 = vadd.f32 %v2491_v14, %v2120_v11  ;;  %v2493_v16 = vpop.f32.mrb[1].mxu0 }
 0x174   : > { %v2494_v17 = vadd.f32 %v2493_v16, %v2124_v12  ;;  %v2495_v18 = vpop.f32.mrb[2].mxu0 }
 0x175   : > { %v2496_v19 = vadd.f32 %v2495_v18, %v2120_v11  ;;  %v2497_v20 = vpop.f32.mrb[3].mxu0  ;;  %v2543_v22 = vmax.f32 %v2492_v15, 0.0  ;;  %v2590_v18 = vrot.slane %v2585_v7, %v8413_v6 }
 0x176   : > { %v2498_v21 = vadd.f32 %v2497_v20, %v2124_v12  ;;  %v2544_v24 = vmax.f32 %v2494_v17, 0.0  ;;  %v2594_v20 = vrot.slane %v2585_v7, %v8419_v8 }
 0x177   : > { %v2547_v23 = vmax.f32 %v2496_v19, 0.0 }
 0x178   : > { %v2548_v25 = vmax.f32 %v2498_v21, 0.0 }
 0x179   : > { %v2551_v26 = vpack.c.bf16 %v2547_v23, %v2543_v22 }
 0x17a   : > { %v2552_v27 = vpack.c.bf16 %v2548_v25, %v2544_v24 }
 0x17c   : > { %2789 = vmatprep.mubr.bf16.mxu0 %v2552_v27 }
 0x17d   : > { %2790 = vmatmul.mubr.bf16.vlgmr.msra.gmra.mrb[4].mxu0 %v2551_v26 }
 0x17e   : > { %3264 = vmatpush1.bf16.msra.mxu0 %v7542_v32  ;;  %v7589_v32 = vld [vmem:[%s8220_s19 + $0x2f4] ss:$8 sps:$4 sm:$0xff]  }
 0x17f   : > { %3265 = vmatprep.subr.bf16.mxu0 %v7547_v34  ;;  %v7590_v34 = vld [vmem:[%s8220_s19 + $0x300] ss:$8 sps:$4 sm:$0xff]  }
 0x182   : > { %3266 = vmatpush1.bf16.msra.mxu0 %v7545_v35  ;;  %v7592_v35 = vld [vmem:[%s8220_s19 + $0x304] ss:$8 sps:$4 sm:$0xff]  }
 0x183   : > { %3267 = vmatprep.subr.bf16.mxu0 %v7550_v36  ;;  %v7595_v36 = vld [vmem:[%s8220_s19 + $0x314] ss:$8 sps:$4 sm:$0xff]   ;;  %3514 = vmatprep.subr.bf16.mxu1 %v7592_v35 }
 0x184   : > { %v7703_v35 = vld [vmem:[%s8220_s19 + $0x454] ss:$8 sps:$4 sm:$0xff]  }
 0x186   : > { %3268 = vmatpush1.bf16.msra.mxu0 %v7548_v37  ;;  %v7593_v37 = vld [vmem:[%s8220_s19 + $0x310] ss:$8 sps:$4 sm:$0xff]  }
 0x187   : > { %3269 = vmatprep.subr.bf16.mxu0 %v7553_v38  ;;  %v7598_v38 = vld [vmem:[%s8220_s19 + $0x324] ss:$8 sps:$4 sm:$0xff]  }
 0x189   : > { %v2534_v0 = vpop.f32.mrb[0].mxu1 }
 0x18a   : > { %3270 = vmatpush1.bf16.msra.mxu0 %v7551_v39  ;;  %v2535_v1 = vadd.f32 %v2534_v0, %v2128_v62  ;;  %v2536_v2 = vpop.f32.mrb[1].mxu1  ;;  %v7596_v39 = vld [vmem:[%s8220_s19 + $0x320] ss:$8 sps:$4 sm:$0xff]  }
 0x18b   : > { %3271 = vmatprep.subr.bf16.mxu0 %v7556_v40  ;;  %v2537_v4 = vadd.f32 %v2536_v2, %v2132_v63  ;;  %v2538_v5 = vpop.f32.mrb[2].mxu1  ;;  %v7601_v40 = vld [vmem:[%s8220_s19 + $0x334] ss:$8 sps:$4 sm:$0xff]  }
 0x18c   : > { %v2545_v9 = vmax.f32 %v2535_v1, 0.0  ;;  %v2539_v10 = vadd.f32 %v2538_v5, %v2128_v62  ;;  %v2540_v11 = vpop.f32.mrb[3].mxu1  ;;  %v6630_v62 = vld [vmem:[%s8230_s6 + $0x2] sm:$0x3] }
 0x18d   : > { %v2546_v12 = vmax.f32 %v2537_v4, 0.0  ;;  %v2541_v13 = vadd.f32 %v2540_v11, %v2132_v63  ;;  %v2841_v63 = vrot.slane %v6630_v62, %v8413_v6  ;;  %v2845_v0 = vrot.slane %v6630_v62, %v8419_v8 }
 0x18e   : > { %3272 = vmatpush1.bf16.msra.mxu0 %v7554_v41  ;;  %v2549_v14 = vmax.f32 %v2539_v10, 0.0  ;;  %v7599_v41 = vld [vmem:[%s8220_s19 + $0x330] ss:$8 sps:$4 sm:$0xff]  }
 0x18f   : > { %3273 = vmatprep.subr.bf16.mxu0 %v7559_v42  ;;  %v2550_v15 = vmax.f32 %v2541_v13, 0.0  ;;  %v7604_v42 = vld [vmem:[%s8220_s19 + $0x344] ss:$8 sps:$4 sm:$0xff]  }
 0x190   : > { %v8464_v16 = vpack.c.bf16 %v2549_v14, %v2545_v9 }
 0x191   : > { %v8466_v17 = vpack.c.bf16 %v2550_v15, %v2546_v12 }
 0x192   : > { %3274 = vmatpush1.bf16.msra.mxu0 %v7557_v43  ;;  %v7602_v43 = vld [vmem:[%s8220_s19 + $0x340] ss:$8 sps:$4 sm:$0xff]  }
 0x193   : > { %3275 = vmatprep.subr.bf16.mxu0 %v7562_v45  ;;  %v7607_v45 = vld [vmem:[%s8220_s19 + $0x354] ss:$8 sps:$4 sm:$0xff]  }
 0x196   : > { %3276 = vmatpush1.bf16.msra.mxu0 %v7560_v46  ;;  %v7605_v46 = vld [vmem:[%s8220_s19 + $0x350] ss:$8 sps:$4 sm:$0xff]  }
 0x197   : > { %3277 = vmatprep.subr.bf16.mxu0 %v7565_v47  ;;  %v7610_v47 = vld [vmem:[%s8220_s19 + $0x364] ss:$8 sps:$4 sm:$0xff]  }
 0x19a   : > { %3278 = vmatpush1.bf16.msra.mxu0 %v7563_v48  ;;  %v7608_v48 = vld [vmem:[%s8220_s19 + $0x360] ss:$8 sps:$4 sm:$0xff]  }
 0x19b   : > { %3279 = vmatprep.subr.bf16.mxu0 %v7568_v49  ;;  %v7613_v49 = vld [vmem:[%s8220_s19 + $0x374] ss:$8 sps:$4 sm:$0xff]  }
 0x19e   : > { %3280 = vmatpush1.bf16.msra.mxu0 %v7566_v50  ;;  %v7611_v50 = vld [vmem:[%s8220_s19 + $0x370] ss:$8 sps:$4 sm:$0xff]  }
 0x19f   : > { %3281 = vmatprep.subr.bf16.mxu0 %v7571_v51  ;;  %v7616_v51 = vld [vmem:[%s8220_s19 + $0x384] ss:$8 sps:$4 sm:$0xff]  }
 0x1a2   : > { %3282 = vmatpush1.bf16.msra.mxu0 %v7569_v52  ;;  %v7614_v52 = vld [vmem:[%s8220_s19 + $0x380] ss:$8 sps:$4 sm:$0xff]  }
 0x1a3   : > { %3283 = vmatprep.subr.bf16.mxu0 %v7574_v44  ;;  %v7619_v44 = vld [vmem:[%s8220_s19 + $0x394] ss:$8 sps:$4 sm:$0xff]  }
 0x1a6   : > { %3284 = vmatpush1.bf16.msra.mxu0 %v7572_v53  ;;  %v7617_v53 = vld [vmem:[%s8220_s19 + $0x390] ss:$8 sps:$4 sm:$0xff]  }
 0x1a7   : > { %3285 = vmatprep.subr.bf16.mxu0 %v7577_v54  ;;  %v7622_v54 = vld [vmem:[%s8220_s19 + $0x3a4] ss:$8 sps:$4 sm:$0xff]  }
 0x1aa   : > { %3286 = vmatpush1.bf16.msra.mxu0 %v7575_v55  ;;  %v7620_v55 = vld [vmem:[%s8220_s19 + $0x3a0] ss:$8 sps:$4 sm:$0xff]  }
 0x1ab   : > { %3287 = vmatprep.subr.bf16.mxu0 %v7580_v56  ;;  %v7625_v56 = vld [vmem:[%s8220_s19 + $0x3b4] ss:$8 sps:$4 sm:$0xff]  }
 0x1ae   : > { %3288 = vmatpush1.bf16.msra.mxu0 %v7578_v57  ;;  %v7623_v57 = vld [vmem:[%s8220_s19 + $0x3b0] ss:$8 sps:$4 sm:$0xff]  }
 0x1af   : > { %3289 = vmatprep.subr.bf16.mxu0 %v7583_v58  ;;  %v7628_v58 = vld [vmem:[%s8220_s19 + $0x3c4] ss:$8 sps:$4 sm:$0xff]  }
 0x1b2   : > { %3290 = vmatpush1.bf16.msra.mxu0 %v7581_v61  ;;  %v7629_v61 = vld [vmem:[%s8220_s19 + $0x3d0] ss:$8 sps:$4 sm:$0xff]  }
 0x1b3   : > { %3291 = vmatprep.subr.bf16.mxu0 %v7586_v30  ;;  %v7692_v30 = vld [vmem:[%s8220_s19 + $0x420] ss:$8 sps:$4 sm:$0xff]  }
 0x1b6   : > { %3292 = vmatpush1.bf16.msra.mxu0 %v7584_v31  ;;  %v7697_v31 = vld [vmem:[%s8220_s19 + $0x434] ss:$8 sps:$4 sm:$0xff]  }
 0x1b7   : > { %3293 = vmatprep.subr.bf16.mxu0 %v7589_v32  ;;  %v7695_v32 = vld [vmem:[%s8220_s19 + $0x430] ss:$8 sps:$4 sm:$0xff]  }
 0x1ba   : > { %3294 = vmatpush1.bf16.msra.mxu0 %v7587_v33  ;;  %v7700_v33 = vld [vmem:[%s8220_s19 + $0x444] ss:$8 sps:$4 sm:$0xff]  }
 0x250   : > { %v2791_v19 = vpop.f32.mrb[4].mxu0 }
 0x251   : > { %v2793_v21 = vpop.f32.mrb[5].mxu0  ;;  %v2792_v23 = vadd.f32 %v2791_v19, %v2590_v18 }
 0x252   : > { %v2795_v22 = vpop.f32.mrb[6].mxu0  ;;  %v2794_v26 = vadd.f32 %v2793_v21, %v2594_v20  ;;  %v7632_v21 = vld [vmem:[%s8220_s19 + $0x3e0] ss:$8 sps:$4 sm:$0xff]  }
 0x253   : > { %v2796_v24 = vadd.f32 %v2795_v22, %v2590_v18  ;;  %v2797_v25 = vpop.f32.mrb[7].mxu0  ;;  %v7637_v22 = vld [vmem:[%s8220_s19 + $0x3f4] ss:$8 sps:$4 sm:$0xff]  }
 0x254   : > { %v2798_v27 = vadd.f32 %v2797_v25, %v2594_v20  ;;  %v7634_v20 = vld [vmem:[%s8220_s19 + $0x3e4] ss:$8 sps:$4 sm:$0xff]   ;;  %v7686_v25 = vld [vmem:[%s8220_s19 + $0x400] ss:$8 sps:$4 sm:$0xff]  }
 0x255   : > { %v2800_v28 = vpack.c.bf16 %v2796_v24, %v2792_v23  ;;  %v7635_v23 = vld [vmem:[%s8220_s19 + $0x3f0] ss:$8 sps:$4 sm:$0xff]   ;;  %v7640_v24 = vld [vmem:[%s8225_s15 + $0x4] ss:$8 sps:$4 sm:$0xff]  }
 0x256   : > { %v2801_v29 = vpack.c.bf16 %v2798_v27, %v2794_v26  ;;  %v7688_v26 = vld [vmem:[%s8220_s19 + $0x404] ss:$8 sps:$4 sm:$0xff]   ;;  %v7691_v27 = vld [vmem:[%s8220_s19 + $0x414] ss:$8 sps:$4 sm:$0xff]  }
 0x257   : > { %3769 = vmatprep.subr.bf16.mxu0 %v7688_v26  ;;  %v7668_v26 = vld [vmem:[%s8225_s15 + $0xa0] ss:$8 sps:$4 sm:$0xff]  }
 0x258   : > { %3040 = vmatprep.mubr.bf16.mxu1 %v2801_v29  ;;  %v7694_v29 = vld [vmem:[%s8220_s19 + $0x424] ss:$8 sps:$4 sm:$0xff]  }
 0x259   : > { %3041 = vmatmul.mubr.bf16.vlgmr.msra.gmra.mrb[4].mxu1 %v2800_v28  ;;  %v7689_v28 = vld [vmem:[%s8220_s19 + $0x410] ss:$8 sps:$4 sm:$0xff]  }
 0x25a   : > { %3515 = vmatpush1.bf16.msra.mxu1 %v7590_v34  ;;  %v7698_v34 = vld [vmem:[%s8220_s19 + $0x440] ss:$8 sps:$4 sm:$0xff]  }
 0x25b   : > { %3516 = vmatprep.subr.bf16.mxu1 %v7595_v36  ;;  %v7701_v36 = vld [vmem:[%s8220_s19 + $0x450] ss:$8 sps:$4 sm:$0xff]  }
 0x25e   : > { %3517 = vmatpush1.bf16.msra.mxu1 %v7593_v37  ;;  %v7706_v37 = vld [vmem:[%s8220_s19 + $0x464] ss:$8 sps:$4 sm:$0xff]  }
 0x25f   : > { %3518 = vmatprep.subr.bf16.mxu1 %v7598_v38  ;;  %v7704_v38 = vld [vmem:[%s8220_s19 + $0x460] ss:$8 sps:$4 sm:$0xff]  }
 0x262   : > { %3519 = vmatpush1.bf16.msra.mxu1 %v7596_v39  ;;  %v7709_v39 = vld [vmem:[%s8220_s19 + $0x474] ss:$8 sps:$4 sm:$0xff]  }
 0x263   : > { %3520 = vmatprep.subr.bf16.mxu1 %v7601_v40  ;;  %v7707_v40 = vld [vmem:[%s8220_s19 + $0x470] ss:$8 sps:$4 sm:$0xff]  }
 0x266   : > { %3521 = vmatpush1.bf16.msra.mxu1 %v7599_v41  ;;  %v7712_v41 = vld [vmem:[%s8220_s19 + $0x484] ss:$8 sps:$4 sm:$0xff]  }
 0x267   : > { %3522 = vmatprep.subr.bf16.mxu1 %v7604_v42  ;;  %v7710_v42 = vld [vmem:[%s8220_s19 + $0x480] ss:$8 sps:$4 sm:$0xff]  }
 0x26a   : > { %3523 = vmatpush1.bf16.msra.mxu1 %v7602_v43  ;;  %v7715_v43 = vld [vmem:[%s8220_s19 + $0x494] ss:$8 sps:$4 sm:$0xff]  }
 0x26b   : > { %3524 = vmatprep.subr.bf16.mxu1 %v7607_v45  ;;  %v7713_v45 = vld [vmem:[%s8220_s19 + $0x490] ss:$8 sps:$4 sm:$0xff]  }
 0x26e   : > { %3525 = vmatpush1.bf16.msra.mxu1 %v7605_v46  ;;  %v7718_v46 = vld [vmem:[%s8220_s19 + $0x4a4] ss:$8 sps:$4 sm:$0xff]  }
 0x26f   : > { %3526 = vmatprep.subr.bf16.mxu1 %v7610_v47  ;;  %v7716_v47 = vld [vmem:[%s8220_s19 + $0x4a0] ss:$8 sps:$4 sm:$0xff]  }
 0x272   : > { %3527 = vmatpush1.bf16.msra.mxu1 %v7608_v48  ;;  %v7721_v48 = vld [vmem:[%s8220_s19 + $0x4b4] ss:$8 sps:$4 sm:$0xff]  }
 0x273   : > { %3528 = vmatprep.subr.bf16.mxu1 %v7613_v49  ;;  %v7719_v49 = vld [vmem:[%s8220_s19 + $0x4b0] ss:$8 sps:$4 sm:$0xff]  }
 0x276   : > { %3529 = vmatpush1.bf16.msra.mxu1 %v7611_v50  ;;  %v7724_v50 = vld [vmem:[%s8220_s19 + $0x4c4] ss:$8 sps:$4 sm:$0xff]  }
 0x277   : > { %3530 = vmatprep.subr.bf16.mxu1 %v7616_v51  ;;  %v7722_v51 = vld [vmem:[%s8220_s19 + $0x4c0] ss:$8 sps:$4 sm:$0xff]  }
 0x27a   : > { %3531 = vmatpush1.bf16.msra.mxu1 %v7614_v52  ;;  %v7727_v52 = vld [vmem:[%s8220_s19 + $0x4d4] ss:$8 sps:$4 sm:$0xff]  }
 0x27b   : > { %3532 = vmatprep.subr.bf16.mxu1 %v7619_v44  ;;  %v6695_v44 = vld [vmem:[%s8230_s6 + $0x4] sm:$0x3] }
 0x27e   : > { %3533 = vmatpush1.bf16.msra.mxu1 %v7617_v53  ;;  %v7725_v53 = vld [vmem:[%s8220_s19 + $0x4d0] ss:$8 sps:$4 sm:$0xff]  }
 0x27f   : > { %3534 = vmatprep.subr.bf16.mxu1 %v7622_v54  ;;  %v3096_v54 = vrot.slane %v6695_v44, %v8413_v6 }
 0x282   : > { %3535 = vmatpush1.bf16.msra.mxu1 %v7620_v55 }
 0x283   : > { %3536 = vmatprep.subr.bf16.mxu1 %v7625_v56  ;;  %v3100_v56 = vrot.slane %v6695_v44, %v8419_v8 }
 0x286   : > { %3537 = vmatpush1.bf16.msra.mxu1 %v7623_v57 }
 0x287   : > { %3538 = vmatprep.subr.bf16.mxu1 %v7628_v58 }
 0x28a   : > { %3539 = vmatpush1.bf16.msra.mxu1 %v7626_v59 }
 0x28b   : > { %3540 = vmatprep.subr.bf16.mxu1 %v7631_v60 }
 0x28e   : > { %3541 = vmatpush1.bf16.msra.mxu1 %v7629_v61 }
 0x28f   : > { %3542 = vmatprep.subr.bf16.mxu1 %v7634_v20  ;;  %v7659_v20 = vld [vmem:[%s8225_s15 + $0x70] ss:$8 sps:$4 sm:$0xff]  }
 0x292   : > { %3543 = vmatpush1.bf16.msra.mxu1 %v7632_v21  ;;  %v7664_v21 = vld [vmem:[%s8225_s15 + $0x84] ss:$8 sps:$4 sm:$0xff]  }
 0x293   : > { %3544 = vmatprep.subr.bf16.mxu1 %v7637_v22  ;;  %v7662_v22 = vld [vmem:[%s8225_s15 + $0x80] ss:$8 sps:$4 sm:$0xff]  }
 0x296   : > { %3545 = vmatpush1.bf16.msra.mxu1 %v7635_v23  ;;  %v7667_v23 = vld [vmem:[%s8225_s15 + $0x94] ss:$8 sps:$4 sm:$0xff]  }
 0x297   : > { %4018 = vmatprep.subr.bf16.mxu1 %v7640_v24  ;;  %v7665_v24 = vld [vmem:[%s8225_s15 + $0x90] ss:$8 sps:$4 sm:$0xff]  }
 0x32c   : > { %v3042_v1 = vpop.f32.mrb[4].mxu1 }
 0x32d   : > { %v3043_v2 = vadd.f32 %v3042_v1, %v2841_v63  ;;  %v3044_v4 = vpop.f32.mrb[5].mxu1 }
 0x32e   : > { %v3045_v5 = vadd.f32 %v3044_v4, %v2845_v0  ;;  %v3046_v9 = vpop.f32.mrb[6].mxu1  ;;  %v7643_v4 = vld [vmem:[%s8225_s15 + $0x14] ss:$8 sps:$4 sm:$0xff]  }
 0x32f   : > { %v3047_v10 = vadd.f32 %v3046_v9, %v2841_v63  ;;  %v3048_v11 = vpop.f32.mrb[7].mxu1  ;;  %v3051_v13 = vmax.f32 %v3043_v2, 0.0  ;;  %v7638_v2 = vld [vmem:[%s8225_s15] ss:$8 sps:$4 sm:$0xff]   ;;  %v7646_v9 = vld [vmem:[%s8225_s15 + $0x24] ss:$8 sps:$4 sm:$0xff]  }
 0x330   : > { %v3049_v12 = vadd.f32 %v3048_v11, %v2845_v0  ;;  %v3052_v15 = vmax.f32 %v3045_v5, 0.0  ;;  %v7641_v5 = vld [vmem:[%s8225_s15 + $0x10] ss:$8 sps:$4 sm:$0xff]   ;;  %v7649_v11 = vld [vmem:[%s8225_s15 + $0x34] ss:$8 sps:$4 sm:$0xff]  }
 0x331   : > { %v3053_v14 = vmax.f32 %v3047_v10, 0.0  ;;  %v7644_v10 = vld [vmem:[%s8225_s15 + $0x20] ss:$8 sps:$4 sm:$0xff]  }
 0x332   : > { %v3054_v7 = vmax.f32 %v3049_v12, 0.0  ;;  %v7647_v12 = vld [vmem:[%s8225_s15 + $0x30] ss:$8 sps:$4 sm:$0xff]  }
 0x333   : > { %v3055_v18 = vpack.c.bf16 %v3053_v14, %v3051_v13  ;;  %v7652_v13 = vld [vmem:[%s8225_s15 + $0x44] ss:$8 sps:$4 sm:$0xff]   ;;  %v7650_v14 = vld [vmem:[%s8225_s15 + $0x40] ss:$8 sps:$4 sm:$0xff]  }
 0x334   : > { %v3056_v19 = vpack.c.bf16 %v3054_v7, %v3052_v15  ;;  %v7653_v15 = vld [vmem:[%s8225_s15 + $0x50] ss:$8 sps:$4 sm:$0xff]   ;;  %v7658_v7 = vld [vmem:[%s8225_s15 + $0x64] ss:$8 sps:$4 sm:$0xff]  }
 0x336   : > { %3295 = vmatprep.mubr.bf16.mxu0 %v3056_v19  ;;  %v7661_v19 = vld [vmem:[%s8225_s15 + $0x74] ss:$8 sps:$4 sm:$0xff]  }
 0x337   : > { %3296 = vmatmul.mubr.bf16.vlgmr.msra.gmra.mrb[8].mxu0 %v3055_v18  ;;  %v7656_v18 = vld [vmem:[%s8225_s15 + $0x60] ss:$8 sps:$4 sm:$0xff]  }
 0x338   : > { %3770 = vmatpush1.bf16.msra.mxu0 %v7686_v25  ;;  %v7670_v25 = vld [vmem:[%s8225_s15 + $0xa4] ss:$8 sps:$4 sm:$0xff]  }
 0x339   : > { %3771 = vmatprep.subr.bf16.mxu0 %v7691_v27  ;;  %v7673_v27 = vld [vmem:[%s8225_s15 + $0xb4] ss:$8 sps:$4 sm:$0xff]  }
 0x33c   : > { %3772 = vmatpush1.bf16.msra.mxu0 %v7689_v28  ;;  %v7671_v28 = vld [vmem:[%s8225_s15 + $0xb0] ss:$8 sps:$4 sm:$0xff]  }
 0x33d   : > { %3773 = vmatprep.subr.bf16.mxu0 %v7694_v29  ;;  %v7676_v29 = vld [vmem:[%s8225_s15 + $0xc4] ss:$8 sps:$4 sm:$0xff]  }
 0x340   : > { %3774 = vmatpush1.bf16.msra.mxu0 %v7692_v30  ;;  %v7674_v30 = vld [vmem:[%s8225_s15 + $0xc0] ss:$8 sps:$4 sm:$0xff]  }
 0x341   : > { %3775 = vmatprep.subr.bf16.mxu0 %v7697_v31  ;;  %v7679_v31 = vld [vmem:[%s8225_s15 + $0xd4] ss:$8 sps:$4 sm:$0xff]  }
 0x344   : > { %3776 = vmatpush1.bf16.msra.mxu0 %v7695_v32  ;;  %v7677_v32 = vld [vmem:[%s8225_s15 + $0xd0] ss:$8 sps:$4 sm:$0xff]  }
 0x345   : > { %3777 = vmatprep.subr.bf16.mxu0 %v7700_v33  ;;  %v7682_v33 = vld [vmem:[%s8225_s15 + $0xe4] ss:$8 sps:$4 sm:$0xff]  }
 0x348   : > { %3778 = vmatpush1.bf16.msra.mxu0 %v7698_v34  ;;  %v7680_v34 = vld [vmem:[%s8225_s15 + $0xe0] ss:$8 sps:$4 sm:$0xff]  }
 0x349   : > { %3779 = vmatprep.subr.bf16.mxu0 %v7703_v35  ;;  %v7685_v35 = vld [vmem:[%s8225_s15 + $0xf4] ss:$8 sps:$4 sm:$0xff]  }
 0x34c   : > { %3780 = vmatpush1.bf16.msra.mxu0 %v7701_v36  ;;  %v7683_v36 = vld [vmem:[%s8225_s15 + $0xf0] ss:$8 sps:$4 sm:$0xff]  }
 0x34d   : > { %3781 = vmatprep.subr.bf16.mxu0 %v7706_v37  ;;  %v7730_v37 = vld [vmem:[%s8220_s19 + $0x4e4] ss:$8 sps:$4 sm:$0xff]  }
 0x350   : > { %3782 = vmatpush1.bf16.msra.mxu0 %v7704_v38  ;;  %v7728_v38 = vld [vmem:[%s8220_s19 + $0x4e0] ss:$8 sps:$4 sm:$0xff]  }
 0x351   : > { %3783 = vmatprep.subr.bf16.mxu0 %v7709_v39  ;;  %v7733_v39 = vld [vmem:[%s8220_s19 + $0x4f4] ss:$8 sps:$4 sm:$0xff]  }
 0x354   : > { %3784 = vmatpush1.bf16.msra.mxu0 %v7707_v40  ;;  %v7731_v40 = vld [vmem:[%s8220_s19 + $0x4f0] ss:$8 sps:$4 sm:$0xff]  }
 0x355   : > { %3785 = vmatprep.subr.bf16.mxu0 %v7712_v41  ;;  %v7736_v41 = vld [vmem:[%s8225_s15 + $0x104] ss:$8 sps:$4 sm:$0xff]  }
 0x358   : > { %3786 = vmatpush1.bf16.msra.mxu0 %v7710_v42  ;;  %v6760_v42 = vld [vmem:[%s8230_s6 + $0x6] sm:$0x3] }
 0x359   : > { %3787 = vmatprep.subr.bf16.mxu0 %v7715_v43  ;;  %v3347_v43 = vrot.slane %v6760_v42, %v8413_v6 }
 0x35c   : > { %3788 = vmatpush1.bf16.msra.mxu0 %v7713_v45  ;;  %v3351_v45 = vrot.slane %v6760_v42, %v8419_v8  ;;  %v7782_v42 = vld [vmem:[%s8225_s15 + $0x200] ss:$8 sps:$4 sm:$0xff]  }
 0x35d   : > { %3789 = vmatprep.subr.bf16.mxu0 %v7718_v46 }
 0x360   : > { %3790 = vmatpush1.bf16.msra.mxu0 %v7716_v47 }
 0x361   : > { %3791 = vmatprep.subr.bf16.mxu0 %v7721_v48 }
 0x364   : > { %3792 = vmatpush1.bf16.msra.mxu0 %v7719_v49 }
 0x365   : > { %3793 = vmatprep.subr.bf16.mxu0 %v7724_v50 }
 0x368   : > { %3794 = vmatpush1.bf16.msra.mxu0 %v7722_v51 }
 0x369   : > { %3795 = vmatprep.subr.bf16.mxu0 %v7727_v52 }
 0x36c   : > { %3796 = vmatpush1.bf16.msra.mxu0 %v7725_v53 }
 0x36d   : > { %3797 = vmatprep.subr.bf16.mxu0 %v7730_v37 }
 0x370   : > { %3798 = vmatpush1.bf16.msra.mxu0 %v7728_v38 }
 0x371   : > { %3799 = vmatprep.subr.bf16.mxu0 %v7733_v39  ;;  %v7779_v39 = vld [vmem:[%s8225_s15 + $0x1f0] ss:$8 sps:$4 sm:$0xff]  }
 0x374   : > { %3800 = vmatpush1.bf16.msra.mxu0 %v7731_v40 }
 0x375   : > { %4269 = vmatprep.subr.bf16.mxu0 %v7736_v41 }
 0x40a   : > { %v3297_v55 = vpop.f32.mrb[8].mxu0 }
 0x40b   : > { %v3299_v57 = vpop.f32.mrb[9].mxu0  ;;  %v3298_v59 = vadd.f32 %v3297_v55, %v3096_v54 }
 0x40c   : > { %v3301_v58 = vpop.f32.mrb[10].mxu0  ;;  %v3300_v62 = vadd.f32 %v3299_v57, %v3100_v56 }
 0x40d   : > { %v3302_v60 = vadd.f32 %v3301_v58, %v3096_v54  ;;  %v3303_v61 = vpop.f32.mrb[11].mxu0  ;;  %v7734_v58 = vld [vmem:[%s8225_s15 + $0x100] ss:$8 sps:$4 sm:$0xff]  }
 0x40e   : > { %v3304_v63 = vadd.f32 %v3303_v61, %v3100_v56  ;;  %v7742_v61 = vld [vmem:[%s8225_s15 + $0x124] ss:$8 sps:$4 sm:$0xff]  }
 0x40f   : > { %v3306_v0 = vpack.c.bf16 %v3302_v60, %v3298_v59  ;;  %v7739_v59 = vld [vmem:[%s8225_s15 + $0x114] ss:$8 sps:$4 sm:$0xff]   ;;  %v7737_v60 = vld [vmem:[%s8225_s15 + $0x110] ss:$8 sps:$4 sm:$0xff]  }
 0x410   : > { %v3307_v1 = vpack.c.bf16 %v3304_v63, %v3300_v62  ;;  %v7740_v62 = vld [vmem:[%s8225_s15 + $0x120] ss:$8 sps:$4 sm:$0xff]   ;;  %v7745_v63 = vld [vmem:[%s8225_s15 + $0x134] ss:$8 sps:$4 sm:$0xff]  }
 0x412   : > { %3546 = vmatprep.mubr.bf16.mxu1 %v3307_v1  ;;  %v7748_v1 = vld [vmem:[%s8225_s15 + $0x144] ss:$8 sps:$4 sm:$0xff]  }
 0x413   : > { %3547 = vmatmul.mubr.bf16.vlgmr.msra.gmra.mrb[8].mxu1 %v3306_v0  ;;  %v7743_v0 = vld [vmem:[%s8225_s15 + $0x130] ss:$8 sps:$4 sm:$0xff]  }
 0x414   : > { %4019 = vmatpush1.bf16.msra.mxu1 %v7638_v2  ;;  %4050 = vmatprep.mubr.bf16.mxu1 %v8466_v17  ;;  %v7655_v17 = vld [vmem:[%s8225_s15 + $0x54] ss:$8 sps:$4 sm:$0xff]   ;;  %v7746_v2 = vld [vmem:[%s8225_s15 + $0x140] ss:$8 sps:$4 sm:$0xff]  }
 0x415   : > { %4020 = vmatprep.subr.bf16.mxu1 %v7643_v4  ;;  %v7751_v4 = vld [vmem:[%s8225_s15 + $0x154] ss:$8 sps:$4 sm:$0xff]  }
 0x418   : > { %4021 = vmatpush1.bf16.msra.mxu1 %v7641_v5  ;;  %v7749_v5 = vld [vmem:[%s8225_s15 + $0x150] ss:$8 sps:$4 sm:$0xff]  }
 0x419   : > { %4022 = vmatprep.subr.bf16.mxu1 %v7646_v9  ;;  %v7754_v9 = vld [vmem:[%s8225_s15 + $0x164] ss:$8 sps:$4 sm:$0xff]  }
 0x41c   : > { %4023 = vmatpush1.bf16.msra.mxu1 %v7644_v10  ;;  %v7752_v10 = vld [vmem:[%s8225_s15 + $0x160] ss:$8 sps:$4 sm:$0xff]  }
 0x41d   : > { %4024 = vmatprep.subr.bf16.mxu1 %v7649_v11  ;;  %v7757_v11 = vld [vmem:[%s8225_s15 + $0x174] ss:$8 sps:$4 sm:$0xff]  }
 0x420   : > { %4025 = vmatpush1.bf16.msra.mxu1 %v7647_v12  ;;  %v7755_v12 = vld [vmem:[%s8225_s15 + $0x170] ss:$8 sps:$4 sm:$0xff]  }
 0x421   : > { %4026 = vmatprep.subr.bf16.mxu1 %v7652_v13  ;;  %v7760_v13 = vld [vmem:[%s8225_s15 + $0x184] ss:$8 sps:$4 sm:$0xff]  }
 0x424   : > { %4027 = vmatpush1.bf16.msra.mxu1 %v7650_v14  ;;  %v7758_v14 = vld [vmem:[%s8225_s15 + $0x180] ss:$8 sps:$4 sm:$0xff]  }
 0x425   : > { %4028 = vmatprep.subr.bf16.mxu1 %v7655_v17  ;;  %v7763_v17 = vld [vmem:[%s8225_s15 + $0x194] ss:$8 sps:$4 sm:$0xff]  }
 0x428   : > { %4029 = vmatpush1.bf16.msra.mxu1 %v7653_v15  ;;  %v7761_v15 = vld [vmem:[%s8225_s15 + $0x190] ss:$8 sps:$4 sm:$0xff]  }
 0x429   : > { %4030 = vmatprep.subr.bf16.mxu1 %v7658_v7  ;;  %v7766_v7 = vld [vmem:[%s8225_s15 + $0x1a4] ss:$8 sps:$4 sm:$0xff]  }
 0x42c   : > { %4031 = vmatpush1.bf16.msra.mxu1 %v7656_v18  ;;  %v7764_v18 = vld [vmem:[%s8225_s15 + $0x1a0] ss:$8 sps:$4 sm:$0xff]  }
 0x42d   : > { %4032 = vmatprep.subr.bf16.mxu1 %v7661_v19  ;;  %v7769_v19 = vld [vmem:[%s8225_s15 + $0x1b4] ss:$8 sps:$4 sm:$0xff]  }
 0x430   : > { %4033 = vmatpush1.bf16.msra.mxu1 %v7659_v20  ;;  %v7767_v20 = vld [vmem:[%s8225_s15 + $0x1b0] ss:$8 sps:$4 sm:$0xff]  }
 0x431   : > { %4034 = vmatprep.subr.bf16.mxu1 %v7664_v21  ;;  %v7772_v21 = vld [vmem:[%s8225_s15 + $0x1c4] ss:$8 sps:$4 sm:$0xff]  }
 0x434   : > { %4035 = vmatpush1.bf16.msra.mxu1 %v7662_v22  ;;  %v7770_v22 = vld [vmem:[%s8225_s15 + $0x1c0] ss:$8 sps:$4 sm:$0xff]  }
 0x435   : > { %4036 = vmatprep.subr.bf16.mxu1 %v7667_v23  ;;  %v7775_v23 = vld [vmem:[%s8225_s15 + $0x1d4] ss:$8 sps:$4 sm:$0xff]  }
 0x438   : > { %4037 = vmatpush1.bf16.msra.mxu1 %v7665_v24  ;;  %v7773_v24 = vld [vmem:[%s8225_s15 + $0x1d0] ss:$8 sps:$4 sm:$0xff]  }
 0x439   : > { %4038 = vmatprep.subr.bf16.mxu1 %v7670_v25  ;;  %v3846_v25 = vld [vmem:[%s8235_s27] sm:$0x3] }
 0x43c   : > { %4039 = vmatpush1.bf16.msra.mxu1 %v7668_v26  ;;  %v7778_v26 = vld [vmem:[%s8225_s15 + $0x1e4] ss:$8 sps:$4 sm:$0xff]  }
 0x43d   : > { %4040 = vmatprep.subr.bf16.mxu1 %v7673_v27  ;;  %v3851_v27 = vrot.slane %v3846_v25, %v8413_v6 }
 0x440   : > { %4041 = vmatpush1.bf16.msra.mxu1 %v7671_v28 }
 0x441   : > { %4042 = vmatprep.subr.bf16.mxu1 %v7676_v29  ;;  %v3855_v29 = vrot.slane %v3846_v25, %v8419_v8  ;;  %v7850_v25 = vld [vmem:[%s8225_s15 + $0x364] ss:$8 sps:$4 sm:$0xff]  }
 0x444   : > { %4043 = vmatpush1.bf16.msra.mxu1 %v7674_v30  ;;  %v7776_v30 = vld [vmem:[%s8225_s15 + $0x1e0] ss:$8 sps:$4 sm:$0xff]  }
 0x445   : > { %4044 = vmatprep.subr.bf16.mxu1 %v7679_v31 }
 0x448   : > { %4045 = vmatpush1.bf16.msra.mxu1 %v7677_v32  ;;  %v7781_v32 = vld [vmem:[%s8225_s15 + $0x1f4] ss:$8 sps:$4 sm:$0xff]  }
 0x449   : > { %4046 = vmatprep.subr.bf16.mxu1 %v7682_v33 }
 0x44c   : > { %4047 = vmatpush1.bf16.msra.mxu1 %v7680_v34 }
 0x44d   : > { %4048 = vmatprep.subr.bf16.mxu1 %v7685_v35 }
 0x450   : > { %4049 = vmatpush1.bf16.msra.mxu1 %v7683_v36 }
 0x453   : > { %4051 = vmatmul.mubr.bf16.vlgmr.msra.gmra.mrb[12].mxu1 %v8464_v16 }
 0x4e6   : > { %v3548_v46 = vpop.f32.mrb[8].mxu1 }
 0x4e7   : > { %v3549_v47 = vadd.f32 %v3548_v46, %v3347_v43  ;;  %v3550_v16 = vpop.f32.mrb[9].mxu1  ;;  %v7785_v46 = vld [vmem:[%s8225_s15 + $0x210] ss:$8 sps:$4 sm:$0xff]  }
 0x4e8   : > { %v3551_v48 = vadd.f32 %v3550_v16, %v3351_v45  ;;  %v3552_v49 = vpop.f32.mrb[10].mxu1  ;;  %v7788_v16 = vld [vmem:[%s8225_s15 + $0x220] ss:$8 sps:$4 sm:$0xff]  }
 0x4e9   : > { %v3553_v50 = vadd.f32 %v3552_v49, %v3347_v43  ;;  %v3554_v51 = vpop.f32.mrb[11].mxu1  ;;  %v3557_v44 = vmax.f32 %v3549_v47, 0.0  ;;  %v7784_v43 = vld [vmem:[%s8225_s15 + $0x204] ss:$8 sps:$4 sm:$0xff]   ;;  %v7791_v49 = vld [vmem:[%s8225_s15 + $0x230] ss:$8 sps:$4 sm:$0xff]  }
 0x4ea   : > { %v3555_v52 = vadd.f32 %v3554_v51, %v3351_v45  ;;  %v3558_v54 = vmax.f32 %v3551_v48, 0.0  ;;  %v7787_v45 = vld [vmem:[%s8225_s15 + $0x214] ss:$8 sps:$4 sm:$0xff]   ;;  %4524 = vmatprep.subr.bf16.mxu1 %v7784_v43  ;;  %v7790_v47 = vld [vmem:[%s8225_s15 + $0x224] ss:$8 sps:$4 sm:$0xff]  }
 0x4eb   : > { %v3559_v53 = vmax.f32 %v3553_v50, 0.0  ;;  %4525 = vmatpush1.bf16.msra.mxu1 %v7782_v42  ;;  %v7793_v48 = vld [vmem:[%s8225_s15 + $0x234] ss:$8 sps:$4 sm:$0xff]   ;;  %v7796_v50 = vld [vmem:[%s8225_s15 + $0x244] ss:$8 sps:$4 sm:$0xff]  }
 0x4ec   : > { %v3560_v55 = vmax.f32 %v3555_v52, 0.0  ;;  %4526 = vmatprep.subr.bf16.mxu1 %v7787_v45  ;;  %v7794_v51 = vld [vmem:[%s8225_s15 + $0x240] ss:$8 sps:$4 sm:$0xff]   ;;  %v7799_v52 = vld [vmem:[%s8225_s15 + $0x254] ss:$8 sps:$4 sm:$0xff]  }
 0x4ed   : > { %v3561_v56 = vpack.c.bf16 %v3559_v53, %v3557_v44  ;;  %v7797_v44 = vld [vmem:[%s8225_s15 + $0x250] ss:$8 sps:$4 sm:$0xff]   ;;  %v7802_v53 = vld [vmem:[%s8225_s15 + $0x264] ss:$8 sps:$4 sm:$0xff]  }
 0x4ee   : > { %v3562_v57 = vpack.c.bf16 %v3560_v55, %v3558_v54  ;;  %v7800_v54 = vld [vmem:[%s8225_s15 + $0x260] ss:$8 sps:$4 sm:$0xff]   ;;  %v7805_v55 = vld [vmem:[%s8225_s15 + $0x274] ss:$8 sps:$4 sm:$0xff]  }
 0x4ef   : > { %4527 = vmatpush1.bf16.msra.mxu1 %v7785_v46 }
 0x4f0   : > { %3801 = vmatprep.mubr.bf16.mxu0 %v3562_v57  ;;  %4528 = vmatprep.subr.bf16.mxu1 %v7790_v47  ;;  %v7808_v57 = vld [vmem:[%s8225_s15 + $0x284] ss:$8 sps:$4 sm:$0xff]  }
 0x4f1   : > { %3802 = vmatmul.mubr.bf16.vlgmr.msra.gmra.mrb[12].mxu0 %v3561_v56  ;;  %v7803_v56 = vld [vmem:[%s8225_s15 + $0x270] ss:$8 sps:$4 sm:$0xff]  }
 0x4f2   : > { %4270 = vmatpush1.bf16.msra.mxu0 %v7734_v58  ;;  %v7806_v58 = vld [vmem:[%s8225_s15 + $0x280] ss:$8 sps:$4 sm:$0xff]  }
 0x4f3   : > { %4271 = vmatprep.subr.bf16.mxu0 %v7739_v59  ;;  %4529 = vmatpush1.bf16.msra.mxu1 %v7788_v16  ;;  %v7811_v59 = vld [vmem:[%s8225_s15 + $0x294] ss:$8 sps:$4 sm:$0xff]  }
 0x4f4   : > { %4530 = vmatprep.subr.bf16.mxu1 %v7793_v48 }
 0x4f6   : > { %4272 = vmatpush1.bf16.msra.mxu0 %v7737_v60  ;;  %v7809_v60 = vld [vmem:[%s8225_s15 + $0x290] ss:$8 sps:$4 sm:$0xff]  }
 0x4f7   : > { %4273 = vmatprep.subr.bf16.mxu0 %v7742_v61  ;;  %4531 = vmatpush1.bf16.msra.mxu1 %v7791_v49  ;;  %v7814_v61 = vld [vmem:[%s8225_s15 + $0x2a4] ss:$8 sps:$4 sm:$0xff]  }
 0x4f8   : > { %4532 = vmatprep.subr.bf16.mxu1 %v7796_v50 }
 0x4fa   : > { %4274 = vmatpush1.bf16.msra.mxu0 %v7740_v62  ;;  %v7812_v62 = vld [vmem:[%s8225_s15 + $0x2a0] ss:$8 sps:$4 sm:$0xff]  }
 0x4fb   : > { %4275 = vmatprep.subr.bf16.mxu0 %v7745_v63  ;;  %4533 = vmatpush1.bf16.msra.mxu1 %v7794_v51  ;;  %v7817_v63 = vld [vmem:[%s8225_s15 + $0x2b4] ss:$8 sps:$4 sm:$0xff]  }
 0x4fc   : > { %4534 = vmatprep.subr.bf16.mxu1 %v7799_v52 }
 0x4fe   : > { %4276 = vmatpush1.bf16.msra.mxu0 %v7743_v0  ;;  %v7815_v0 = vld [vmem:[%s8225_s15 + $0x2b0] ss:$8 sps:$4 sm:$0xff]  }
 0x4ff   : > { %4277 = vmatprep.subr.bf16.mxu0 %v7748_v1  ;;  %4535 = vmatpush1.bf16.msra.mxu1 %v7797_v44  ;;  %v7820_v1 = vld [vmem:[%s8225_s15 + $0x2c4] ss:$8 sps:$4 sm:$0xff]  }
 0x500   : > { %4536 = vmatprep.subr.bf16.mxu1 %v7802_v53  ;;  %v6922_v53 = vld [vmem:[%s8235_s27 + $0x2] sm:$0x3] }
 0x502   : > { %4278 = vmatpush1.bf16.msra.mxu0 %v7746_v2  ;;  %v7818_v2 = vld [vmem:[%s8225_s15 + $0x2c0] ss:$8 sps:$4 sm:$0xff]  }
 0x503   : > { %4279 = vmatprep.subr.bf16.mxu0 %v7751_v4  ;;  %4537 = vmatpush1.bf16.msra.mxu1 %v7800_v54  ;;  %v7823_v4 = vld [vmem:[%s8225_s15 + $0x2d4] ss:$8 sps:$4 sm:$0xff]   ;;  %v4102_v54 = vrot.slane %v6922_v53, %v8413_v6 }
 0x504   : > { %4538 = vmatprep.subr.bf16.mxu1 %v7805_v55  ;;  %v4106_v55 = vrot.slane %v6922_v53, %v8419_v8 }
 0x506   : > { %4280 = vmatpush1.bf16.msra.mxu0 %v7749_v5  ;;  %v7821_v5 = vld [vmem:[%s8225_s15 + $0x2d0] ss:$8 sps:$4 sm:$0xff]  }
 0x507   : > { %4281 = vmatprep.subr.bf16.mxu0 %v7754_v9  ;;  %4539 = vmatpush1.bf16.msra.mxu1 %v7803_v56  ;;  %v7826_v9 = vld [vmem:[%s8225_s15 + $0x2e4] ss:$8 sps:$4 sm:$0xff]  }
 0x508   : > { %4540 = vmatprep.subr.bf16.mxu1 %v7808_v57 }
 0x50a   : > { %4282 = vmatpush1.bf16.msra.mxu0 %v7752_v10  ;;  %v7824_v10 = vld [vmem:[%s8225_s15 + $0x2e0] ss:$8 sps:$4 sm:$0xff]  }
 0x50b   : > { %4283 = vmatprep.subr.bf16.mxu0 %v7757_v11  ;;  %4541 = vmatpush1.bf16.msra.mxu1 %v7806_v58  ;;  %v7829_v11 = vld [vmem:[%s8225_s15 + $0x2f4] ss:$8 sps:$4 sm:$0xff]  }
 0x50c   : > { %4542 = vmatprep.subr.bf16.mxu1 %v7811_v59 }
 0x50e   : > { %4284 = vmatpush1.bf16.msra.mxu0 %v7755_v12  ;;  %v7827_v12 = vld [vmem:[%s8225_s15 + $0x2f0] ss:$8 sps:$4 sm:$0xff]  }
 0x50f   : > { %4285 = vmatprep.subr.bf16.mxu0 %v7760_v13  ;;  %4543 = vmatpush1.bf16.msra.mxu1 %v7809_v60  ;;  %v7830_v13 = vld [vmem:[%s8225_s15 + $0x300] ss:$8 sps:$4 sm:$0xff]  }
 0x510   : > { %4544 = vmatprep.subr.bf16.mxu1 %v7814_v61 }
 0x512   : > { %4286 = vmatpush1.bf16.msra.mxu0 %v7758_v14  ;;  %v7832_v14 = vld [vmem:[%s8225_s15 + $0x304] ss:$8 sps:$4 sm:$0xff]  }
 0x513   : > { %4287 = vmatprep.subr.bf16.mxu0 %v7763_v17  ;;  %4545 = vmatpush1.bf16.msra.mxu1 %v7812_v62  ;;  %v7835_v17 = vld [vmem:[%s8225_s15 + $0x314] ss:$8 sps:$4 sm:$0xff]  }
 0x514   : > { %4546 = vmatprep.subr.bf16.mxu1 %v7817_v63 }
 0x516   : > { %4288 = vmatpush1.bf16.msra.mxu0 %v7761_v15  ;;  %v7833_v15 = vld [vmem:[%s8225_s15 + $0x310] ss:$8 sps:$4 sm:$0xff]  }
 0x517   : > { %4289 = vmatprep.subr.bf16.mxu0 %v7766_v7  ;;  %4547 = vmatpush1.bf16.msra.mxu1 %v7815_v0  ;;  %v7838_v7 = vld [vmem:[%s8225_s15 + $0x324] ss:$8 sps:$4 sm:$0xff]  }
 0x518   : > { %4548 = vmatprep.subr.bf16.mxu1 %v7820_v1 }
 0x51a   : > { %4290 = vmatpush1.bf16.msra.mxu0 %v7764_v18  ;;  %v7836_v18 = vld [vmem:[%s8225_s15 + $0x320] ss:$8 sps:$4 sm:$0xff]  }
 0x51b   : > { %4291 = vmatprep.subr.bf16.mxu0 %v7769_v19  ;;  %4549 = vmatpush1.bf16.msra.mxu1 %v7818_v2  ;;  %v7841_v19 = vld [vmem:[%s8225_s15 + $0x334] ss:$8 sps:$4 sm:$0xff]  }
 0x51c   : > { %4550 = vmatprep.subr.bf16.mxu1 %v7823_v4 }
 0x51e   : > { %4292 = vmatpush1.bf16.msra.mxu0 %v7767_v20  ;;  %v7839_v20 = vld [vmem:[%s8225_s15 + $0x330] ss:$8 sps:$4 sm:$0xff]  }
 0x51f   : > { %4293 = vmatprep.subr.bf16.mxu0 %v7772_v21  ;;  %4551 = vmatpush1.bf16.msra.mxu1 %v7821_v5  ;;  %v7844_v21 = vld [vmem:[%s8225_s15 + $0x344] ss:$8 sps:$4 sm:$0xff]  }
 0x520   : > { %4552 = vmatprep.subr.bf16.mxu1 %v7826_v9 }
 0x522   : > { %4294 = vmatpush1.bf16.msra.mxu0 %v7770_v22  ;;  %v7842_v22 = vld [vmem:[%s8225_s15 + $0x340] ss:$8 sps:$4 sm:$0xff]  }
 0x523   : > { %4295 = vmatprep.subr.bf16.mxu0 %v7775_v23  ;;  %4553 = vmatpush1.bf16.msra.mxu1 %v7824_v10  ;;  %v7847_v23 = vld [vmem:[%s8225_s15 + $0x354] ss:$8 sps:$4 sm:$0xff]   ;;  %v7874_v10 = vld [vmem:[%s8225_s15 + $0x3e4] ss:$8 sps:$4 sm:$0xff]  }
 0x524   : > { %4554 = vmatprep.subr.bf16.mxu1 %v7829_v11  ;;  %v7872_v11 = vld [vmem:[%s8225_s15 + $0x3e0] ss:$8 sps:$4 sm:$0xff]  }
 0x526   : > { %v4052_v28 = vpop.f32.mrb[12].mxu1  ;;  %4296 = vmatpush1.bf16.msra.mxu0 %v7773_v24  ;;  %v7845_v24 = vld [vmem:[%s8225_s15 + $0x350] ss:$8 sps:$4 sm:$0xff]  }
 0x527   : > { %v4054_v31 = vpop.f32.mrb[13].mxu1  ;;  %4297 = vmatprep.subr.bf16.mxu0 %v7778_v26  ;;  %v4053_v34 = vadd.f32 %v4052_v28, %v3851_v27  ;;  %4555 = vmatpush1.bf16.msra.mxu1 %v7827_v12  ;;  %v7848_v26 = vld [vmem:[%s8225_s15 + $0x360] ss:$8 sps:$4 sm:$0xff]   ;;  %v7851_v28 = vld [vmem:[%s8225_s15 + $0x370] ss:$8 sps:$4 sm:$0xff]  }
 0x528   : > { %v4056_v33 = vpop.f32.mrb[14].mxu1  ;;  %v4055_v37 = vadd.f32 %v4054_v31, %v3855_v29  ;;  %v7859_v31 = vld [vmem:[%s8225_s15 + $0x394] ss:$8 sps:$4 sm:$0xff]  }
 0x529   : > { %v4057_v35 = vadd.f32 %v4056_v33, %v3851_v27  ;;  %v4058_v36 = vpop.f32.mrb[15].mxu1  ;;  %v7853_v27 = vld [vmem:[%s8225_s15 + $0x374] ss:$8 sps:$4 sm:$0xff]   ;;  %v7862_v33 = vld [vmem:[%s8225_s15 + $0x3a4] ss:$8 sps:$4 sm:$0xff]  }
 0x52a   : > { %v4059_v38 = vadd.f32 %v4058_v36, %v3855_v29  ;;  %4298 = vmatpush1.bf16.msra.mxu0 %v7776_v30  ;;  %v7856_v29 = vld [vmem:[%s8225_s15 + $0x384] ss:$8 sps:$4 sm:$0xff]   ;;  %v7854_v30 = vld [vmem:[%s8225_s15 + $0x380] ss:$8 sps:$4 sm:$0xff]   ;;  %v7863_v36 = vld [vmem:[%s8225_s15 + $0x3b0] ss:$8 sps:$4 sm:$0xff]  }
 0x52b   : > { %v4061_v40 = vpack.c.bf16 %v4057_v35, %v4053_v34  ;;  %4299 = vmatprep.subr.bf16.mxu0 %v7781_v32  ;;  %v7857_v32 = vld [vmem:[%s8225_s15 + $0x390] ss:$8 sps:$4 sm:$0xff]   ;;  %v7860_v34 = vld [vmem:[%s8225_s15 + $0x3a0] ss:$8 sps:$4 sm:$0xff]   ;;  %v7865_v35 = vld [vmem:[%s8225_s15 + $0x3b4] ss:$8 sps:$4 sm:$0xff]  }
 0x52c   : > { %v4062_v41 = vpack.c.bf16 %v4059_v38, %v4055_v37  ;;  %v7868_v37 = vld [vmem:[%s8225_s15 + $0x3c4] ss:$8 sps:$4 sm:$0xff]   ;;  %v7866_v38 = vld [vmem:[%s8225_s15 + $0x3c0] ss:$8 sps:$4 sm:$0xff]   ;;  %v7877_v12 = vld [vmem:[%s8225_s15 + $0x3f4] ss:$8 sps:$4 sm:$0xff]  }
 0x52e   : > { %4300 = vmatpush1.bf16.msra.mxu0 %v7779_v39  ;;  %4301 = vmatprep.mubr.bf16.mxu0 %v4062_v41  ;;  %v7871_v39 = vld [vmem:[%s8225_s15 + $0x3d4] ss:$8 sps:$4 sm:$0xff]   ;;  %v7869_v41 = vld [vmem:[%s8225_s15 + $0x3d0] ss:$8 sps:$4 sm:$0xff]  }
 0x52f   : > { %4775 = vmatprep.subr.bf16.mxu0 %v7832_v14  ;;  %v7878_v14 = vld [vmem:[%s8225_s15 + $0x400] ss:$8 sps:$4 sm:$0xff]  }
 0x531   : > { %4302 = vmatmul.mubr.bf16.vlgmr.msra.gmra.mrb[16].mxu0 %v4061_v40  ;;  %v6825_v40 = vld [vmem:[%s8230_s6 + $0x8] sm:$0x3] }
 0x532   : > { %4776 = vmatpush1.bf16.msra.mxu0 %v7830_v13  ;;  %v3602_v42 = vrot.slane %v6825_v40, %v8413_v6  ;;  %v3606_v45 = vrot.slane %v6825_v40, %v8419_v8  ;;  %v7875_v13 = vld [vmem:[%s8225_s15 + $0x3f0] ss:$8 sps:$4 sm:$0xff]   ;;  %v7919_v40 = vld [vmem:[%s8225_s15 + $0x4d4] ss:$8 sps:$4 sm:$0xff]  }
 0x533   : > { %4777 = vmatprep.subr.bf16.mxu0 %v7835_v17  ;;  %v7880_v17 = vld [vmem:[%s8225_s15 + $0x404] ss:$8 sps:$4 sm:$0xff]  }
 0x534   : > { %5030 = vmatprep.subr.bf16.mxu1 %v7880_v17 }
 0x536   : > { %4778 = vmatpush1.bf16.msra.mxu0 %v7833_v15  ;;  %v7883_v15 = vld [vmem:[%s8225_s15 + $0x414] ss:$8 sps:$4 sm:$0xff]  }
 0x537   : > { %4779 = vmatprep.subr.bf16.mxu0 %v7838_v7  ;;  %v7881_v7 = vld [vmem:[%s8225_s15 + $0x410] ss:$8 sps:$4 sm:$0xff]  }
 0x53a   : > { %4780 = vmatpush1.bf16.msra.mxu0 %v7836_v18  ;;  %v7886_v18 = vld [vmem:[%s8225_s15 + $0x424] ss:$8 sps:$4 sm:$0xff]  }
 0x53b   : > { %4781 = vmatprep.subr.bf16.mxu0 %v7841_v19  ;;  %v7884_v19 = vld [vmem:[%s8225_s15 + $0x420] ss:$8 sps:$4 sm:$0xff]  }
 0x53e   : > { %4782 = vmatpush1.bf16.msra.mxu0 %v7839_v20  ;;  %v7889_v20 = vld [vmem:[%s8225_s15 + $0x434] ss:$8 sps:$4 sm:$0xff]  }
 0x53f   : > { %4783 = vmatprep.subr.bf16.mxu0 %v7844_v21  ;;  %v7887_v21 = vld [vmem:[%s8225_s15 + $0x430] ss:$8 sps:$4 sm:$0xff]  }
 0x542   : > { %4784 = vmatpush1.bf16.msra.mxu0 %v7842_v22  ;;  %v7892_v22 = vld [vmem:[%s8225_s15 + $0x444] ss:$8 sps:$4 sm:$0xff]  }
 0x543   : > { %4785 = vmatprep.subr.bf16.mxu0 %v7847_v23  ;;  %v7890_v23 = vld [vmem:[%s8225_s15 + $0x440] ss:$8 sps:$4 sm:$0xff]  }
 0x546   : > { %4786 = vmatpush1.bf16.msra.mxu0 %v7845_v24  ;;  %v7895_v24 = vld [vmem:[%s8225_s15 + $0x454] ss:$8 sps:$4 sm:$0xff]  }
 0x547   : > { %4787 = vmatprep.subr.bf16.mxu0 %v7850_v25  ;;  %v7893_v25 = vld [vmem:[%s8225_s15 + $0x450] ss:$8 sps:$4 sm:$0xff]  }
 0x54a   : > { %4788 = vmatpush1.bf16.msra.mxu0 %v7848_v26  ;;  %v7898_v26 = vld [vmem:[%s8225_s15 + $0x464] ss:$8 sps:$4 sm:$0xff]  }
 0x54b   : > { %4789 = vmatprep.subr.bf16.mxu0 %v7853_v27  ;;  %v7896_v27 = vld [vmem:[%s8225_s15 + $0x460] ss:$8 sps:$4 sm:$0xff]  }
 0x54e   : > { %4790 = vmatpush1.bf16.msra.mxu0 %v7851_v28  ;;  %v7901_v28 = vld [vmem:[%s8225_s15 + $0x474] ss:$8 sps:$4 sm:$0xff]  }
 0x54f   : > { %4791 = vmatprep.subr.bf16.mxu0 %v7856_v29  ;;  %v7899_v29 = vld [vmem:[%s8225_s15 + $0x470] ss:$8 sps:$4 sm:$0xff]  }
 0x552   : > { %4792 = vmatpush1.bf16.msra.mxu0 %v7854_v30  ;;  %v7904_v30 = vld [vmem:[%s8225_s15 + $0x484] ss:$8 sps:$4 sm:$0xff]  }
 0x553   : > { %4793 = vmatprep.subr.bf16.mxu0 %v7859_v31  ;;  %v7902_v31 = vld [vmem:[%s8225_s15 + $0x480] ss:$8 sps:$4 sm:$0xff]  }
 0x556   : > { %4794 = vmatpush1.bf16.msra.mxu0 %v7857_v32  ;;  %v7907_v32 = vld [vmem:[%s8225_s15 + $0x494] ss:$8 sps:$4 sm:$0xff]  }
 0x557   : > { %4795 = vmatprep.subr.bf16.mxu0 %v7862_v33  ;;  %v7905_v33 = vld [vmem:[%s8225_s15 + $0x490] ss:$8 sps:$4 sm:$0xff]  }
 0x55a   : > { %4796 = vmatpush1.bf16.msra.mxu0 %v7860_v34  ;;  %v7910_v34 = vld [vmem:[%s8225_s15 + $0x4a4] ss:$8 sps:$4 sm:$0xff]  }
 0x55b   : > { %4797 = vmatprep.subr.bf16.mxu0 %v7865_v35  ;;  %v7908_v35 = vld [vmem:[%s8225_s15 + $0x4a0] ss:$8 sps:$4 sm:$0xff]  }
 0x55e   : > { %4798 = vmatpush1.bf16.msra.mxu0 %v7863_v36  ;;  %v7913_v36 = vld [vmem:[%s8225_s15 + $0x4b4] ss:$8 sps:$4 sm:$0xff]  }
 0x55f   : > { %4799 = vmatprep.subr.bf16.mxu0 %v7868_v37  ;;  %v7911_v37 = vld [vmem:[%s8225_s15 + $0x4b0] ss:$8 sps:$4 sm:$0xff]  }
 0x562   : > { %4800 = vmatpush1.bf16.msra.mxu0 %v7866_v38  ;;  %v7916_v38 = vld [vmem:[%s8225_s15 + $0x4c4] ss:$8 sps:$4 sm:$0xff]  }
 0x563   : > { %4801 = vmatprep.subr.bf16.mxu0 %v7871_v39  ;;  %v7914_v39 = vld [vmem:[%s8225_s15 + $0x4c0] ss:$8 sps:$4 sm:$0xff]  }
 0x566   : > { %4802 = vmatpush1.bf16.msra.mxu0 %v7869_v41  ;;  %v7917_v41 = vld [vmem:[%s8225_s15 + $0x4d0] ss:$8 sps:$4 sm:$0xff]  }
 0x567   : > { %4803 = vmatprep.subr.bf16.mxu0 %v7874_v10  ;;  %v7942_v10 = vld [vmem:[%s8240_s3 + $0x40] sm:$0xff]  }
 0x56a   : > { %4804 = vmatpush1.bf16.msra.mxu0 %v7872_v11  ;;  %v7943_v11 = vld [vmem:[%s8240_s3] sm:$0xff]  }
 0x56b   : > { %4805 = vmatprep.subr.bf16.mxu0 %v7877_v12 }
 0x56e   : > { %4806 = vmatpush1.bf16.msra.mxu0 %v7875_v13 }
 0x56f   : > { %7237 = vmatprep.subr.bf16.mxu0 %v7942_v10  ;;  %v7955_v10 = vld [vmem:[%s8240_s3 + $0x30] sm:$0xff]  }
 0x5c4   : > { %v3803_v43 = vpop.f32.mrb[12].mxu0 }
 0x5c5   : > { %v3805_v46 = vpop.f32.mrb[13].mxu0  ;;  %v8680_v16 = vadd.f32 %v3803_v43, %v3602_v42 }
 0x5c6   : > { %v3807_v47 = vpop.f32.mrb[14].mxu0  ;;  %v8684_v50 = vadd.f32 %v3805_v46, %v3606_v45 }
 0x5c7   : > { %v8682_v48 = vadd.f32 %v3807_v47, %v3602_v42  ;;  %v3809_v49 = vpop.f32.mrb[15].mxu0  ;;  %v6987_v42 = vld [vmem:[%s8235_s27 + $0x4] sm:$0x3] }
 0x5c8   : > { %v8686_v51 = vadd.f32 %v3809_v49, %v3606_v45  ;;  %v4357_v43 = vrot.slane %v6987_v42, %v8413_v6  ;;  %v4361_v46 = vrot.slane %v6987_v42, %v8419_v8 }
 0x5c9   : > { %v5144_v52 = vpack.c.bf16 %v8682_v48, %v8680_v16  ;;  %v7950_v16 = vld [vmem:[%s8240_s3 + $0x60] sm:$0xff]  }
 0x5ca   : > { %v5145_v44 = vpack.c.bf16 %v8686_v51, %v8684_v50  ;;  %v7935_v50 = vld [vmem:[%s8215_s21 + $0x20] sm:$0xff]   ;;  %v7936_v51 = vld [vmem:[%s8215_s21 + $0x68] sm:$0xff]  }
 0x5cb   : > { %v7951_v48 = vld [vmem:[%s8240_s3 + $0x20] sm:$0xff]  }
 0x604   : > { %v4303_v56 = vpop.f32.mrb[16].mxu0 }
 0x605   : > { %v4304_v57 = vadd.f32 %v4303_v56, %v4102_v54  ;;  %v4305_v58 = vpop.f32.mrb[17].mxu0 }
 0x606   : > { %v4306_v59 = vadd.f32 %v4305_v58, %v4106_v55  ;;  %v4307_v60 = vpop.f32.mrb[18].mxu0 }
 0x607   : > { %v4308_v61 = vadd.f32 %v4307_v60, %v4102_v54  ;;  %v4309_v62 = vpop.f32.mrb[19].mxu0  ;;  %v4312_v0 = vmax.f32 %v4304_v57, 0.0  ;;  %v7922_v60 = vld [vmem:[%s8225_s15 + $0x4e4] ss:$8 sps:$4 sm:$0xff]  }
 0x608   : > { %v4310_v63 = vadd.f32 %v4309_v62, %v4106_v55  ;;  %v4313_v2 = vmax.f32 %v4306_v59, 0.0  ;;  %v7925_v62 = vld [vmem:[%s8225_s15 + $0x4f4] ss:$8 sps:$4 sm:$0xff]  }
 0x609   : > { %v4314_v1 = vmax.f32 %v4308_v61, 0.0  ;;  %v7920_v61 = vld [vmem:[%s8225_s15 + $0x4e0] ss:$8 sps:$4 sm:$0xff]  }
 0x60a   : > { %v4315_v4 = vmax.f32 %v4310_v63, 0.0  ;;  %v7923_v63 = vld [vmem:[%s8225_s15 + $0x4f0] ss:$8 sps:$4 sm:$0xff]  }
 0x60b   : > { %v4316_v5 = vpack.c.bf16 %v4314_v1, %v4312_v0  ;;  %v7926_v0 = vld [vmem:[%s8215_s21 + $0x40] sm:$0xff]  }
 0x60c   : > { %v4317_v9 = vpack.c.bf16 %v4315_v4, %v4313_v2  ;;  %v8735_v1 = vld [vmem:[#allocation3] sm:$0xff]  ;;  %v8737_v2 = vld [vmem:[#allocation3 + $0x8] sm:$0xff]  ;;  %v8027_v4 = vmov 0  }
 0x60d   : > { %7348 = vset.pattern.permute.xlu0 %v8027_v4  ;;  %7349 = vset.pattern.permute.xlu1 %v8027_v4  ;;  %v7949_v4 = vld [vmem:[%s8240_s3 + $0x18] sm:$0xff]  }
 0x60e   : > { %4556 = vmatprep.mubr.bf16.mxu1 %v4317_v9  ;;  %v5119_v9 = vsel %vm5111_vm1, %v8737_v2, 0.0  ;;  %5075 = vperm.xlu0 %7348, %v8735_v1  }
 0x60f   : > { %4557 = vmatmul.mubr.bf16.vlgmr.msra.gmra.mrb[16].mxu1 %v4316_v5  ;;  %v5112_v5 = vsel %vm5111_vm1, %v8735_v1, 0.0  ;;  %v5120_v13 = vrot.slane %v5119_v9, 4 }
 0x610   : > { %5031 = vmatpush1.bf16.msra.mxu1 %v7878_v14  ;;  %v5113_v12 = vrot.slane %v5112_v5, 4 }
 0x611   : > { %5032 = vmatprep.subr.bf16.mxu1 %v7883_v15  ;;  %v5121_v17 = vadd.f32 %v5120_v13, %v5119_v9  ;;  %v7954_v9 = vld [vmem:[%s8240_s3 + $0x70] sm:$0xff]   ;;  %v8028_v13 = vmov 0.0  }
 0x612   : > { %v5114_v14 = vadd.f32 %v5113_v12, %v5112_v5  ;;  %5080 = vperm.xlu0 %7348, %v8737_v2   ;;  %v7953_v5 = vld [vmem:[%s8240_s3 + $0x28] sm:$0xff]   ;;  %v7957_v12 = vld [vmem:[%s8240_s3 + $0x38] sm:$0xff]  }
 0x614   : > { %5033 = vmatpush1.bf16.msra.mxu1 %v7881_v7  ;;  %v5115_v15 = vrot.slane %v5114_v14, 2  ;;  %v5122_v7 = vrot.slane %v5121_v17, 2 }
 0x615   : > { %5034 = vmatprep.subr.bf16.mxu1 %v7886_v18 }
 0x616   : > { %v5116_v18 = vadd.f32 %v5115_v15, %v5114_v14  ;;  %v7117_v14 = vld [vmem:[%s8235_s27 + $0x8] sm:$0x3] }
 0x618   : > { %5035 = vmatpush1.bf16.msra.mxu1 %v7884_v19  ;;  %v5123_v19 = vadd.f32 %v5122_v7, %v5121_v17  ;;  %v4863_v17 = vrot.slane %v7117_v14, %v8413_v6  ;;  %v4867_v7 = vrot.slane %v7117_v14, %v8419_v8 }
 0x619   : > { %5036 = vmatprep.subr.bf16.mxu1 %v7889_v20  ;;  %v5117_v20 = vrot.slane %v5116_v18, 1 }
 0x61c   : > { %5037 = vmatpush1.bf16.msra.mxu1 %v7887_v21  ;;  %v5124_v21 = vrot.slane %v5123_v19, 1 }
 0x61d   : > { %5038 = vmatprep.subr.bf16.mxu1 %v7892_v22  ;;  %v5118_v22 = vadd.f32 %v5117_v20, %v5116_v18 }
 0x620   : > { %5039 = vmatpush1.bf16.msra.mxu1 %v7890_v23  ;;  %v5125_v23 = vadd.f32 %v5124_v21, %v5123_v19 }
 0x621   : > { %5040 = vmatprep.subr.bf16.mxu1 %v7895_v24  ;;  %v5126_v24 = vmax.f32 %v5118_v22, 1e-06 }
 0x623   : > { %5130 = vperm.xlu1 %7349, %v5126_v24  }
 0x624   : > { %5041 = vmatpush1.bf16.msra.mxu1 %v7893_v25  ;;  %v5127_v25 = vmax.f32 %v5125_v23, 1e-06 }
 0x625   : > { %5042 = vmatprep.subr.bf16.mxu1 %v7898_v26  ;;  %v7052_v26 = vld [vmem:[%s8235_s27 + $0x6] sm:$0x3] }
 0x627   : > { %5135 = vperm.xlu1 %7349, %v5127_v25  }
 0x628   : > { %5043 = vmatpush1.bf16.msra.mxu1 %v7896_v27  ;;  %v4608_v27 = vrot.slane %v7052_v26, %v8413_v6 }
 0x629   : > { %5044 = vmatprep.subr.bf16.mxu1 %v7901_v28  ;;  %v4612_v28 = vrot.slane %v7052_v26, %v8419_v8 }
 0x62c   : > { %5045 = vmatpush1.bf16.msra.mxu1 %v7899_v29 }
 0x62d   : > { %5046 = vmatprep.subr.bf16.mxu1 %v7904_v30 }
 0x630   : > { %5047 = vmatpush1.bf16.msra.mxu1 %v7902_v31 }
 0x631   : > { %5048 = vmatprep.subr.bf16.mxu1 %v7907_v32 }
 0x634   : > { %5049 = vmatpush1.bf16.msra.mxu1 %v7905_v33 }
 0x635   : > { %5050 = vmatprep.subr.bf16.mxu1 %v7910_v34 }
 0x638   : > { %5051 = vmatpush1.bf16.msra.mxu1 %v7908_v35 }
 0x639   : > { %5052 = vmatprep.subr.bf16.mxu1 %v7913_v36 }
 0x63c   : > { %5053 = vmatpush1.bf16.msra.mxu1 %v7911_v37 }
 0x63d   : > { %5054 = vmatprep.subr.bf16.mxu1 %v7916_v38 }
 0x640   : > { %5055 = vmatpush1.bf16.msra.mxu1 %v7914_v39 }
 0x641   : > { %5056 = vmatprep.subr.bf16.mxu1 %v7919_v40 }
 0x644   : > { %5057 = vmatpush1.bf16.msra.mxu1 %v7917_v41 }
 0x645   : > { %5058 = vmatprep.subr.bf16.mxu1 %v7922_v60  ;;  %v7944_v60 = vld [vmem:[%s8240_s3 + $0x48] sm:$0xff]  }
 0x648   : > { %5059 = vmatpush1.bf16.msra.mxu1 %v7920_v61  ;;  %v7945_v61 = vld [vmem:[%s8240_s3 + $0x8] sm:$0xff]  }
 0x649   : > { %5060 = vmatprep.subr.bf16.mxu1 %v7925_v62  ;;  %v7946_v62 = vld [vmem:[%s8240_s3 + $0x50] sm:$0xff]  }
 0x64c   : > { %5061 = vmatpush1.bf16.msra.mxu1 %v7923_v63  ;;  %v7947_v63 = vld [vmem:[%s8240_s3 + $0x10] sm:$0xff]  }
 0x64d   : > { %7259 = vmatprep.subr.bf16.mxu1 %v7926_v0  ;;  %v7948_v0 = vld [vmem:[%s8240_s3 + $0x58] sm:$0xff]  }
 0x68d   : > { %v5076_v15 = vpop.permute.xlu0 %5075 }
 0x6a2   : > { %v5131_v18 = vpop.permute.xlu1 %5130 }
 0x6a3   : > { %7966 = vrcp.f32 %v5131_v18 }
 0x6e2   : > { %v4558_v45 = vpop.f32.mrb[16].mxu1 }
 0x6e3   : > { %v4560_v47 = vpop.f32.mrb[17].mxu1  ;;  %v4559_v53 = vadd.f32 %v4558_v45, %v4357_v43  ;;  %v7928_v45 = vld [vmem:[%s8215_s21 + $0x48] sm:$0xff]  }
 0x6e4   : > { %v4562_v49 = vpop.f32.mrb[18].mxu1  ;;  %v4561_v56 = vadd.f32 %v4560_v47, %v4361_v46  ;;  %v7930_v47 = vld [vmem:[%s8215_s21 + $0x50] sm:$0xff]  }
 0x6e5   : > { %v4563_v54 = vadd.f32 %v4562_v49, %v4357_v43  ;;  %v4564_v55 = vpop.f32.mrb[19].mxu1  ;;  %v7927_v43 = vld [vmem:[%s8215_s21] sm:$0xff]   ;;  %v7931_v49 = vld [vmem:[%s8215_s21 + $0x10] sm:$0xff]  }
 0x6e6   : > { %v4565_v57 = vadd.f32 %v4564_v55, %v4361_v46  ;;  %v7929_v46 = vld [vmem:[%s8215_s21 + $0x8] sm:$0xff]   ;;  %v7934_v55 = vld [vmem:[%s8215_s21 + $0x60] sm:$0xff]  }
 0x6e7   : > { %v4567_v58 = vpack.c.bf16 %v4563_v54, %v4559_v53  ;;  %v7932_v53 = vld [vmem:[%s8215_s21 + $0x58] sm:$0xff]  }
 0x6e8   : > { %v4568_v59 = vpack.c.bf16 %v4565_v57, %v4561_v56  ;;  %v7933_v54 = vld [vmem:[%s8215_s21 + $0x18] sm:$0xff]   ;;  %v7938_v56 = vld [vmem:[%s8215_s21 + $0x70] sm:$0xff]  }
 0x6e9   : > { %v7939_v57 = vld [vmem:[%s8215_s21 + $0x30] sm:$0xff]  }
 0x6ea   : > { %4807 = vmatprep.mubr.bf16.mxu0 %v4568_v59  ;;  %v7941_v59 = vld [vmem:[%s8215_s21 + $0x38] sm:$0xff]  }
 0x6eb   : > { %4808 = vmatmul.mubr.bf16.vlgmr.msra.gmra.mrb[20].mxu0 %v4567_v58  ;;  %v7940_v58 = vld [vmem:[%s8215_s21 + $0x78] sm:$0xff]  }
 0x6ec   : > { %7238 = vmatpush3.bf16.msra.mxu0 %v7943_v11  ;;  %v7956_v11 = vld [vmem:[%s8240_s3 + $0x78] sm:$0xff]  }
 0x6ed   : > { %7239 = vmatprep.subr.bf16.mxu0 %v7944_v60 }
 0x6f0   : > { %7240 = vmatpush3.bf16.msra.mxu0 %v7945_v61 }
 0x6f1   : > { %7241 = vmatprep.subr.bf16.mxu0 %v7946_v62 }
 0x6f4   : > { %7242 = vmatpush3.bf16.msra.mxu0 %v7947_v63 }
 0x6f5   : > { %7243 = vmatprep.subr.bf16.mxu0 %v7948_v0 }
 0x6f8   : > { %7244 = vmatpush3.bf16.msra.mxu0 %v7949_v4 }
 0x6f9   : > { %7245 = vmatprep.subr.bf16.mxu0 %v7950_v16 }
 0x6fc   : > { %7246 = vmatpush3.bf16.msra.mxu0 %v7951_v48 }
 0x7be   : > { %v4809_v29 = vpop.f32.mrb[20].mxu0 }
 0x7bf   : > { %v4810_v30 = vadd.f32 %v4809_v29, %v4608_v27  ;;  %v4811_v31 = vpop.f32.mrb[21].mxu0 }
 0x7c0   : > { %v4812_v32 = vadd.f32 %v4811_v31, %v4612_v28  ;;  %v4813_v33 = vpop.f32.mrb[22].mxu0 }
 0x7c1   : > { %v4814_v34 = vadd.f32 %v4813_v33, %v4608_v27  ;;  %v4815_v35 = vpop.f32.mrb[23].mxu0  ;;  %v4818_v37 = vmax.f32 %v4810_v30, 0.0  ;;  %v5081_v27 = vpop.permute.xlu0 %5080 }
 0x7c2   : > { %v4816_v36 = vadd.f32 %v4815_v35, %v4612_v28  ;;  %v4819_v39 = vmax.f32 %v4812_v32, 0.0  ;;  %v5136_v32 = vpop.permute.xlu1 %5135 }
 0x7c3   : > { %v4820_v38 = vmax.f32 %v4814_v34, 0.0  ;;  %7968 = vrcp.f32 %v5136_v32 }
 0x7c4   : > { %v4821_v40 = vmax.f32 %v4816_v36, 0.0 }
 0x7c5   : > { %v4822_v41 = vpack.c.bf16 %v4820_v38, %v4818_v37 }
 0x7c6   : > { %v4823_v42 = vpack.c.bf16 %v4821_v40, %v4819_v39 }
 0x7c8   : > { %5062 = vmatprep.mubr.bf16.mxu1 %v4823_v42 }
 0x7c9   : > { %5063 = vmatmul.mubr.bf16.vlgmr.msra.gmra.mrb[20].mxu1 %v4822_v41 }
 0x7ca   : > { %7260 = vmatpush3.bf16.msra.mxu1 %v7927_v43  ;;  %5526 = vmatprep.mubr.bf16.mxu1 %v5145_v44  ;;  %v7937_v44 = vld [vmem:[%s8215_s21 + $0x28] sm:$0xff]  }
 0x7cb   : > { %7261 = vmatprep.subr.bf16.mxu1 %v7928_v45 }
 0x7ce   : > { %7262 = vmatpush3.bf16.msra.mxu1 %v7929_v46 }
 0x7cf   : > { %7263 = vmatprep.subr.bf16.mxu1 %v7930_v47 }
 0x7d2   : > { %7264 = vmatpush3.bf16.msra.mxu1 %v7931_v49 }
 0x7d3   : > { %7265 = vmatprep.subr.bf16.mxu1 %v7932_v53  ;;  %v7967_v53 = vpop.eup %7966 }
 0x7d6   : > { %7266 = vmatpush3.bf16.msra.mxu1 %v7933_v54 }
 0x7d7   : > { %7267 = vmatprep.subr.bf16.mxu1 %v7934_v55 }
 0x7da   : > { %7268 = vmatpush3.bf16.msra.mxu1 %v7935_v50 }
 0x7db   : > { %7269 = vmatprep.subr.bf16.mxu1 %v7936_v51 }
 0x7de   : > { %7270 = vmatpush3.bf16.msra.mxu1 %v7937_v44 }
 0x7df   : > { %7271 = vmatprep.subr.bf16.mxu1 %v7938_v56 }
 0x7e2   : > { %7272 = vmatpush3.bf16.msra.mxu1 %v7939_v57 }
 0x7e3   : > { %7273 = vmatprep.subr.bf16.mxu1 %v7940_v58 }
 0x7e6   : > { %7274 = vmatpush3.bf16.msra.mxu1 %v7941_v59  ;;  %v7969_v59 = vpop.eup %7968 }
 0x7e9   : > { %5527 = vmatmul.mubr.bf16.vlgmr.msra.gmra.mrb[24].mxu1 %v5144_v52  ;;  %v7952_v52 = vld [vmem:[%s8240_s3 + $0x68] sm:$0xff]   ;;  %s9023_s3 = sld [smem:[#allocation9_spill]] }
 0x7ea   : > { %7247 = vmatprep.subr.bf16.mxu0 %v7952_v52 }
 0x7eb   : > { %7248 = vmatpush3.bf16.msra.mxu0 %v7953_v5 }
 0x7ec   : > { %7249 = vmatprep.subr.bf16.mxu0 %v7954_v9 }
 0x7ef   : > { %7250 = vmatpush3.bf16.msra.mxu0 %v7955_v10 }
 0x7f0   : > { %7251 = vmatprep.subr.bf16.mxu0 %v7956_v11 }
 0x7f3   : > { %7252 = vmatpush3.bf16.msra.mxu0 %v7957_v12 }
 0x7f4   : > { %7312 = vmatprep.subr.bf16.mxu0 %v8028_v13 }
 0x89c   : > { %v5064_v19 = vpop.f32.mrb[20].mxu1 }
 0x89d   : > { %v5065_v20 = vadd.f32 %v5064_v19, %v4863_v17  ;;  %v5066_v21 = vpop.f32.mrb[21].mxu1 }
 0x89e   : > { %v5067_v22 = vadd.f32 %v5066_v21, %v4867_v7  ;;  %v5068_v23 = vpop.f32.mrb[22].mxu1 }
 0x89f   : > { %v5083_v24 = vmul.f32 %v5076_v15, %v5065_v20  ;;  %v5069_v25 = vadd.f32 %v5068_v23, %v4863_v17  ;;  %v5070_v26 = vpop.f32.mrb[23].mxu1  ;;  %v7958_v17 = vld [vmem:[%s8254_s8] sm:$0xff]   ;;  %v7960_v23 = vld [vmem:[%s8254_s8 + $0x10] sm:$0xff]  }
 0x8a0   : > { %v5084_v28 = vmul.f32 %v5076_v15, %v5067_v22  ;;  %v5071_v29 = vadd.f32 %v5070_v26, %v4867_v7  ;;  %v7959_v7 = vld [vmem:[%s8254_s8 + $0x8] sm:$0xff]   ;;  %v7962_v26 = vld [vmem:[%s8254_s8 + $0x20] sm:$0xff]  }
 0x8a1   : > { %v5087_v30 = vrot.slane %v5083_v24, 4  ;;  %v5085_v31 = vmul.f32 %v5081_v27, %v5069_v25  ;;  %v7961_v25 = vld [vmem:[%s8254_s8 + $0x18] sm:$0xff]  }
 0x8a2   : > { %v5093_v33 = vrot.slane %v5084_v28, 4  ;;  %v5086_v34 = vmul.f32 %v5081_v27, %v5071_v29  ;;  %v7963_v27 = vld [vmem:[%s8254_s8 + $0x28] sm:$0xff]   ;;  %v7965_v29 = vld [vmem:[%s8254_s8 + $0x38] sm:$0xff]  }
 0x8a3   : > { %v5088_v35 = vadd.f32 %v5087_v30, %v5083_v24  ;;  %v5099_v8 = vrot.slane %v5085_v31, 4  ;;  %v8030_v30 = vmov 1966171168  }
 0x8a4   : > { %v5094_v36 = vadd.f32 %v5093_v33, %v5084_v28  ;;  %v5105_v37 = vrot.slane %v5086_v34, 4  ;;  %v7964_v28 = vld [vmem:[%s8254_s8 + $0x30] sm:$0xff]  }
 0x8a5   : > { %v5089_v38 = vrot.slane %v5088_v35, 2  ;;  %v5100_v39 = vadd.f32 %v5099_v8, %v5085_v31  ;;  %v5367_v31 = vunpack.c.l.s4 %v8030_v30 }
 0x8a6   : > { %v5095_v40 = vrot.slane %v5094_v36, 2  ;;  %v5106_v41 = vadd.f32 %v5105_v37, %v5086_v34 }
 0x8a7   : > { %v5090_v42 = vadd.f32 %v5089_v38, %v5088_v35  ;;  %v5101_v43 = vrot.slane %v5100_v39, 2  ;;  %v5368_v32 = vunpack.c.0.s8 %v5367_v31 }
 0x8a8   : > { %v5096_v45 = vadd.f32 %v5095_v40, %v5094_v36  ;;  %v5107_v46 = vrot.slane %v5106_v41, 2 }
 0x8a9   : > { %v5091_v47 = vrot.slane %v5090_v42, 1  ;;  %v5102_v49 = vadd.f32 %v5101_v43, %v5100_v39  ;;  %v5371_v34 = vsub.s32 %v5368_v32, %v8408_v3  ;;  %v7182_v43 = vld [vmem:[%s9021_s30] ss:$0 sm:$0xff] }
 0x8aa   : > { %v5097_v54 = vrot.slane %v5096_v45, 1  ;;  %v5108_v55 = vadd.f32 %v5107_v46, %v5106_v41 }
 0x8ab   : > { %v5092_v50 = vadd.f32 %v5091_v47, %v5090_v42  ;;  %v5103_v51 = vrot.slane %v5102_v49, 1 }
 0x8ac   : > { %v5098_v44 = vadd.f32 %v5097_v54, %v5096_v45  ;;  %v5109_v56 = vrot.slane %v5108_v55, 1 }
 0x8ad   : > { %v5139_v57 = vmul.f32 %v7967_v53, %v5092_v50  ;;  %v5104_v58 = vadd.f32 %v5103_v51, %v5102_v49  ;;  %v7183_v50 = vld [vmem:[%s1937_s18] ss:$0 sm:$0xff] }
 0x8ae   : > { %v5110_v60 = vadd.f32 %v5109_v56, %v5108_v55  ;;  %v5140_v61 = vmul.f32 %v7967_v53, %v5098_v44 }
 0x8af   : > { %v5178_v62 = vpack.c.bf16 %v5139_v57, %v5139_v57  ;;  %v5142_v63 = vmul.f32 %v7969_v59, %v5104_v58 }
 0x8b0   : > { %v5143_v0 = vmul.f32 %v7969_v59, %v5110_v60  ;;  %v5179_v4 = vpack.c.bf16 %v5140_v61, %v5140_v61 }
 0x8b1   : > { %v5180_v16 = vpack.c.bf16 %v5142_v63, %v5142_v63  ;;  %v5218_v52 = vunpack.c.l.b16 %v5178_v62 }
 0x8b2   : > { %v5181_v48 = vpack.c.bf16 %v5143_v0, %v5143_v0  ;;  %v5219_v9 = vunpack.c.l.b16 %v5179_v4 }
 0x8b3   : > { %v5220_v5 = vunpack.c.l.b16 %v5180_v16  ;;  %v7193_v16 = vld [vmem:[%s1983_s22] ss:$0 sm:$0xff] }
 0x8b4   : > { %v5221_v10 = vunpack.c.l.b16 %v5181_v48  ;;  %v5686_v48 = vld [vmem:[%s9023_s3] sm:$0xff] }
 0x8b5   : > { %v5223_v11 = vsel %vm5222_vm2, %v5220_v5, %v5218_v52 }
 0x8b6   : > { %v5224_v12 = vsel %vm5222_vm2, %v5221_v10, %v5219_v9  ;;  %v5225_v15 = vpack.c.b16 %v5223_v11, %v5223_v11  ;;  %v5687_v9 = vld [vmem:[%s9023_s3 + $0x8] sm:$0xff] }
 0x8b7   : > { %v5226_v14 = vpack.c.b16 %v5224_v12, %v5224_v12 }
 0x8b9   : > { %5357 = vmatprep.mubr.bf16.mxu0 %v5226_v14 }
 0x8ba   : > { %5358 = vmatmul.mubr.bf16.vlgmr.msra.gmra.mrb[24].mxu0 %v5225_v15 }
 0x8bb   : > { %7313 = vmatpush3.bf16.msra.mxu0 %v7958_v17  ;;  %7328 = vmatprep.mubr.msk.bf16.mxu0 %vm8029_vm3, %v8028_v13 }
 0x8bc   : > { %v7275_v18 = vpop.f32.mrb[24].mxu1  ;;  %7314 = vmatprep.subr.bf16.mxu0 %v8028_v13 }
 0x8bd   : > { %v7276_v19 = vpop.f32.mrb[25].mxu1 }
 0x8be   : > { %v7277_v20 = vadd.f32 %v7276_v19, %v7275_v18  ;;  %v7278_v21 = vpop.f32.mrb[26].mxu1 }
 0x8bf   : > { %v7279_v22 = vpop.f32.mrb[27].mxu1  ;;  %7315 = vmatpush3.bf16.msra.mxu0 %v7959_v7 }
 0x8c0   : > { %v7280_v24 = vadd.f32 %v7279_v22, %v7278_v21  ;;  %7316 = vmatprep.subr.bf16.mxu0 %v8028_v13  ;;  %v7971_v22 = vld [vmem:[#allocation2 + $0x8] sm:$0xff] }
 0x8c3   : > { %7317 = vmatpush3.bf16.msra.mxu0 %v7960_v23 }
 0x8c4   : > { %7318 = vmatprep.subr.bf16.mxu0 %v8028_v13 }
 0x8c7   : > { %7319 = vmatpush3.bf16.msra.mxu0 %v7961_v25  ;;  %v7973_v25 = vld [vmem:[#allocation2 + $0x18] sm:$0xff] }
 0x8c8   : > { %7320 = vmatprep.subr.bf16.mxu0 %v8028_v13 }
 0x8cb   : > { %7321 = vmatpush3.bf16.msra.mxu0 %v7962_v26 }
 0x8cc   : > { %7322 = vmatprep.subr.bf16.mxu0 %v8028_v13 }
 0x8cf   : > { %7323 = vmatpush3.bf16.msra.mxu0 %v7963_v27 }
 0x8d0   : > { %7324 = vmatprep.subr.bf16.mxu0 %v8028_v13 }
 0x8d3   : > { %7325 = vmatpush3.bf16.msra.mxu0 %v7964_v28 }
 0x8d4   : > { %7326 = vmatprep.subr.bf16.mxu0 %v8028_v13 }
 0x8d7   : > { %7327 = vmatpush3.bf16.msra.mxu0 %v7965_v29 }
 0x98d   : > { %v7253_v33 = vpop.f32.mrb[24].mxu0 }
 0x98e   : > { %v7254_v35 = vpop.f32.mrb[25].mxu0 }
 0x98f   : > { %v7255_v8 = vadd.f32 %v7254_v35, %v7253_v33  ;;  %v7256_v36 = vpop.f32.mrb[26].mxu0 }
 0x990   : > { %v7257_v37 = vpop.f32.mrb[27].mxu0 }
 0x991   : > { %v5372_v38 = vrot.slane %v7255_v8, %v5371_v34 }
 0x993   : > { %v5373_v39 = vcombine.high %v5372_v38, %v5372_v38  ;;  %v5380_v40 = vrot.slane %v5372_v38, %v5371_v34 }
 0x995   : > { %v5387_v41 = vrot.slane %v5373_v39, %v5371_v34  ;;  %v5391_v42 = vrot.slane %v5380_v40, %v8413_v6 }
 0x997   : > { %v5395_v45 = vrot.slane %v5387_v41, %v8413_v6  ;;  %v5529_v3 = vadd.f32 %v7277_v20, %v5391_v42  ;;  %v7192_v6 = vld [vmem:[%s1960_s7] ss:$0 sm:$0xff] }
 0x998   : > { %v7970_v20 = vld [vmem:[#allocation2] sm:$0xff] }
 0x999   : > { %v5532_v46 = vadd.f32 %v7280_v24, %v5395_v45  ;;  %v5542_v47 = vadd.f32 %v7182_v43, %v5529_v3 }
 0x99b   : > { %v5543_v49 = vadd.f32 %v7182_v43, %v5532_v46  ;;  %v5544_v53 = vmax.f32 %v5542_v47, 0.0 }
 0x99d   : > { %v5545_v54 = vmax.f32 %v5543_v49, 0.0 }
 0x99f   : > { %v5546_v55 = vpack.c.bf16 %v5545_v54, %v5544_v53 }
 0x9a1   : > { %7329 = vmatmul.mubr.bf16.vlgmr.msra.gmra.mrb[28].mxu0 %v5546_v55 }
 0xa74   : > { %v5652_v51 = vpop.f32.mrb[28].mxu0 }
 0xa75   : > { %v5653_v44 = vadd.f32 %v7183_v50, %v5652_v51  ;;  %v7330_v56 = vpop.f32.mrb[29].mxu0 }
 0xa76   : > { %v5655_v57 = vpop.f32.mrb[30].mxu0 }
 0xa77   : > { %v5659_v58 = vmax.f32 %v5653_v44, 0.0  ;;  %v5656_v59 = vadd.f32 %v7183_v50, %v5655_v57  ;;  %v7331_v60 = vpop.f32.mrb[31].mxu0 }
 0xa79   : > { %v5660_v61 = vmax.f32 %v5656_v59, 0.0  ;;  %v5668_v62 = vmul.f32 %v7192_v6, %v5659_v58 }
 0xa7b   : > { %v5671_v63 = vsel %vm5670_vm4, %v5668_v62, 0.0  ;;  %v5669_v0 = vmul.f32 %v7192_v6, %v5660_v61 }
 0xa7c   : > { %5672 = vadd.xlane.f32.xlu0 %v5671_v63 }
 0xa7d   : > { %v5674_v4 = vsel %vm5670_vm4, %v5669_v0, 0.0 }
 0xa7e   : > { %5675 = vadd.xlane.f32.xlu1 %v5674_v4 }
 0xb09   : > { %v5673_v52 = vpop.xlane.xlu0 %5672 }
 0xb0a   : > { %v5684_v5 = vadd.f32 %v7193_v16, %v5673_v52 }
 0xb0b   : > { %v5676_v10 = vpop.xlane.xlu1 %5675 }
 0xb0c   : > { %v5688_v11 = vadd.f32 %v5686_v48, %v5684_v5  ;;  %v5685_v12 = vadd.f32 %v7193_v16, %v5676_v10 }
 0xb0e   : > { %vm5690_vm5 = vcmp.ge.f32.partialorder %v5688_v11, 0.0  ;;  %v5689_v14 = vadd.f32 %v5687_v9, %v5685_v12 }
 0xb0f   : > { %v5692_v17 = vsel %vm5690_vm5, 1.0, %v8028_v13 }
 0xb10   : > { %vm5691_vm6 = vcmp.ge.f32.partialorder %v5689_v14, 0.0  ;;  %v5694_v15 = vmul.f32 %v5692_v17, %v8735_v1 }
 0xb11   : > { %v5693_v7 = vsel %vm5691_vm6, 1.0, %v8028_v13  ;;  %v7972_v13 = vld [vmem:[#allocation2 + $0x10] sm:$0xff] }
 0xb12   : > { %5702 = vperm.xlu0 %7348, %v5694_v15   ;;  %5696 = vst.msk [vmem:[%s8267_s1] sm:$0xff] %vm5111_vm1, %v5694_v15  ;;  %5698 = vst.msk [vmem:[#allocation3] sm:$0xff] %vm5111_vm1, %v5694_v15  ;;  %v5695_v18 = vmul.f32 %v5693_v7, %v8737_v2 }
 0xb14   : > { %5707 = vperm.xlu1 %7349, %v5695_v18   ;;  %5697 = vst.msk [vmem:[%s8267_s1 + $0x8] sm:$0xff] %vm5111_vm1, %v5695_v18  ;;  %5699 = vst.msk [vmem:[#allocation3 + $0x8] sm:$0xff] %vm5111_vm1, %v5695_v18 }
 0xb91   : > { %v5703_v19 = vpop.permute.xlu0 %5702 }
 0xb92   : > { %v5710_v21 = vmul.f32 %v7970_v20, %v5703_v19  ;;  %v5711_v23 = vmul.f32 %v7971_v22, %v5703_v19 }
 0xb93   : > { %v5708_v1 = vpop.permute.xlu1 %5707 }
 0xb94   : > { %5714 = vst [vmem:[#allocation2] sm:$0xff] %v5710_v21  ;;  %5715 = vst [vmem:[#allocation2 + $0x8] sm:$0xff] %v5711_v23  ;;  %v5712_v24 = vmul.f32 %v7972_v13, %v5708_v1  ;;  %v5713_v26 = vmul.f32 %v7973_v25, %v5708_v1 }
 0xb96   : > { %5716 = vst [vmem:[#allocation2 + $0x10] sm:$0xff] %v5712_v24  ;;  %5717 = vst [vmem:[#allocation2 + $0x18] sm:$0xff] %v5713_v26 }
 0xb97 PF: > { %s9026_s29 = sld [smem:[#allocation8_spill]]  ;;  %s9027_s22 = sld [smem:[#allocation10_spill]]  ;;  %v5753_v11 = vlaneseq }
 0xb98   : > { %s9028_s1 = sld [smem:[#allocation7_spill]]  ;;  %s9029_s2 = sld [smem:[#allocation13_spill]] }
 0xb99   : > { %v5754_v15 = vshrl.u32 %v5753_v11, 7  ;;  %s9031_s24 = sld [smem:[#allocation14_spill]]  ;;  %s9033_s17 = sld [smem:[#allocation6_spill]] }
 0xb9a   : > { %s9034_s23 = sld [smem:[#allocation16_spill]]  ;;  %s9036_s16 = sld [smem:[#allocation18_spill]] }
 0xb9b   : > { %v8840_v2 = vld [vmem:[#allocation2] sm:$0xff]  ;;  %v8842_v27 = vld [vmem:[#allocation2 + $0x8] sm:$0xff]  ;;  %v5755_v19 = vsub.s32 0, %v5754_v15  ;;  %v5759_v20 = vsub.s32 1, %v5754_v15 }
 0xb9c   : > { %v5722_v29 = vadd.f32 %v8842_v27, %v8840_v2 }
 0xb9d   : > { %v8844_v28 = vld [vmem:[#allocation2 + $0x10] sm:$0xff]  ;;  %v8848_v30 = vld [vmem:[#allocation2 + $0x18] sm:$0xff]  ;;  %v7974_v32 = vld [vmem:[%s9026_s29 + $0x40] sm:$0xff]  }
 0xb9e   : > { %5723 = vadd.xlane.f32.xlu0 %v5722_v29  ;;  %v5725_v31 = vadd.f32 %v8848_v30, %v8844_v28  ;;  %v7975_v33 = vld [vmem:[%s9026_s29] sm:$0xff]   ;;  %7290 = vmatprep.subr.bf16.mxu0 %v7974_v32  ;;  %v7976_v47 = vld [vmem:[%s9026_s29 + $0x48] sm:$0xff]   ;;  %v7978_v53 = vld [vmem:[%s9026_s29 + $0x50] sm:$0xff]   ;;  %s9030_s12 = scalar_lea.vmem %s9029_s2, %s9028_s1 }
 0xb9f   : > { %7291 = vmatpush3.bf16.msra.mxu0 %v7975_v33  ;;  %v7977_v49 = vld [vmem:[%s9026_s29 + $0x8] sm:$0xff]   ;;  %v7979_v54 = vld [vmem:[%s9026_s29 + $0x10] sm:$0xff]   ;;  %v7980_v55 = vld [vmem:[%s9026_s29 + $0x58] sm:$0xff]   ;;  %s9032_s25 = scalar_lea.vmem %s9031_s24, %s9028_s1 }
 0xba0   : > { %7292 = vmatprep.subr.bf16.mxu0 %v7976_v47  ;;  %v7981_v50 = vld [vmem:[%s9026_s29 + $0x18] sm:$0xff]   ;;  %v7982_v51 = vld [vmem:[%s9026_s29 + $0x60] sm:$0xff]   ;;  %v7984_v56 = vld [vmem:[%s9026_s29 + $0x68] sm:$0xff]   ;;  %s9035_s26 = scalar_lea.vmem %s9034_s23, %s9033_s17  ;;  %s9037_s30 = scalar_lea.vmem %s9036_s16, %s9028_s1 }
 0xba1   : > { %v7983_v44 = vld [vmem:[%s9026_s29 + $0x20] sm:$0xff]   ;;  %v7985_v57 = vld [vmem:[%s9026_s29 + $0x28] sm:$0xff]   ;;  %v7986_v6 = vld [vmem:[%s9026_s29 + $0x70] sm:$0xff]  }
 0xba2   : > { %5726 = vadd.xlane.f32.xlu0 %v5725_v31  ;;  %v7987_v58 = vld [vmem:[%s9026_s29 + $0x30] sm:$0xff]   ;;  %v7988_v59 = vld [vmem:[%s9026_s29 + $0x78] sm:$0xff]   ;;  %v7990_v61 = vld [vmem:[%s9027_s22 + $0x4] ss:$8 sps:$4 sm:$0xff]  }
 0xba3   : > { %7293 = vmatpush3.bf16.msra.mxu0 %v7977_v49  ;;  %v7989_v60 = vld [vmem:[%s9026_s29 + $0x38] sm:$0xff]   ;;  %v7992_v62 = vld [vmem:[%s9027_s22] ss:$8 sps:$4 sm:$0xff]   ;;  %6076 = vmatprep.subr.bf16.mxu1 %v7990_v61  ;;  %v7996_v4 = vld [vmem:[%s9027_s22 + $0x24] ss:$8 sps:$4 sm:$0xff]  }
 0xba4   : > { %7294 = vmatprep.subr.bf16.mxu0 %v7978_v53  ;;  %v7993_v63 = vld [vmem:[%s9027_s22 + $0x14] ss:$8 sps:$4 sm:$0xff]   ;;  %6077 = vmatpush1.bf16.msra.mxu1 %v7992_v62  ;;  %v7995_v0 = vld [vmem:[%s9027_s22 + $0x10] ss:$8 sps:$4 sm:$0xff]   ;;  %v7998_v16 = vld [vmem:[%s9027_s22 + $0x20] ss:$8 sps:$4 sm:$0xff]  }
 0xba5   : > { %6078 = vmatprep.subr.bf16.mxu1 %v7993_v63  ;;  %v7999_v48 = vld [vmem:[%s9027_s22 + $0x34] ss:$8 sps:$4 sm:$0xff]   ;;  %v8001_v52 = vld [vmem:[%s9027_s22 + $0x30] ss:$8 sps:$4 sm:$0xff]   ;;  %v8002_v5 = vld [vmem:[%s9027_s22 + $0x44] ss:$8 sps:$4 sm:$0xff]  }
 0xba6   : > { %v8004_v9 = vld [vmem:[%s9027_s22 + $0x40] ss:$8 sps:$4 sm:$0xff]   ;;  %v8007_v47 = vld [vmem:[%s9027_s22 + $0x50] ss:$8 sps:$4 sm:$0xff]   ;;  %v8031_v53 = vmov 0  }
 0xba7   : > { %7295 = vmatpush3.bf16.msra.mxu0 %v7979_v54  ;;  %v5747_v21 = vld [vmem:[%s9030_s12] sm:$0x3]  ;;  %6108 = vmatprep.mubr.bf16.mxu1 %v8031_v53 }
 0xba8   : > { %7296 = vmatprep.subr.bf16.mxu0 %v7980_v55  ;;  %6079 = vmatpush1.bf16.msra.mxu1 %v7995_v0  ;;  %v5756_v22 = vrot.slane %v5747_v21, %v5755_v19  ;;  %v5760_v23 = vrot.slane %v5747_v21, %v5759_v20  ;;  %v5771_v24 = vld [vmem:[%s9032_s25] sm:$0x3] }
 0xba9   : > { %6080 = vmatprep.subr.bf16.mxu1 %v7996_v4  ;;  %v5776_v29 = vrot.slane %v5771_v24, %v5755_v19  ;;  %v5780_v31 = vrot.slane %v5771_v24, %v5759_v20  ;;  %v8010_v49 = vld [vmem:[%s9027_s22 + $0x60] ss:$8 sps:$4 sm:$0xff]  }
 0xbaa   : > { %v7194_v55 = vld [vmem:[%s9035_s26] ss:$0 sm:$0xff] }
 0xbab   : > { %7297 = vmatpush3.bf16.msra.mxu0 %v7981_v50  ;;  %v5984_v62 = vld [vmem:[%s9037_s30] sm:$0x3] }
 0xbac   : > { %7298 = vmatprep.subr.bf16.mxu0 %v7982_v51  ;;  %6081 = vmatpush1.bf16.msra.mxu1 %v7998_v16  ;;  %v5989_v63 = vrot.slane %v5984_v62, %v5755_v19  ;;  %v5993_v0 = vrot.slane %v5984_v62, %v5759_v20 }
 0xbad   : > { %6082 = vmatprep.subr.bf16.mxu1 %v7999_v48 }
 0xbaf   : > { %7299 = vmatpush3.bf16.msra.mxu0 %v7983_v44 }
 0xbb0   : > { %7300 = vmatprep.subr.bf16.mxu0 %v7984_v56  ;;  %6083 = vmatpush1.bf16.msra.mxu1 %v8001_v52 }
 0xbb1   : > { %6084 = vmatprep.subr.bf16.mxu1 %v8002_v5 }
 0xbb3   : > { %7301 = vmatpush3.bf16.msra.mxu0 %v7985_v57 }
 0xbb4   : > { %7302 = vmatprep.subr.bf16.mxu0 %v7986_v6  ;;  %6085 = vmatpush1.bf16.msra.mxu1 %v8004_v9 }
 0xbb7   : > { %7303 = vmatpush3.bf16.msra.mxu0 %v7987_v58 }
 0xbb8   : > { %7304 = vmatprep.subr.bf16.mxu0 %v7988_v59 }
 0xbbb   : > { %7305 = vmatpush3.bf16.msra.mxu0 %v7989_v60 }
 0xc2b   : > { %v5724_v34 = vpop.xlane.xlu0 %5723 }
 0xc2c   : > { %v5729_v35 = vmul.f32 0.00390625, %v5724_v34 }
 0xc2e   : > { %v8855_v8 = vsub.f32 %v8840_v2, %v5729_v35  ;;  %v8858_v36 = vsub.f32 %v8842_v27, %v5729_v35 }
 0xc2f   : > { %v5727_v37 = vpop.xlane.xlu0 %5726 }
 0xc30   : > { %v5730_v38 = vmul.f32 0.00390625, %v5727_v37  ;;  %v5735_v39 = vmul.f32 %v8855_v8, %v8855_v8  ;;  %v5736_v40 = vmul.f32 %v8858_v36, %v8858_v36 }
 0xc32   : > { %v8865_v41 = vsub.f32 %v8844_v28, %v5730_v38  ;;  %v8868_v42 = vsub.f32 %v8848_v30, %v5730_v38  ;;  %v5739_v43 = vadd.f32 %v5736_v40, %v5735_v39 }
 0xc34   : > { %5740 = vadd.xlane.f32.xlu1 %v5739_v43  ;;  %v5737_v45 = vmul.f32 %v8865_v41, %v8865_v41  ;;  %v5738_v3 = vmul.f32 %v8868_v42, %v8868_v42 }
 0xc36   : > { %v5742_v46 = vadd.f32 %v5738_v3, %v5737_v45 }
 0xc38   : > { %5743 = vadd.xlane.f32.xlu1 %v5742_v46 }
 0xcc1   : > { %v5741_v10 = vpop.xlane.xlu1 %5740 }
 0xcc2   : > { %v5745_v12 = vmul.f32 0.00390625, %v5741_v10 }
 0xcc4   : > { %v5748_v14 = vadd.f32 1e-05, %v5745_v12 }
 0xcc5   : > { %v5744_v17 = vpop.xlane.xlu1 %5743 }
 0xcc6   : > { %8014 = vrsqrt.f32 %v5748_v14  ;;  %v5746_v7 = vmul.f32 0.00390625, %v5744_v17 }
 0xcc8   : > { %v5749_v18 = vadd.f32 1e-05, %v5746_v7 }
 0xcca   : > { %8016 = vrsqrt.f32 %v5749_v18 }
 0xcd0   : > { %v8015_v1 = vpop.eup %8014 }
 0xcd1   : > { %v5764_v13 = vmul.f32 %v8015_v1, %v5760_v23  ;;  %v5763_v25 = vmul.f32 %v8015_v1, %v5756_v22 }
 0xcd3   : > { %v5768_v33 = vmul.f32 %v5764_v13, %v8858_v36  ;;  %v5767_v35 = vmul.f32 %v5763_v25, %v8855_v8  ;;  %v8005_v36 = vld [vmem:[%s9027_s22 + $0x54] ss:$8 sps:$4 sm:$0xff]   ;;  %v8008_v8 = vld [vmem:[%s9027_s22 + $0x64] ss:$8 sps:$4 sm:$0xff]  }
 0xcd4   : > { %v8017_v26 = vpop.eup %8016  ;;  %6086 = vmatprep.subr.bf16.mxu1 %v8005_v36 }
 0xcd5   : > { %v5766_v32 = vmul.f32 %v8017_v26, %v5760_v23  ;;  %v5765_v34 = vmul.f32 %v8017_v26, %v5756_v22  ;;  %v5784_v39 = vadd.f32 %v5780_v31, %v5768_v33  ;;  %v5783_v43 = vadd.f32 %v5776_v29, %v5767_v35  ;;  %6087 = vmatpush1.bf16.msra.mxu1 %v8007_v47 }
 0xcd6   : > { %6088 = vmatprep.subr.bf16.mxu1 %v8008_v8 }
 0xcd7   : > { %v5770_v37 = vmul.f32 %v5766_v32, %v8868_v42  ;;  %v5769_v38 = vmul.f32 %v5765_v34, %v8865_v41  ;;  %v8011_v41 = vld [vmem:[%s9027_s22 + $0x74] ss:$8 sps:$4 sm:$0xff]   ;;  %v8013_v42 = vld [vmem:[%s9027_s22 + $0x70] ss:$8 sps:$4 sm:$0xff]  }
 0xcd9   : > { %v5786_v40 = vadd.f32 %v5780_v31, %v5770_v37  ;;  %v5785_v45 = vadd.f32 %v5776_v29, %v5769_v38  ;;  %6089 = vmatpush1.bf16.msra.mxu1 %v8010_v49 }
 0xcda   : > { %6090 = vmatprep.subr.bf16.mxu1 %v8011_v41 }
 0xcdb   : > { %v5788_v3 = vpack.c.bf16 %v5786_v40, %v5784_v39  ;;  %v5787_v46 = vpack.c.bf16 %v5785_v45, %v5783_v43 }
 0xcdd   : > { %5956 = vmatprep.mubr.bf16.mxu0 %v5788_v3  ;;  %6091 = vmatpush1.bf16.msra.mxu1 %v8013_v42 }
 0xcde   : > { %5957 = vmatmul.mubr.bf16.vlgmr.msra.gmra.mrb[0].mxu0 %v5787_v46 }
 0xdb1   : > { %v7306_v54 = vpop.f32.mrb[0].mxu0 }
 0xdb2   : > { %v7307_v50 = vpop.f32.mrb[1].mxu0 }
 0xdb3   : > { %v7308_v51 = vadd.f32 %v7307_v50, %v7306_v54  ;;  %v7309_v44 = vpop.f32.mrb[2].mxu0 }
 0xdb4   : > { %v7310_v56 = vpop.f32.mrb[3].mxu0 }
 0xdb5   : > { %v5959_v57 = vadd.f32 %v7308_v51, %v7194_v55  ;;  %v7311_v6 = vadd.f32 %v7310_v56, %v7309_v44 }
 0xdb7   : > { %v5962_v58 = vadd.f32 %v7311_v6, %v7194_v55  ;;  %v5965_v59 = vmax.f32 %v5959_v57, 0.0 }
 0xdb9   : > { %v5966_v60 = vmax.f32 %v5962_v58, 0.0 }
 0xdbb   : > { %v5967_v61 = vpack.c.bf16 %v5966_v60, %v5965_v59 }
 0xdbd   : > { %6109 = vmatmul.mubr.bf16.vlgmr.msra.gmra.mrb[0].mxu1 %v5967_v61 }
 0xe90   : > { %v6110_v4 = vpop.f32.mrb[0].mxu1 }
 0xe91   : > { %v6111_v16 = vadd.f32 %v6110_v4, %v5989_v63  ;;  %v6112_v48 = vpop.f32.mrb[1].mxu1 }
 0xe92   : > { %v6113_v52 = vadd.f32 %v6112_v48, %v5993_v0  ;;  %v6114_v5 = vpop.f32.mrb[2].mxu1 }
 0xe93   : > { %v6119_v9 = vmul.f32 0.5, %v6111_v16  ;;  %v6115_v10 = vadd.f32 %v6114_v5, %v5989_v63  ;;  %v6116_v11 = vpop.f32.mrb[3].mxu1 }
 0xe94   : > { %v6120_v12 = vmul.f32 0.5, %v6113_v52  ;;  %v6117_v14 = vadd.f32 %v6116_v11, %v5993_v0 }
 0xe95   : > { %v6123_v17 = vadd.f32 %v6119_v9, %v8840_v2  ;;  %v6121_v15 = vmul.f32 0.5, %v6115_v10 }
 0xe96   : > { %v6124_v7 = vadd.f32 %v6120_v12, %v8842_v27  ;;  %v6122_v18 = vmul.f32 0.5, %v6117_v14 }
 0xe97   : > { %6127 = vst [vmem:[#allocation2] sm:$0xff] %v6123_v17  ;;  %v6125_v19 = vadd.f32 %v6121_v15, %v8844_v28 }
 0xe98   : > { %6128 = vst [vmem:[#allocation2 + $0x8] sm:$0xff] %v6124_v7  ;;  %v6126_v20 = vadd.f32 %v6122_v18, %v8848_v30 }
 0xe99   : > { %6129 = vst [vmem:[#allocation2 + $0x10] sm:$0xff] %v6125_v19 }
 0xe9a   : > { %6130 = vst [vmem:[#allocation2 + $0x18] sm:$0xff] %v6126_v20 }
 0xe9b PF: > { %s9038_s19 = sld [smem:[#allocation4_spill]] }
 0xea1   : > { %s31_s2 = sadd.s32 1, %s9038_s19  }
 0xea2   : > { %p28_p0 = scmp.ge.s32.totalorder %s31_s2, 12  }
 0xea4   :  { %30 = sbr.rel (!%p28_p0) target bundleno = 23 (0x17), region = 215 }

</bundles_post_ra>
